<compile_context>
chip_gen: v5e
topology: v5e:2x2
jax: 0.10.0
libtpu: 0.0.40
codegen_flags: <defaults>
</compile_context>

<pallas_src>
import functools
import math

import jax
import jax.numpy as jnp
from jax.experimental import pallas as pl
from jax.experimental.pallas import tpu as pltpu


def _dot_nt(a, b):
    """a:(M,K), b:(N,K) -> (M,N); contraction over last dims (no XLU transpose)."""
    return jax.lax.dot_general(a, b, (((1,), (1,)), ((), ())),
                               preferred_element_type=jnp.float32)


# ----------------------------------------------------------------------------
# Fused per-layer Pallas kernel (one grid step == one batch element)
# ----------------------------------------------------------------------------
def _decoder_layer_kernel(xt_ref, xs_ref, tbias_ref, sbias_ref,
                          wqkv_ref, bqkv_ref, wo_ref, bo_ref,
                          lng_ref, lnb_ref,
                          w1_ref, b1_ref, w2_ref, b2_ref,
                          o_ref, *, num_heads, eps):
    St, D = xt_ref.shape
    Ss = xs_ref.shape[0]
    H = num_heads
    dh = D // H
    scale = 1.0 / math.sqrt(dh)

    # tiny params: load once (bf16 matmul weights, f32 biases / LN params)
    wqkv = wqkv_ref[...]            # (D, 3D)  bf16
    bqkv = bqkv_ref[...]            # (1, 3D)  f32
    wo = wo_ref[...]                # (D, D)   bf16
    bo = bo_ref[...]                # (1, D)   f32
    ln_g = lng_ref[...]             # (1, D)   f32
    ln_b = lnb_ref[...]             # (1, D)   f32
    w1 = w1_ref[...]                # (D, d_ff) bf16
    b1 = b1_ref[...]                # (1, d_ff) f32
    w2 = w2_ref[...]                # (d_ff, D) bf16
    b2 = b2_ref[...]                # (1, D)    f32

    def add_ln(a, res):
        # LayerNorm(a + res) over the last dim, f32 math
        z = a + res
        mu = jnp.mean(z, axis=-1, keepdims=True)
        var = jnp.mean(jnp.square(z - mu), axis=-1, keepdims=True)
        return (z - mu) * jax.lax.rsqrt(var + eps) * ln_g + ln_b

    def attention(q, k, v, bias):
        # q:(Sq,D) f32, k/v:(Sk,D) f32, bias:(Sq,Sk) additive f32 (0 / -1e9)
        qb = (q * scale).astype(jnp.bfloat16)     # fold 1/sqrt(dh) into Q
        kb = k.astype(jnp.bfloat16)
        vb = v.astype(jnp.bfloat16)
        # TODO(synk): for Sk beyond ~1-2K switch to a flash-style online softmax
        # over Sk tiles instead of materializing the full (Sq,Sk) scores.
        ctx = []
        for h in range(H):                        # static unroll over heads
            lo = h * dh
            s = _dot_nt(qb[:, lo:lo + dh], kb[:, lo:lo + dh]) + bias   # (Sq,Sk) f32
            m = jnp.max(s, axis=-1, keepdims=True)
            p = jnp.exp(s - m)                    # unnormalized probabilities
            denom = jnp.sum(p, axis=-1, keepdims=True)                 # (Sq,1)
            c = jnp.dot(p.astype(jnp.bfloat16), vb[:, lo:lo + dh],
                        preferred_element_type=jnp.float32)            # (Sq,dh)
            # deferred softmax normalization on the small (Sq,dh) context
            ctx.append(c * pl.reciprocal(denom, approx=True))
        ctx = jnp.concatenate(ctx, axis=-1)       # (Sq, D): heads on lane axis
        # single K=D output projection (replaces H tiny K=dh matmuls)
        return jnp.dot(ctx.astype(jnp.bfloat16), wo,
                       preferred_element_type=jnp.float32) + bo

    x = xt_ref[...]                               # (St, D) f32
    xs = xs_ref[...]                              # (Ss, D) f32

    # ---------------- masked self-attention + Add&LN ------------------------
    qkv = jnp.dot(x.astype(jnp.bfloat16), wqkv,
                  preferred_element_type=jnp.float32) + bqkv           # (St, 3D)
    a = attention(qkv[:, :D], qkv[:, D:2 * D], qkv[:, 2 * D:], tbias_ref[...])
    x1 = add_ln(a, x)

    # ------------- cross-attention with encoder output + Add&LN -------------
    q = jnp.dot(x1.astype(jnp.bfloat16), wqkv[:, :D],
                preferred_element_type=jnp.float32) + bqkv[:, :D]
    kv = jnp.dot(xs.astype(jnp.bfloat16), wqkv[:, D:],
                 preferred_element_type=jnp.float32) + bqkv[:, D:]
    a = attention(q, kv[:, :D], kv[:, D:], sbias_ref[...])
    x2 = add_ln(a, x1)

    # -------------------------- feed-forward + Add&LN -----------------------
    h = jnp.dot(x2.astype(jnp.bfloat16), w1,
                preferred_element_type=jnp.float32) + b1
    h = jnp.maximum(h, 0.0)
    y = jnp.dot(h.astype(jnp.bfloat16), w2,
                preferred_element_type=jnp.float32) + b2
    o_ref[...] = add_ln(y, x2).astype(o_ref.dtype)


def _vmem_limit_bytes(st, ss, d, d_ff):
    # per-grid-step live set (f32 activations, bf16 weights) x generous factor
    # for double-buffering + temporaries; clamp to a v7x-safe 64 MiB ceiling.
    act = 4 * (st * d + ss * d + st * st + st * ss + st * 3 * d + st * d_ff)
    wts = 2 * (3 * d * d + d * d + 2 * d * d_ff) + 4 * (5 * d + d_ff)
    est = 4 * (act + wts)
    return int(min(64 * 1024 * 1024, max(16 * 1024 * 1024, est)))


def decoder_layer(x_t, x_s, s_bias, t_bias, lp, num_heads, eps=1e-12):
    """One fused decoder layer: (B,St,D),(B,Ss,D) -> (B,St,D)."""
    b, st, d = x_t.shape
    ss = x_s.shape[1]
    d_ff = lp["w1"].shape[1]

    def batch_tile(s1, s2):
        # batch dim squeezed out of the kernel ref; one batch element per step
        return pl.BlockSpec((None, s1, s2), lambda i: (i, 0, 0))

    def resident(a):
        # constant index_map -> weight stays resident in VMEM across the grid
        return pl.BlockSpec(a.shape, lambda i: (0, 0))

    in_specs = [
        batch_tile(st, d),                      # x_t
        batch_tile(ss, d),                      # x_s (encoder output)
        batch_tile(st, st),                     # target additive bias
        batch_tile(st, ss),                     # source additive bias
        resident(lp["wqkv"]), resident(lp["bqkv"]),
        resident(lp["wo"]), resident(lp["bo"]),
        resident(lp["ln_g"]), resident(lp["ln_b"]),
        resident(lp["w1"]), resident(lp["b1"]),
        resident(lp["w2"]), resident(lp["b2"]),
    ]

    kernel = functools.partial(_decoder_layer_kernel, num_heads=num_heads, eps=eps)
    return pl.pallas_call(
        kernel,
        out_shape=jax.ShapeDtypeStruct((b, st, d), x_t.dtype),
        grid_spec=pltpu.PrefetchScalarGridSpec(
            num_scalar_prefetch=0,
            grid=(b,),
            in_specs=in_specs,
            out_specs=pl.BlockSpec((None, st, d), lambda i: (i, 0, 0)),
        ),
        compiler_params=pltpu.CompilerParams(
            dimension_semantics=("parallel",),
            vmem_limit_bytes=_vmem_limit_bytes(st, ss, d, d_ff),
        ),
    )(x_t, x_s, t_bias, s_bias,
      lp["wqkv"], lp["bqkv"], lp["wo"], lp["bo"],
      lp["ln_g"], lp["ln_b"],
      lp["w1"], lp["b1"], lp["w2"], lp["b2"])


# ----------------------------------------------------------------------------
# Model glue (plain JAX): embedding lookup + PE, mask->bias, layer stacking
# ----------------------------------------------------------------------------
def sinusoidal_pe(max_len, d_model):
    pos = jnp.arange(max_len, dtype=jnp.float32)[:, None]
    i = jnp.arange(0, d_model, 2, dtype=jnp.float32)
    angle = pos / jnp.power(10000.0, i / d_model)
    pe = jnp.zeros((max_len, d_model), jnp.float32)
    pe = pe.at[:, 0::2].set(jnp.sin(angle))
    pe = pe.at[:, 1::2].set(jnp.cos(angle))
    return pe


def init_decoder_params(key, d_model, d_ff, num_heads, n_layers, t_voca_len, max_len):
    def dense(k, din, dout):
        return (0.02 * jax.random.normal(k, (din, dout), jnp.float32),
                jnp.zeros((1, dout), jnp.float32))

    keys = jax.random.split(key, 1 + n_layers)
    params = {
        "emb": 0.02 * jax.random.normal(keys[0], (t_voca_len, d_model), jnp.float32),
        "pe": sinusoidal_pe(max_len, d_model),
        "layers": [],
    }
    for li in range(n_layers):
        lk = jax.random.split(keys[1 + li], 6)
        wq, bq = dense(lk[0], d_model, d_model)
        wk, bk = dense(lk[1], d_model, d_model)
        wv, bv = dense(lk[2], d_model, d_model)
        wo, bo = dense(lk[3], d_model, d_model)
        w1, b1 = dense(lk[4], d_model, d_ff)
        w2, b2 = dense(lk[5], d_ff, d_model)
        params["layers"].append({
            # Q/K/V projections concatenated -> single (D,3D) matmul in-kernel;
            # matmul weights stored bf16 (MXU operands), biases / LN kept f32.
            "wqkv": jnp.concatenate([wq, wk, wv], axis=1).astype(jnp.bfloat16),
            "bqkv": jnp.concatenate([bq, bk, bv], axis=1),
            "wo": wo.astype(jnp.bfloat16), "bo": bo,
            "ln_g": jnp.ones((1, d_model), jnp.float32),
            "ln_b": jnp.zeros((1, d_model), jnp.float32),
            "w1": w1.astype(jnp.bfloat16), "b1": b1,
            "w2": w2.astype(jnp.bfloat16), "b2": b2,
        })
    return params


def decoder_forward(params, x_s, x_t_ids, s_mask, t_mask, num_heads):
    # embedding layer: token emb + positional enc (+ dropout -> identity in eval)
    st = x_t_ids.shape[1]
    x = params["emb"][x_t_ids] + params["pe"][:st][None, :, :]
    # masks -> additive f32 biases ONCE (hoisted out of every layer's per-head loop)
    t_bias = jnp.where(t_mask > 0, 0.0, -1e9).astype(jnp.float32)
    s_bias = jnp.where(s_mask > 0, 0.0, -1e9).astype(jnp.float32)
    for lp in params["layers"]:
        # one fused pallas_call per layer, grid over the batch dimension
        x = decoder_layer(x, x_s, s_bias, t_bias, lp, num_heads)
    return x


# ----------------------------------------------------------------------------
if __name__ == "__main__":
    d_model, d_ff, num_heads, n_layers = 32, 64, 4, 2
    t_voca_len, max_len = 50, 16
    B, S_t, S_s = 2, 8, 8

    key = jax.random.PRNGKey(0)
    k_p, k_s, k_t = jax.random.split(key, 3)

    params = init_decoder_params(k_p, d_model, d_ff, num_heads, n_layers,
                                 t_voca_len, max_len)

    x_s = jax.random.normal(k_s, (B, S_s, d_model), jnp.float32)        # encoder output
    x_t = jax.random.randint(k_t, (B, S_t), 0, t_voca_len, jnp.int32)   # target token ids

    # target mask: causal (lower triangular); source mask: padding (last 2 src
    # positions of batch item 1 masked out).
    t_mask = jnp.tril(jnp.ones((S_t, S_t), jnp.float32))[None].repeat(B, axis=0)
    src_pad = jnp.ones((B, S_s), jnp.float32).at[1, -2:].set(0.0)
    s_mask = jnp.broadcast_to(src_pad[:, None, :], (B, S_t, S_s))

    fwd = jax.jit(decoder_forward, static_argnames="num_heads")
    out = fwd(params, x_s, x_t, s_mask, t_mask, num_heads=num_heads)
    out = jax.block_until_ready(out)
    assert out.shape == (B, S_t, d_model)
    assert bool(jnp.all(jnp.isfinite(out)))
    print("KERNEL_OK")
</pallas_src>

<mosaic_0001>
module attributes {stable_mosaic.version = 11 : i64} {
  func.func @_decoder_layer_kernel(%arg0: i32, %arg1: memref<1x8x32xf32, #tpu.memory_space<vmem>>, %arg2: memref<1x8x32xf32, #tpu.memory_space<vmem>>, %arg3: memref<1x8x8xf32, #tpu.memory_space<vmem>>, %arg4: memref<1x8x8xf32, #tpu.memory_space<vmem>>, %arg5: memref<32x96xbf16, #tpu.memory_space<vmem>>, %arg6: memref<1x96xf32, #tpu.memory_space<vmem>>, %arg7: memref<32x32xbf16, #tpu.memory_space<vmem>>, %arg8: memref<1x32xf32, #tpu.memory_space<vmem>>, %arg9: memref<1x32xf32, #tpu.memory_space<vmem>>, %arg10: memref<1x32xf32, #tpu.memory_space<vmem>>, %arg11: memref<32x64xbf16, #tpu.memory_space<vmem>>, %arg12: memref<1x64xf32, #tpu.memory_space<vmem>>, %arg13: memref<64x32xbf16, #tpu.memory_space<vmem>>, %arg14: memref<1x32xf32, #tpu.memory_space<vmem>>, %arg15: memref<1x8x32xf32, #tpu.memory_space<vmem>>) attributes {dimension_semantics = [#tpu.dimension_semantics<parallel>], iteration_bounds = array<i64: 2>, scalar_prefetch = 0 : i64, scratch_operands = 0 : i64, tpu.core_type = #tpu.core_type<tc>, window_params = [{transform_indices = @transform_0, window_bounds = array<i64: 1, 8, 32>}, {transform_indices = @transform_1, window_bounds = array<i64: 1, 8, 32>}, {transform_indices = @transform_2, window_bounds = array<i64: 1, 8, 8>}, {transform_indices = @transform_3, window_bounds = array<i64: 1, 8, 8>}, {pipeline_mode = #tpu.pipeline_mode<synchronous>, transform_indices = @transform_4, window_bounds = array<i64: 32, 96>}, {pipeline_mode = #tpu.pipeline_mode<synchronous>, transform_indices = @transform_5, window_bounds = array<i64: 1, 96>}, {pipeline_mode = #tpu.pipeline_mode<synchronous>, transform_indices = @transform_6, window_bounds = array<i64: 32, 32>}, {pipeline_mode = #tpu.pipeline_mode<synchronous>, transform_indices = @transform_7, window_bounds = array<i64: 1, 32>}, {pipeline_mode = #tpu.pipeline_mode<synchronous>, transform_indices = @transform_8, window_bounds = array<i64: 1, 32>}, {pipeline_mode = #tpu.pipeline_mode<synchronous>, transform_indices = @transform_9, window_bounds = array<i64: 1, 32>}, {pipeline_mode = #tpu.pipeline_mode<synchronous>, transform_indices = @transform_10, window_bounds = array<i64: 32, 64>}, {pipeline_mode = #tpu.pipeline_mode<synchronous>, transform_indices = @transform_11, window_bounds = array<i64: 1, 64>}, {pipeline_mode = #tpu.pipeline_mode<synchronous>, transform_indices = @transform_12, window_bounds = array<i64: 64, 32>}, {pipeline_mode = #tpu.pipeline_mode<synchronous>, transform_indices = @transform_13, window_bounds = array<i64: 1, 32>}, {transform_indices = @transform_14, window_bounds = array<i64: 1, 8, 32>}]} {
    %c0 = arith.constant 0 : index
    %c0_0 = arith.constant 0 : index
    %0 = vector.load %arg5[%c0, %c0_0] : memref<32x96xbf16, #tpu.memory_space<vmem>>, vector<32x96xbf16>
    %c0_1 = arith.constant 0 : index
    %c0_2 = arith.constant 0 : index
    %1 = vector.load %arg6[%c0_1, %c0_2] : memref<1x96xf32, #tpu.memory_space<vmem>>, vector<1x96xf32>
    %c0_3 = arith.constant 0 : index
    %c0_4 = arith.constant 0 : index
    %2 = vector.load %arg7[%c0_3, %c0_4] : memref<32x32xbf16, #tpu.memory_space<vmem>>, vector<32x32xbf16>
    %c0_5 = arith.constant 0 : index
    %c0_6 = arith.constant 0 : index
    %3 = vector.load %arg8[%c0_5, %c0_6] : memref<1x32xf32, #tpu.memory_space<vmem>>, vector<1x32xf32>
    %c0_7 = arith.constant 0 : index
    %c0_8 = arith.constant 0 : index
    %4 = vector.load %arg9[%c0_7, %c0_8] : memref<1x32xf32, #tpu.memory_space<vmem>>, vector<1x32xf32>
    %c0_9 = arith.constant 0 : index
    %c0_10 = arith.constant 0 : index
    %5 = vector.load %arg10[%c0_9, %c0_10] : memref<1x32xf32, #tpu.memory_space<vmem>>, vector<1x32xf32>
    %c0_11 = arith.constant 0 : index
    %c0_12 = arith.constant 0 : index
    %6 = vector.load %arg11[%c0_11, %c0_12] : memref<32x64xbf16, #tpu.memory_space<vmem>>, vector<32x64xbf16>
    %c0_13 = arith.constant 0 : index
    %c0_14 = arith.constant 0 : index
    %7 = vector.load %arg12[%c0_13, %c0_14] : memref<1x64xf32, #tpu.memory_space<vmem>>, vector<1x64xf32>
    %c0_15 = arith.constant 0 : index
    %c0_16 = arith.constant 0 : index
    %8 = vector.load %arg13[%c0_15, %c0_16] : memref<64x32xbf16, #tpu.memory_space<vmem>>, vector<64x32xbf16>
    %c0_17 = arith.constant 0 : index
    %c0_18 = arith.constant 0 : index
    %9 = vector.load %arg14[%c0_17, %c0_18] : memref<1x32xf32, #tpu.memory_space<vmem>>, vector<1x32xf32>
    %c0_19 = arith.constant 0 : index
    %c0_20 = arith.constant 0 : index
    %c0_21 = arith.constant 0 : index
    %10 = vector.load %arg1[%c0_19, %c0_20, %c0_21] : memref<1x8x32xf32, #tpu.memory_space<vmem>>, vector<1x8x32xf32>
    %11 = vector.shape_cast %10 : vector<1x8x32xf32> to vector<8x32xf32>
    %c0_22 = arith.constant 0 : index
    %c0_23 = arith.constant 0 : index
    %c0_24 = arith.constant 0 : index
    %12 = vector.load %arg2[%c0_22, %c0_23, %c0_24] : memref<1x8x32xf32, #tpu.memory_space<vmem>>, vector<1x8x32xf32>
    %13 = vector.shape_cast %12 : vector<1x8x32xf32> to vector<8x32xf32>
    %14 = arith.truncf %11 : vector<8x32xf32> to vector<8x32xbf16>
    %cst = arith.constant dense<0.000000e+00> : vector<8x96xf32>
    %15 = tpu.matmul %14, %0, %cst {dimension_numbers = #tpu.dot_dimension_numbers<[1], [0], [0], [1], [0, 0, 1, 1], [], []>} : vector<8x32xbf16>, vector<32x96xbf16>, vector<8x96xf32> -> vector<8x96xf32>
    %16 = vector.broadcast %1 : vector<1x96xf32> to vector<8x96xf32>
    %17 = arith.addf %15, %16 : vector<8x96xf32>
    %18 = vector.extract_strided_slice %17 {offsets = [0, 0], sizes = [8, 32], strides = [1, 1]} : vector<8x96xf32> to vector<8x32xf32>
    %19 = vector.extract_strided_slice %17 {offsets = [0, 32], sizes = [8, 32], strides = [1, 1]} : vector<8x96xf32> to vector<8x32xf32>
    %20 = vector.extract_strided_slice %17 {offsets = [0, 64], sizes = [8, 32], strides = [1, 1]} : vector<8x96xf32> to vector<8x32xf32>
    %c0_25 = arith.constant 0 : index
    %c0_26 = arith.constant 0 : index
    %c0_27 = arith.constant 0 : index
    %21 = vector.load %arg3[%c0_25, %c0_26, %c0_27] : memref<1x8x8xf32, #tpu.memory_space<vmem>>, vector<1x8x8xf32>
    %22 = vector.shape_cast %21 : vector<1x8x8xf32> to vector<8x8xf32>
    %cst_28 = arith.constant 0.353553385 : f32
    %23 = vector.broadcast %cst_28 : f32 to vector<8x32xf32>
    %24 = arith.mulf %18, %23 : vector<8x32xf32>
    %25 = arith.truncf %24 : vector<8x32xf32> to vector<8x32xbf16>
    %26 = arith.truncf %19 : vector<8x32xf32> to vector<8x32xbf16>
    %27 = arith.truncf %20 : vector<8x32xf32> to vector<8x32xbf16>
    %28 = vector.extract_strided_slice %25 {offsets = [0, 0], sizes = [8, 8], strides = [1, 1]} : vector<8x32xbf16> to vector<8x8xbf16>
    %29 = vector.extract_strided_slice %26 {offsets = [0, 0], sizes = [8, 8], strides = [1, 1]} : vector<8x32xbf16> to vector<8x8xbf16>
    %cst_29 = arith.constant dense<0.000000e+00> : vector<8x8xf32>
    %30 = tpu.matmul %28, %29, %cst_29 {dimension_numbers = #tpu.dot_dimension_numbers<[1], [1], [0], [0], [0, 0, 1, 0], [], []>} : vector<8x8xbf16>, vector<8x8xbf16>, vector<8x8xf32> -> vector<8x8xf32>
    %31 = arith.addf %30, %22 : vector<8x8xf32>
    %cst_30 = arith.constant dense<0xFF800000> : vector<8xf32>
    %32 = vector.multi_reduction <maximumf>, %31, %cst_30 [1] : vector<8x8xf32> to vector<8xf32>
    %33 = vector.shape_cast %32 : vector<8xf32> to vector<8x1xf32>
    %34 = vector.broadcast %33 : vector<8x1xf32> to vector<8x8xf32>
    %35 = arith.subf %31, %34 : vector<8x8xf32>
    %36 = math.exp %35 : vector<8x8xf32>
    %cst_31 = arith.constant dense<0.000000e+00> : vector<8xf32>
    %37 = vector.multi_reduction <add>, %36, %cst_31 [1] : vector<8x8xf32> to vector<8xf32>
    %38 = vector.shape_cast %37 : vector<8xf32> to vector<8x1xf32>
    %39 = arith.truncf %36 : vector<8x8xf32> to vector<8x8xbf16>
    %40 = vector.extract_strided_slice %27 {offsets = [0, 0], sizes = [8, 8], strides = [1, 1]} : vector<8x32xbf16> to vector<8x8xbf16>
    %cst_32 = arith.constant dense<0.000000e+00> : vector<8x8xf32>
    %41 = tpu.matmul %39, %40, %cst_32 {dimension_numbers = #tpu.dot_dimension_numbers<[1], [0], [0], [1], [0, 0, 1, 1], [], []>} : vector<8x8xbf16>, vector<8x8xbf16>, vector<8x8xf32> -> vector<8x8xf32>
    %42 = tpu.reciprocal %38 {approx = true} : vector<8x1xf32> -> vector<8x1xf32>
    %43 = vector.broadcast %42 : vector<8x1xf32> to vector<8x8xf32>
    %44 = arith.mulf %41, %43 : vector<8x8xf32>
    %45 = vector.extract_strided_slice %25 {offsets = [0, 8], sizes = [8, 8], strides = [1, 1]} : vector<8x32xbf16> to vector<8x8xbf16>
    %46 = vector.extract_strided_slice %26 {offsets = [0, 8], sizes = [8, 8], strides = [1, 1]} : vector<8x32xbf16> to vector<8x8xbf16>
    %cst_33 = arith.constant dense<0.000000e+00> : vector<8x8xf32>
    %47 = tpu.matmul %45, %46, %cst_33 {dimension_numbers = #tpu.dot_dimension_numbers<[1], [1], [0], [0], [0, 0, 1, 0], [], []>} : vector<8x8xbf16>, vector<8x8xbf16>, vector<8x8xf32> -> vector<8x8xf32>
    %48 = arith.addf %47, %22 : vector<8x8xf32>
    %cst_34 = arith.constant dense<0xFF800000> : vector<8xf32>
    %49 = vector.multi_reduction <maximumf>, %48, %cst_34 [1] : vector<8x8xf32> to vector<8xf32>
    %50 = vector.shape_cast %49 : vector<8xf32> to vector<8x1xf32>
    %51 = vector.broadcast %50 : vector<8x1xf32> to vector<8x8xf32>
    %52 = arith.subf %48, %51 : vector<8x8xf32>
    %53 = math.exp %52 : vector<8x8xf32>
    %cst_35 = arith.constant dense<0.000000e+00> : vector<8xf32>
    %54 = vector.multi_reduction <add>, %53, %cst_35 [1] : vector<8x8xf32> to vector<8xf32>
    %55 = vector.shape_cast %54 : vector<8xf32> to vector<8x1xf32>
    %56 = arith.truncf %53 : vector<8x8xf32> to vector<8x8xbf16>
    %57 = vector.extract_strided_slice %27 {offsets = [0, 8], sizes = [8, 8], strides = [1, 1]} : vector<8x32xbf16> to vector<8x8xbf16>
    %cst_36 = arith.constant dense<0.000000e+00> : vector<8x8xf32>
    %58 = tpu.matmul %56, %57, %cst_36 {dimension_numbers = #tpu.dot_dimension_numbers<[1], [0], [0], [1], [0, 0, 1, 1], [], []>} : vector<8x8xbf16>, vector<8x8xbf16>, vector<8x8xf32> -> vector<8x8xf32>
    %59 = tpu.reciprocal %55 {approx = true} : vector<8x1xf32> -> vector<8x1xf32>
    %60 = vector.broadcast %59 : vector<8x1xf32> to vector<8x8xf32>
    %61 = arith.mulf %58, %60 : vector<8x8xf32>
    %62 = vector.extract_strided_slice %25 {offsets = [0, 16], sizes = [8, 8], strides = [1, 1]} : vector<8x32xbf16> to vector<8x8xbf16>
    %63 = vector.extract_strided_slice %26 {offsets = [0, 16], sizes = [8, 8], strides = [1, 1]} : vector<8x32xbf16> to vector<8x8xbf16>
    %cst_37 = arith.constant dense<0.000000e+00> : vector<8x8xf32>
    %64 = tpu.matmul %62, %63, %cst_37 {dimension_numbers = #tpu.dot_dimension_numbers<[1], [1], [0], [0], [0, 0, 1, 0], [], []>} : vector<8x8xbf16>, vector<8x8xbf16>, vector<8x8xf32> -> vector<8x8xf32>
    %65 = arith.addf %64, %22 : vector<8x8xf32>
    %cst_38 = arith.constant dense<0xFF800000> : vector<8xf32>
    %66 = vector.multi_reduction <maximumf>, %65, %cst_38 [1] : vector<8x8xf32> to vector<8xf32>
    %67 = vector.shape_cast %66 : vector<8xf32> to vector<8x1xf32>
    %68 = vector.broadcast %67 : vector<8x1xf32> to vector<8x8xf32>
    %69 = arith.subf %65, %68 : vector<8x8xf32>
    %70 = math.exp %69 : vector<8x8xf32>
    %cst_39 = arith.constant dense<0.000000e+00> : vector<8xf32>
    %71 = vector.multi_reduction <add>, %70, %cst_39 [1] : vector<8x8xf32> to vector<8xf32>
    %72 = vector.shape_cast %71 : vector<8xf32> to vector<8x1xf32>
    %73 = arith.truncf %70 : vector<8x8xf32> to vector<8x8xbf16>
    %74 = vector.extract_strided_slice %27 {offsets = [0, 16], sizes = [8, 8], strides = [1, 1]} : vector<8x32xbf16> to vector<8x8xbf16>
    %cst_40 = arith.constant dense<0.000000e+00> : vector<8x8xf32>
    %75 = tpu.matmul %73, %74, %cst_40 {dimension_numbers = #tpu.dot_dimension_numbers<[1], [0], [0], [1], [0, 0, 1, 1], [], []>} : vector<8x8xbf16>, vector<8x8xbf16>, vector<8x8xf32> -> vector<8x8xf32>
    %76 = tpu.reciprocal %72 {approx = true} : vector<8x1xf32> -> vector<8x1xf32>
    %77 = vector.broadcast %76 : vector<8x1xf32> to vector<8x8xf32>
    %78 = arith.mulf %75, %77 : vector<8x8xf32>
    %79 = vector.extract_strided_slice %25 {offsets = [0, 24], sizes = [8, 8], strides = [1, 1]} : vector<8x32xbf16> to vector<8x8xbf16>
    %80 = vector.extract_strided_slice %26 {offsets = [0, 24], sizes = [8, 8], strides = [1, 1]} : vector<8x32xbf16> to vector<8x8xbf16>
    %cst_41 = arith.constant dense<0.000000e+00> : vector<8x8xf32>
    %81 = tpu.matmul %79, %80, %cst_41 {dimension_numbers = #tpu.dot_dimension_numbers<[1], [1], [0], [0], [0, 0, 1, 0], [], []>} : vector<8x8xbf16>, vector<8x8xbf16>, vector<8x8xf32> -> vector<8x8xf32>
    %82 = arith.addf %81, %22 : vector<8x8xf32>
    %cst_42 = arith.constant dense<0xFF800000> : vector<8xf32>
    %83 = vector.multi_reduction <maximumf>, %82, %cst_42 [1] : vector<8x8xf32> to vector<8xf32>
    %84 = vector.shape_cast %83 : vector<8xf32> to vector<8x1xf32>
    %85 = vector.broadcast %84 : vector<8x1xf32> to vector<8x8xf32>
    %86 = arith.subf %82, %85 : vector<8x8xf32>
    %87 = math.exp %86 : vector<8x8xf32>
    %cst_43 = arith.constant dense<0.000000e+00> : vector<8xf32>
    %88 = vector.multi_reduction <add>, %87, %cst_43 [1] : vector<8x8xf32> to vector<8xf32>
    %89 = vector.shape_cast %88 : vector<8xf32> to vector<8x1xf32>
    %90 = arith.truncf %87 : vector<8x8xf32> to vector<8x8xbf16>
    %91 = vector.extract_strided_slice %27 {offsets = [0, 24], sizes = [8, 8], strides = [1, 1]} : vector<8x32xbf16> to vector<8x8xbf16>
    %cst_44 = arith.constant dense<0.000000e+00> : vector<8x8xf32>
    %92 = tpu.matmul %90, %91, %cst_44 {dimension_numbers = #tpu.dot_dimension_numbers<[1], [0], [0], [1], [0, 0, 1, 1], [], []>} : vector<8x8xbf16>, vector<8x8xbf16>, vector<8x8xf32> -> vector<8x8xf32>
    %93 = tpu.reciprocal %89 {approx = true} : vector<8x1xf32> -> vector<8x1xf32>
    %94 = vector.broadcast %93 : vector<8x1xf32> to vector<8x8xf32>
    %95 = arith.mulf %92, %94 : vector<8x8xf32>
    %96 = tpu.concatenate %44, %61, %78, %95 in 1 : vector<8x8xf32>, vector<8x8xf32>, vector<8x8xf32>, vector<8x8xf32> -> vector<8x32xf32>
    %97 = arith.truncf %96 : vector<8x32xf32> to vector<8x32xbf16>
    %cst_45 = arith.constant dense<0.000000e+00> : vector<8x32xf32>
    %98 = tpu.matmul %97, %2, %cst_45 {dimension_numbers = #tpu.dot_dimension_numbers<[1], [0], [0], [1], [0, 0, 1, 1], [], []>} : vector<8x32xbf16>, vector<32x32xbf16>, vector<8x32xf32> -> vector<8x32xf32>
    %99 = vector.broadcast %3 : vector<1x32xf32> to vector<8x32xf32>
    %100 = arith.addf %98, %99 : vector<8x32xf32>
    %101 = arith.addf %100, %11 : vector<8x32xf32>
    %cst_46 = arith.constant dense<0.000000e+00> : vector<8xf32>
    %102 = vector.multi_reduction <add>, %101, %cst_46 [1] : vector<8x32xf32> to vector<8xf32>
    %103 = vector.shape_cast %102 : vector<8xf32> to vector<8x1xf32>
    %cst_47 = arith.constant 3.200000e+01 : f32
    %104 = vector.broadcast %cst_47 : f32 to vector<8x1xf32>
    %105 = arith.divf %103, %104 : vector<8x1xf32>
    %106 = vector.broadcast %105 : vector<8x1xf32> to vector<8x32xf32>
    %107 = arith.subf %101, %106 : vector<8x32xf32>
    %108 = arith.mulf %107, %107 : vector<8x32xf32>
    %cst_48 = arith.constant dense<0.000000e+00> : vector<8xf32>
    %109 = vector.multi_reduction <add>, %108, %cst_48 [1] : vector<8x32xf32> to vector<8xf32>
    %110 = vector.shape_cast %109 : vector<8xf32> to vector<8x1xf32>
    %cst_49 = arith.constant 3.200000e+01 : f32
    %111 = vector.broadcast %cst_49 : f32 to vector<8x1xf32>
    %112 = arith.divf %110, %111 : vector<8x1xf32>
    %113 = vector.broadcast %105 : vector<8x1xf32> to vector<8x32xf32>
    %114 = arith.subf %101, %113 : vector<8x32xf32>
    %cst_50 = arith.constant 9.99999996E-13 : f32
    %115 = vector.broadcast %cst_50 : f32 to vector<8x1xf32>
    %116 = arith.addf %112, %115 : vector<8x1xf32>
    %117 = math.rsqrt %116 : vector<8x1xf32>
    %118 = vector.broadcast %117 : vector<8x1xf32> to vector<8x32xf32>
    %119 = arith.mulf %114, %118 : vector<8x32xf32>
    %120 = vector.broadcast %4 : vector<1x32xf32> to vector<8x32xf32>
    %121 = arith.mulf %119, %120 : vector<8x32xf32>
    %122 = vector.broadcast %5 : vector<1x32xf32> to vector<8x32xf32>
    %123 = arith.addf %121, %122 : vector<8x32xf32>
    %124 = arith.truncf %123 : vector<8x32xf32> to vector<8x32xbf16>
    %125 = vector.extract_strided_slice %0 {offsets = [0, 0], sizes = [32, 32], strides = [1, 1]} : vector<32x96xbf16> to vector<32x32xbf16>
    %cst_51 = arith.constant dense<0.000000e+00> : vector<8x32xf32>
    %126 = tpu.matmul %124, %125, %cst_51 {dimension_numbers = #tpu.dot_dimension_numbers<[1], [0], [0], [1], [0, 0, 1, 1], [], []>} : vector<8x32xbf16>, vector<32x32xbf16>, vector<8x32xf32> -> vector<8x32xf32>
    %127 = vector.extract_strided_slice %1 {offsets = [0, 0], sizes = [1, 32], strides = [1, 1]} : vector<1x96xf32> to vector<1x32xf32>
    %128 = vector.broadcast %127 : vector<1x32xf32> to vector<8x32xf32>
    %129 = arith.addf %126, %128 : vector<8x32xf32>
    %130 = arith.truncf %13 : vector<8x32xf32> to vector<8x32xbf16>
    %131 = vector.extract_strided_slice %0 {offsets = [0, 32], sizes = [32, 64], strides = [1, 1]} : vector<32x96xbf16> to vector<32x64xbf16>
    %cst_52 = arith.constant dense<0.000000e+00> : vector<8x64xf32>
    %132 = tpu.matmul %130, %131, %cst_52 {dimension_numbers = #tpu.dot_dimension_numbers<[1], [0], [0], [1], [0, 0, 1, 1], [], []>} : vector<8x32xbf16>, vector<32x64xbf16>, vector<8x64xf32> -> vector<8x64xf32>
    %133 = vector.extract_strided_slice %1 {offsets = [0, 32], sizes = [1, 64], strides = [1, 1]} : vector<1x96xf32> to vector<1x64xf32>
    %134 = vector.broadcast %133 : vector<1x64xf32> to vector<8x64xf32>
    %135 = arith.addf %132, %134 : vector<8x64xf32>
    %136 = vector.extract_strided_slice %135 {offsets = [0, 0], sizes = [8, 32], strides = [1, 1]} : vector<8x64xf32> to vector<8x32xf32>
    %137 = vector.extract_strided_slice %135 {offsets = [0, 32], sizes = [8, 32], strides = [1, 1]} : vector<8x64xf32> to vector<8x32xf32>
    %c0_53 = arith.constant 0 : index
    %c0_54 = arith.constant 0 : index
    %c0_55 = arith.constant 0 : index
    %138 = vector.load %arg4[%c0_53, %c0_54, %c0_55] : memref<1x8x8xf32, #tpu.memory_space<vmem>>, vector<1x8x8xf32>
    %139 = vector.shape_cast %138 : vector<1x8x8xf32> to vector<8x8xf32>
    %cst_56 = arith.constant 0.353553385 : f32
    %140 = vector.broadcast %cst_56 : f32 to vector<8x32xf32>
    %141 = arith.mulf %129, %140 : vector<8x32xf32>
    %142 = arith.truncf %141 : vector<8x32xf32> to vector<8x32xbf16>
    %143 = arith.truncf %136 : vector<8x32xf32> to vector<8x32xbf16>
    %144 = arith.truncf %137 : vector<8x32xf32> to vector<8x32xbf16>
    %145 = vector.extract_strided_slice %142 {offsets = [0, 0], sizes = [8, 8], strides = [1, 1]} : vector<8x32xbf16> to vector<8x8xbf16>
    %146 = vector.extract_strided_slice %143 {offsets = [0, 0], sizes = [8, 8], strides = [1, 1]} : vector<8x32xbf16> to vector<8x8xbf16>
    %cst_57 = arith.constant dense<0.000000e+00> : vector<8x8xf32>
    %147 = tpu.matmul %145, %146, %cst_57 {dimension_numbers = #tpu.dot_dimension_numbers<[1], [1], [0], [0], [0, 0, 1, 0], [], []>} : vector<8x8xbf16>, vector<8x8xbf16>, vector<8x8xf32> -> vector<8x8xf32>
    %148 = arith.addf %147, %139 : vector<8x8xf32>
    %cst_58 = arith.constant dense<0xFF800000> : vector<8xf32>
    %149 = vector.multi_reduction <maximumf>, %148, %cst_58 [1] : vector<8x8xf32> to vector<8xf32>
    %150 = vector.shape_cast %149 : vector<8xf32> to vector<8x1xf32>
    %151 = vector.broadcast %150 : vector<8x1xf32> to vector<8x8xf32>
    %152 = arith.subf %148, %151 : vector<8x8xf32>
    %153 = math.exp %152 : vector<8x8xf32>
    %cst_59 = arith.constant dense<0.000000e+00> : vector<8xf32>
    %154 = vector.multi_reduction <add>, %153, %cst_59 [1] : vector<8x8xf32> to vector<8xf32>
    %155 = vector.shape_cast %154 : vector<8xf32> to vector<8x1xf32>
    %156 = arith.truncf %153 : vector<8x8xf32> to vector<8x8xbf16>
    %157 = vector.extract_strided_slice %144 {offsets = [0, 0], sizes = [8, 8], strides = [1, 1]} : vector<8x32xbf16> to vector<8x8xbf16>
    %cst_60 = arith.constant dense<0.000000e+00> : vector<8x8xf32>
    %158 = tpu.matmul %156, %157, %cst_60 {dimension_numbers = #tpu.dot_dimension_numbers<[1], [0], [0], [1], [0, 0, 1, 1], [], []>} : vector<8x8xbf16>, vector<8x8xbf16>, vector<8x8xf32> -> vector<8x8xf32>
    %159 = tpu.reciprocal %155 {approx = true} : vector<8x1xf32> -> vector<8x1xf32>
    %160 = vector.broadcast %159 : vector<8x1xf32> to vector<8x8xf32>
    %161 = arith.mulf %158, %160 : vector<8x8xf32>
    %162 = vector.extract_strided_slice %142 {offsets = [0, 8], sizes = [8, 8], strides = [1, 1]} : vector<8x32xbf16> to vector<8x8xbf16>
    %163 = vector.extract_strided_slice %143 {offsets = [0, 8], sizes = [8, 8], strides = [1, 1]} : vector<8x32xbf16> to vector<8x8xbf16>
    %cst_61 = arith.constant dense<0.000000e+00> : vector<8x8xf32>
    %164 = tpu.matmul %162, %163, %cst_61 {dimension_numbers = #tpu.dot_dimension_numbers<[1], [1], [0], [0], [0, 0, 1, 0], [], []>} : vector<8x8xbf16>, vector<8x8xbf16>, vector<8x8xf32> -> vector<8x8xf32>
    %165 = arith.addf %164, %139 : vector<8x8xf32>
    %cst_62 = arith.constant dense<0xFF800000> : vector<8xf32>
    %166 = vector.multi_reduction <maximumf>, %165, %cst_62 [1] : vector<8x8xf32> to vector<8xf32>
    %167 = vector.shape_cast %166 : vector<8xf32> to vector<8x1xf32>
    %168 = vector.broadcast %167 : vector<8x1xf32> to vector<8x8xf32>
    %169 = arith.subf %165, %168 : vector<8x8xf32>
    %170 = math.exp %169 : vector<8x8xf32>
    %cst_63 = arith.constant dense<0.000000e+00> : vector<8xf32>
    %171 = vector.multi_reduction <add>, %170, %cst_63 [1] : vector<8x8xf32> to vector<8xf32>
    %172 = vector.shape_cast %171 : vector<8xf32> to vector<8x1xf32>
    %173 = arith.truncf %170 : vector<8x8xf32> to vector<8x8xbf16>
    %174 = vector.extract_strided_slice %144 {offsets = [0, 8], sizes = [8, 8], strides = [1, 1]} : vector<8x32xbf16> to vector<8x8xbf16>
    %cst_64 = arith.constant dense<0.000000e+00> : vector<8x8xf32>
    %175 = tpu.matmul %173, %174, %cst_64 {dimension_numbers = #tpu.dot_dimension_numbers<[1], [0], [0], [1], [0, 0, 1, 1], [], []>} : vector<8x8xbf16>, vector<8x8xbf16>, vector<8x8xf32> -> vector<8x8xf32>
    %176 = tpu.reciprocal %172 {approx = true} : vector<8x1xf32> -> vector<8x1xf32>
    %177 = vector.broadcast %176 : vector<8x1xf32> to vector<8x8xf32>
    %178 = arith.mulf %175, %177 : vector<8x8xf32>
    %179 = vector.extract_strided_slice %142 {offsets = [0, 16], sizes = [8, 8], strides = [1, 1]} : vector<8x32xbf16> to vector<8x8xbf16>
    %180 = vector.extract_strided_slice %143 {offsets = [0, 16], sizes = [8, 8], strides = [1, 1]} : vector<8x32xbf16> to vector<8x8xbf16>
    %cst_65 = arith.constant dense<0.000000e+00> : vector<8x8xf32>
    %181 = tpu.matmul %179, %180, %cst_65 {dimension_numbers = #tpu.dot_dimension_numbers<[1], [1], [0], [0], [0, 0, 1, 0], [], []>} : vector<8x8xbf16>, vector<8x8xbf16>, vector<8x8xf32> -> vector<8x8xf32>
    %182 = arith.addf %181, %139 : vector<8x8xf32>
    %cst_66 = arith.constant dense<0xFF800000> : vector<8xf32>
    %183 = vector.multi_reduction <maximumf>, %182, %cst_66 [1] : vector<8x8xf32> to vector<8xf32>
    %184 = vector.shape_cast %183 : vector<8xf32> to vector<8x1xf32>
    %185 = vector.broadcast %184 : vector<8x1xf32> to vector<8x8xf32>
    %186 = arith.subf %182, %185 : vector<8x8xf32>
    %187 = math.exp %186 : vector<8x8xf32>
    %cst_67 = arith.constant dense<0.000000e+00> : vector<8xf32>
    %188 = vector.multi_reduction <add>, %187, %cst_67 [1] : vector<8x8xf32> to vector<8xf32>
    %189 = vector.shape_cast %188 : vector<8xf32> to vector<8x1xf32>
    %190 = arith.truncf %187 : vector<8x8xf32> to vector<8x8xbf16>
    %191 = vector.extract_strided_slice %144 {offsets = [0, 16], sizes = [8, 8], strides = [1, 1]} : vector<8x32xbf16> to vector<8x8xbf16>
    %cst_68 = arith.constant dense<0.000000e+00> : vector<8x8xf32>
    %192 = tpu.matmul %190, %191, %cst_68 {dimension_numbers = #tpu.dot_dimension_numbers<[1], [0], [0], [1], [0, 0, 1, 1], [], []>} : vector<8x8xbf16>, vector<8x8xbf16>, vector<8x8xf32> -> vector<8x8xf32>
    %193 = tpu.reciprocal %189 {approx = true} : vector<8x1xf32> -> vector<8x1xf32>
    %194 = vector.broadcast %193 : vector<8x1xf32> to vector<8x8xf32>
    %195 = arith.mulf %192, %194 : vector<8x8xf32>
    %196 = vector.extract_strided_slice %142 {offsets = [0, 24], sizes = [8, 8], strides = [1, 1]} : vector<8x32xbf16> to vector<8x8xbf16>
    %197 = vector.extract_strided_slice %143 {offsets = [0, 24], sizes = [8, 8], strides = [1, 1]} : vector<8x32xbf16> to vector<8x8xbf16>
    %cst_69 = arith.constant dense<0.000000e+00> : vector<8x8xf32>
    %198 = tpu.matmul %196, %197, %cst_69 {dimension_numbers = #tpu.dot_dimension_numbers<[1], [1], [0], [0], [0, 0, 1, 0], [], []>} : vector<8x8xbf16>, vector<8x8xbf16>, vector<8x8xf32> -> vector<8x8xf32>
    %199 = arith.addf %198, %139 : vector<8x8xf32>
    %cst_70 = arith.constant dense<0xFF800000> : vector<8xf32>
    %200 = vector.multi_reduction <maximumf>, %199, %cst_70 [1] : vector<8x8xf32> to vector<8xf32>
    %201 = vector.shape_cast %200 : vector<8xf32> to vector<8x1xf32>
    %202 = vector.broadcast %201 : vector<8x1xf32> to vector<8x8xf32>
    %203 = arith.subf %199, %202 : vector<8x8xf32>
    %204 = math.exp %203 : vector<8x8xf32>
    %cst_71 = arith.constant dense<0.000000e+00> : vector<8xf32>
    %205 = vector.multi_reduction <add>, %204, %cst_71 [1] : vector<8x8xf32> to vector<8xf32>
    %206 = vector.shape_cast %205 : vector<8xf32> to vector<8x1xf32>
    %207 = arith.truncf %204 : vector<8x8xf32> to vector<8x8xbf16>
    %208 = vector.extract_strided_slice %144 {offsets = [0, 24], sizes = [8, 8], strides = [1, 1]} : vector<8x32xbf16> to vector<8x8xbf16>
    %cst_72 = arith.constant dense<0.000000e+00> : vector<8x8xf32>
    %209 = tpu.matmul %207, %208, %cst_72 {dimension_numbers = #tpu.dot_dimension_numbers<[1], [0], [0], [1], [0, 0, 1, 1], [], []>} : vector<8x8xbf16>, vector<8x8xbf16>, vector<8x8xf32> -> vector<8x8xf32>
    %210 = tpu.reciprocal %206 {approx = true} : vector<8x1xf32> -> vector<8x1xf32>
    %211 = vector.broadcast %210 : vector<8x1xf32> to vector<8x8xf32>
    %212 = arith.mulf %209, %211 : vector<8x8xf32>
    %213 = tpu.concatenate %161, %178, %195, %212 in 1 : vector<8x8xf32>, vector<8x8xf32>, vector<8x8xf32>, vector<8x8xf32> -> vector<8x32xf32>
    %214 = arith.truncf %213 : vector<8x32xf32> to vector<8x32xbf16>
    %cst_73 = arith.constant dense<0.000000e+00> : vector<8x32xf32>
    %215 = tpu.matmul %214, %2, %cst_73 {dimension_numbers = #tpu.dot_dimension_numbers<[1], [0], [0], [1], [0, 0, 1, 1], [], []>} : vector<8x32xbf16>, vector<32x32xbf16>, vector<8x32xf32> -> vector<8x32xf32>
    %216 = vector.broadcast %3 : vector<1x32xf32> to vector<8x32xf32>
    %217 = arith.addf %215, %216 : vector<8x32xf32>
    %218 = arith.addf %217, %123 : vector<8x32xf32>
    %cst_74 = arith.constant dense<0.000000e+00> : vector<8xf32>
    %219 = vector.multi_reduction <add>, %218, %cst_74 [1] : vector<8x32xf32> to vector<8xf32>
    %220 = vector.shape_cast %219 : vector<8xf32> to vector<8x1xf32>
    %cst_75 = arith.constant 3.200000e+01 : f32
    %221 = vector.broadcast %cst_75 : f32 to vector<8x1xf32>
    %222 = arith.divf %220, %221 : vector<8x1xf32>
    %223 = vector.broadcast %222 : vector<8x1xf32> to vector<8x32xf32>
    %224 = arith.subf %218, %223 : vector<8x32xf32>
    %225 = arith.mulf %224, %224 : vector<8x32xf32>
    %cst_76 = arith.constant dense<0.000000e+00> : vector<8xf32>
    %226 = vector.multi_reduction <add>, %225, %cst_76 [1] : vector<8x32xf32> to vector<8xf32>
    %227 = vector.shape_cast %226 : vector<8xf32> to vector<8x1xf32>
    %cst_77 = arith.constant 3.200000e+01 : f32
    %228 = vector.broadcast %cst_77 : f32 to vector<8x1xf32>
    %229 = arith.divf %227, %228 : vector<8x1xf32>
    %230 = vector.broadcast %222 : vector<8x1xf32> to vector<8x32xf32>
    %231 = arith.subf %218, %230 : vector<8x32xf32>
    %cst_78 = arith.constant 9.99999996E-13 : f32
    %232 = vector.broadcast %cst_78 : f32 to vector<8x1xf32>
    %233 = arith.addf %229, %232 : vector<8x1xf32>
    %234 = math.rsqrt %233 : vector<8x1xf32>
    %235 = vector.broadcast %234 : vector<8x1xf32> to vector<8x32xf32>
    %236 = arith.mulf %231, %235 : vector<8x32xf32>
    %237 = vector.broadcast %4 : vector<1x32xf32> to vector<8x32xf32>
    %238 = arith.mulf %236, %237 : vector<8x32xf32>
    %239 = vector.broadcast %5 : vector<1x32xf32> to vector<8x32xf32>
    %240 = arith.addf %238, %239 : vector<8x32xf32>
    %241 = arith.truncf %240 : vector<8x32xf32> to vector<8x32xbf16>
    %cst_79 = arith.constant dense<0.000000e+00> : vector<8x64xf32>
    %242 = tpu.matmul %241, %6, %cst_79 {dimension_numbers = #tpu.dot_dimension_numbers<[1], [0], [0], [1], [0, 0, 1, 1], [], []>} : vector<8x32xbf16>, vector<32x64xbf16>, vector<8x64xf32> -> vector<8x64xf32>
    %243 = vector.broadcast %7 : vector<1x64xf32> to vector<8x64xf32>
    %244 = arith.addf %242, %243 : vector<8x64xf32>
    %cst_80 = arith.constant 0.000000e+00 : f32
    %245 = vector.broadcast %cst_80 : f32 to vector<8x64xf32>
    %246 = arith.maximumf %244, %245 : vector<8x64xf32>
    %247 = arith.truncf %246 : vector<8x64xf32> to vector<8x64xbf16>
    %cst_81 = arith.constant dense<0.000000e+00> : vector<8x32xf32>
    %248 = tpu.matmul %247, %8, %cst_81 {dimension_numbers = #tpu.dot_dimension_numbers<[1], [0], [0], [1], [0, 0, 1, 1], [], []>} : vector<8x64xbf16>, vector<64x32xbf16>, vector<8x32xf32> -> vector<8x32xf32>
    %249 = vector.broadcast %9 : vector<1x32xf32> to vector<8x32xf32>
    %250 = arith.addf %248, %249 : vector<8x32xf32>
    %251 = arith.addf %250, %240 : vector<8x32xf32>
    %cst_82 = arith.constant dense<0.000000e+00> : vector<8xf32>
    %252 = vector.multi_reduction <add>, %251, %cst_82 [1] : vector<8x32xf32> to vector<8xf32>
    %253 = vector.shape_cast %252 : vector<8xf32> to vector<8x1xf32>
    %cst_83 = arith.constant 3.200000e+01 : f32
    %254 = vector.broadcast %cst_83 : f32 to vector<8x1xf32>
    %255 = arith.divf %253, %254 : vector<8x1xf32>
    %256 = vector.broadcast %255 : vector<8x1xf32> to vector<8x32xf32>
    %257 = arith.subf %251, %256 : vector<8x32xf32>
    %258 = arith.mulf %257, %257 : vector<8x32xf32>
    %cst_84 = arith.constant dense<0.000000e+00> : vector<8xf32>
    %259 = vector.multi_reduction <add>, %258, %cst_84 [1] : vector<8x32xf32> to vector<8xf32>
    %260 = vector.shape_cast %259 : vector<8xf32> to vector<8x1xf32>
    %cst_85 = arith.constant 3.200000e+01 : f32
    %261 = vector.broadcast %cst_85 : f32 to vector<8x1xf32>
    %262 = arith.divf %260, %261 : vector<8x1xf32>
    %263 = vector.broadcast %255 : vector<8x1xf32> to vector<8x32xf32>
    %264 = arith.subf %251, %263 : vector<8x32xf32>
    %cst_86 = arith.constant 9.99999996E-13 : f32
    %265 = vector.broadcast %cst_86 : f32 to vector<8x1xf32>
    %266 = arith.addf %262, %265 : vector<8x1xf32>
    %267 = math.rsqrt %266 : vector<8x1xf32>
    %268 = vector.broadcast %267 : vector<8x1xf32> to vector<8x32xf32>
    %269 = arith.mulf %264, %268 : vector<8x32xf32>
    %270 = vector.broadcast %4 : vector<1x32xf32> to vector<8x32xf32>
    %271 = arith.mulf %269, %270 : vector<8x32xf32>
    %272 = vector.broadcast %5 : vector<1x32xf32> to vector<8x32xf32>
    %273 = arith.addf %271, %272 : vector<8x32xf32>
    %c0_87 = arith.constant 0 : index
    %c0_88 = arith.constant 0 : index
    %c0_89 = arith.constant 0 : index
    %274 = vector.load %arg15[%c0_87, %c0_88, %c0_89] : memref<1x8x32xf32, #tpu.memory_space<vmem>>, vector<1x8x32xf32>
    %275 = vector.shape_cast %274 : vector<1x8x32xf32> to vector<8x32xf32>
    %276 = vector.shape_cast %273 : vector<8x32xf32> to vector<1x8x32xf32>
    tpu.vector_store %arg15[%c0_87, %c0_88, %c0_89], %276 {strides = array<i32>} : memref<1x8x32xf32, #tpu.memory_space<vmem>>, vector<1x8x32xf32>,
    return
  }
  func.func @transform_0(%arg0: i32) -> (i32, i32, i32) {
    %c0_i32 = arith.constant 0 : i32
    %c0_i32_0 = arith.constant 0 : i32
    %c0_i32_1 = arith.constant 0 : i32
    return %arg0, %c0_i32, %c0_i32_0 : i32, i32, i32
  }
  func.func @transform_1(%arg0: i32) -> (i32, i32, i32) {
    %c0_i32 = arith.constant 0 : i32
    %c0_i32_0 = arith.constant 0 : i32
    %c0_i32_1 = arith.constant 0 : i32
    return %arg0, %c0_i32, %c0_i32_0 : i32, i32, i32
  }
  func.func @transform_2(%arg0: i32) -> (i32, i32, i32) {
    %c0_i32 = arith.constant 0 : i32
    %c0_i32_0 = arith.constant 0 : i32
    %c0_i32_1 = arith.constant 0 : i32
    return %arg0, %c0_i32, %c0_i32_0 : i32, i32, i32
  }
  func.func @transform_3(%arg0: i32) -> (i32, i32, i32) {
    %c0_i32 = arith.constant 0 : i32
    %c0_i32_0 = arith.constant 0 : i32
    %c0_i32_1 = arith.constant 0 : i32
    return %arg0, %c0_i32, %c0_i32_0 : i32, i32, i32
  }
  func.func @transform_4(%arg0: i32) -> (i32, i32) {
    %c0_i32 = arith.constant 0 : i32
    %c0_i32_0 = arith.constant 0 : i32
    %c0_i32_1 = arith.constant 0 : i32
    return %c0_i32, %c0_i32_0 : i32, i32
  }
  func.func @transform_5(%arg0: i32) -> (i32, i32) {
    %c0_i32 = arith.constant 0 : i32
    %c0_i32_0 = arith.constant 0 : i32
    %c0_i32_1 = arith.constant 0 : i32
    return %c0_i32, %c0_i32_0 : i32, i32
  }
  func.func @transform_6(%arg0: i32) -> (i32, i32) {
    %c0_i32 = arith.constant 0 : i32
    %c0_i32_0 = arith.constant 0 : i32
    %c0_i32_1 = arith.constant 0 : i32
    return %c0_i32, %c0_i32_0 : i32, i32
  }
  func.func @transform_7(%arg0: i32) -> (i32, i32) {
    %c0_i32 = arith.constant 0 : i32
    %c0_i32_0 = arith.constant 0 : i32
    %c0_i32_1 = arith.constant 0 : i32
    return %c0_i32, %c0_i32_0 : i32, i32
  }
  func.func @transform_8(%arg0: i32) -> (i32, i32) {
    %c0_i32 = arith.constant 0 : i32
    %c0_i32_0 = arith.constant 0 : i32
    %c0_i32_1 = arith.constant 0 : i32
    return %c0_i32, %c0_i32_0 : i32, i32
  }
  func.func @transform_9(%arg0: i32) -> (i32, i32) {
    %c0_i32 = arith.constant 0 : i32
    %c0_i32_0 = arith.constant 0 : i32
    %c0_i32_1 = arith.constant 0 : i32
    return %c0_i32, %c0_i32_0 : i32, i32
  }
  func.func @transform_10(%arg0: i32) -> (i32, i32) {
    %c0_i32 = arith.constant 0 : i32
    %c0_i32_0 = arith.constant 0 : i32
    %c0_i32_1 = arith.constant 0 : i32
    return %c0_i32, %c0_i32_0 : i32, i32
  }
  func.func @transform_11(%arg0: i32) -> (i32, i32) {
    %c0_i32 = arith.constant 0 : i32
    %c0_i32_0 = arith.constant 0 : i32
    %c0_i32_1 = arith.constant 0 : i32
    return %c0_i32, %c0_i32_0 : i32, i32
  }
  func.func @transform_12(%arg0: i32) -> (i32, i32) {
    %c0_i32 = arith.constant 0 : i32
    %c0_i32_0 = arith.constant 0 : i32
    %c0_i32_1 = arith.constant 0 : i32
    return %c0_i32, %c0_i32_0 : i32, i32
  }
  func.func @transform_13(%arg0: i32) -> (i32, i32) {
    %c0_i32 = arith.constant 0 : i32
    %c0_i32_0 = arith.constant 0 : i32
    %c0_i32_1 = arith.constant 0 : i32
    return %c0_i32, %c0_i32_0 : i32, i32
  }
  func.func @transform_14(%arg0: i32) -> (i32, i32, i32) {
    %c0_i32 = arith.constant 0 : i32
    %c0_i32_0 = arith.constant 0 : i32
    %c0_i32_1 = arith.constant 0 : i32
    return %arg0, %c0_i32, %c0_i32_0 : i32, i32, i32
  }
}

module attributes {stable_mosaic.version = 11 : i64} {
  func.func @_decoder_layer_kernel(%arg0: i32, %arg1: memref<1x8x32xf32, #tpu.memory_space<vmem>>, %arg2: memref<1x8x32xf32, #tpu.memory_space<vmem>>, %arg3: memref<1x8x8xf32, #tpu.memory_space<vmem>>, %arg4: memref<1x8x8xf32, #tpu.memory_space<vmem>>, %arg5: memref<32x96xbf16, #tpu.memory_space<vmem>>, %arg6: memref<1x96xf32, #tpu.memory_space<vmem>>, %arg7: memref<32x32xbf16, #tpu.memory_space<vmem>>, %arg8: memref<1x32xf32, #tpu.memory_space<vmem>>, %arg9: memref<1x32xf32, #tpu.memory_space<vmem>>, %arg10: memref<1x32xf32, #tpu.memory_space<vmem>>, %arg11: memref<32x64xbf16, #tpu.memory_space<vmem>>, %arg12: memref<1x64xf32, #tpu.memory_space<vmem>>, %arg13: memref<64x32xbf16, #tpu.memory_space<vmem>>, %arg14: memref<1x32xf32, #tpu.memory_space<vmem>>, %arg15: memref<1x8x32xf32, #tpu.memory_space<vmem>>) attributes {dimension_semantics = [#tpu.dimension_semantics<parallel>], iteration_bounds = array<i64: 2>, scalar_prefetch = 0 : i64, scratch_operands = 0 : i64, tpu.core_type = #tpu.core_type<tc>, window_params = [{transform_indices = @transform_0, window_bounds = array<i64: 1, 8, 32>}, {transform_indices = @transform_1, window_bounds = array<i64: 1, 8, 32>}, {transform_indices = @transform_2, window_bounds = array<i64: 1, 8, 8>}, {transform_indices = @transform_3, window_bounds = array<i64: 1, 8, 8>}, {pipeline_mode = #tpu.pipeline_mode<synchronous>, transform_indices = @transform_4, window_bounds = array<i64: 32, 96>}, {pipeline_mode = #tpu.pipeline_mode<synchronous>, transform_indices = @transform_5, window_bounds = array<i64: 1, 96>}, {pipeline_mode = #tpu.pipeline_mode<synchronous>, transform_indices = @transform_6, window_bounds = array<i64: 32, 32>}, {pipeline_mode = #tpu.pipeline_mode<synchronous>, transform_indices = @transform_7, window_bounds = array<i64: 1, 32>}, {pipeline_mode = #tpu.pipeline_mode<synchronous>, transform_indices = @transform_8, window_bounds = array<i64: 1, 32>}, {pipeline_mode = #tpu.pipeline_mode<synchronous>, transform_indices = @transform_9, window_bounds = array<i64: 1, 32>}, {pipeline_mode = #tpu.pipeline_mode<synchronous>, transform_indices = @transform_10, window_bounds = array<i64: 32, 64>}, {pipeline_mode = #tpu.pipeline_mode<synchronous>, transform_indices = @transform_11, window_bounds = array<i64: 1, 64>}, {pipeline_mode = #tpu.pipeline_mode<synchronous>, transform_indices = @transform_12, window_bounds = array<i64: 64, 32>}, {pipeline_mode = #tpu.pipeline_mode<synchronous>, transform_indices = @transform_13, window_bounds = array<i64: 1, 32>}, {transform_indices = @transform_14, window_bounds = array<i64: 1, 8, 32>}]} {
    %c0 = arith.constant 0 : index
    %c0_0 = arith.constant 0 : index
    %0 = vector.load %arg5[%c0, %c0_0] : memref<32x96xbf16, #tpu.memory_space<vmem>>, vector<32x96xbf16>
    %c0_1 = arith.constant 0 : index
    %c0_2 = arith.constant 0 : index
    %1 = vector.load %arg6[%c0_1, %c0_2] : memref<1x96xf32, #tpu.memory_space<vmem>>, vector<1x96xf32>
    %c0_3 = arith.constant 0 : index
    %c0_4 = arith.constant 0 : index
    %2 = vector.load %arg7[%c0_3, %c0_4] : memref<32x32xbf16, #tpu.memory_space<vmem>>, vector<32x32xbf16>
    %c0_5 = arith.constant 0 : index
    %c0_6 = arith.constant 0 : index
    %3 = vector.load %arg8[%c0_5, %c0_6] : memref<1x32xf32, #tpu.memory_space<vmem>>, vector<1x32xf32>
    %c0_7 = arith.constant 0 : index
    %c0_8 = arith.constant 0 : index
    %4 = vector.load %arg9[%c0_7, %c0_8] : memref<1x32xf32, #tpu.memory_space<vmem>>, vector<1x32xf32>
    %c0_9 = arith.constant 0 : index
    %c0_10 = arith.constant 0 : index
    %5 = vector.load %arg10[%c0_9, %c0_10] : memref<1x32xf32, #tpu.memory_space<vmem>>, vector<1x32xf32>
    %c0_11 = arith.constant 0 : index
    %c0_12 = arith.constant 0 : index
    %6 = vector.load %arg11[%c0_11, %c0_12] : memref<32x64xbf16, #tpu.memory_space<vmem>>, vector<32x64xbf16>
    %c0_13 = arith.constant 0 : index
    %c0_14 = arith.constant 0 : index
    %7 = vector.load %arg12[%c0_13, %c0_14] : memref<1x64xf32, #tpu.memory_space<vmem>>, vector<1x64xf32>
    %c0_15 = arith.constant 0 : index
    %c0_16 = arith.constant 0 : index
    %8 = vector.load %arg13[%c0_15, %c0_16] : memref<64x32xbf16, #tpu.memory_space<vmem>>, vector<64x32xbf16>
    %c0_17 = arith.constant 0 : index
    %c0_18 = arith.constant 0 : index
    %9 = vector.load %arg14[%c0_17, %c0_18] : memref<1x32xf32, #tpu.memory_space<vmem>>, vector<1x32xf32>
    %c0_19 = arith.constant 0 : index
    %c0_20 = arith.constant 0 : index
    %c0_21 = arith.constant 0 : index
    %10 = vector.load %arg1[%c0_19, %c0_20, %c0_21] : memref<1x8x32xf32, #tpu.memory_space<vmem>>, vector<1x8x32xf32>
    %11 = vector.shape_cast %10 : vector<1x8x32xf32> to vector<8x32xf32>
    %c0_22 = arith.constant 0 : index
    %c0_23 = arith.constant 0 : index
    %c0_24 = arith.constant 0 : index
    %12 = vector.load %arg2[%c0_22, %c0_23, %c0_24] : memref<1x8x32xf32, #tpu.memory_space<vmem>>, vector<1x8x32xf32>
    %13 = vector.shape_cast %12 : vector<1x8x32xf32> to vector<8x32xf32>
    %14 = arith.truncf %11 : vector<8x32xf32> to vector<8x32xbf16>
    %cst = arith.constant dense<0.000000e+00> : vector<8x96xf32>
    %15 = tpu.matmul %14, %0, %cst {dimension_numbers = #tpu.dot_dimension_numbers<[1], [0], [0], [1], [0, 0, 1, 1], [], []>} : vector<8x32xbf16>, vector<32x96xbf16>, vector<8x96xf32> -> vector<8x96xf32>
    %16 = vector.broadcast %1 : vector<1x96xf32> to vector<8x96xf32>
    %17 = arith.addf %15, %16 : vector<8x96xf32>
    %18 = vector.extract_strided_slice %17 {offsets = [0, 0], sizes = [8, 32], strides = [1, 1]} : vector<8x96xf32> to vector<8x32xf32>
    %19 = vector.extract_strided_slice %17 {offsets = [0, 32], sizes = [8, 32], strides = [1, 1]} : vector<8x96xf32> to vector<8x32xf32>
    %20 = vector.extract_strided_slice %17 {offsets = [0, 64], sizes = [8, 32], strides = [1, 1]} : vector<8x96xf32> to vector<8x32xf32>
    %c0_25 = arith.constant 0 : index
    %c0_26 = arith.constant 0 : index
    %c0_27 = arith.constant 0 : index
    %21 = vector.load %arg3[%c0_25, %c0_26, %c0_27] : memref<1x8x8xf32, #tpu.memory_space<vmem>>, vector<1x8x8xf32>
    %22 = vector.shape_cast %21 : vector<1x8x8xf32> to vector<8x8xf32>
    %cst_28 = arith.constant 0.353553385 : f32
    %23 = vector.broadcast %cst_28 : f32 to vector<8x32xf32>
    %24 = arith.mulf %18, %23 : vector<8x32xf32>
    %25 = arith.truncf %24 : vector<8x32xf32> to vector<8x32xbf16>
    %26 = arith.truncf %19 : vector<8x32xf32> to vector<8x32xbf16>
    %27 = arith.truncf %20 : vector<8x32xf32> to vector<8x32xbf16>
    %28 = vector.extract_strided_slice %25 {offsets = [0, 0], sizes = [8, 8], strides = [1, 1]} : vector<8x32xbf16> to vector<8x8xbf16>
    %29 = vector.extract_strided_slice %26 {offsets = [0, 0], sizes = [8, 8], strides = [1, 1]} : vector<8x32xbf16> to vector<8x8xbf16>
    %cst_29 = arith.constant dense<0.000000e+00> : vector<8x8xf32>
    %30 = tpu.matmul %28, %29, %cst_29 {dimension_numbers = #tpu.dot_dimension_numbers<[1], [1], [0], [0], [0, 0, 1, 0], [], []>} : vector<8x8xbf16>, vector<8x8xbf16>, vector<8x8xf32> -> vector<8x8xf32>
    %31 = arith.addf %30, %22 : vector<8x8xf32>
    %cst_30 = arith.constant dense<0xFF800000> : vector<8xf32>
    %32 = vector.multi_reduction <maximumf>, %31, %cst_30 [1] : vector<8x8xf32> to vector<8xf32>
    %33 = vector.shape_cast %32 : vector<8xf32> to vector<8x1xf32>
    %34 = vector.broadcast %33 : vector<8x1xf32> to vector<8x8xf32>
    %35 = arith.subf %31, %34 : vector<8x8xf32>
    %36 = math.exp %35 : vector<8x8xf32>
    %cst_31 = arith.constant dense<0.000000e+00> : vector<8xf32>
    %37 = vector.multi_reduction <add>, %36, %cst_31 [1] : vector<8x8xf32> to vector<8xf32>
    %38 = vector.shape_cast %37 : vector<8xf32> to vector<8x1xf32>
    %39 = arith.truncf %36 : vector<8x8xf32> to vector<8x8xbf16>
    %40 = vector.extract_strided_slice %27 {offsets = [0, 0], sizes = [8, 8], strides = [1, 1]} : vector<8x32xbf16> to vector<8x8xbf16>
    %cst_32 = arith.constant dense<0.000000e+00> : vector<8x8xf32>
    %41 = tpu.matmul %39, %40, %cst_32 {dimension_numbers = #tpu.dot_dimension_numbers<[1], [0], [0], [1], [0, 0, 1, 1], [], []>} : vector<8x8xbf16>, vector<8x8xbf16>, vector<8x8xf32> -> vector<8x8xf32>
    %42 = tpu.reciprocal %38 {approx = true} : vector<8x1xf32> -> vector<8x1xf32>
    %43 = vector.broadcast %42 : vector<8x1xf32> to vector<8x8xf32>
    %44 = arith.mulf %41, %43 : vector<8x8xf32>
    %45 = vector.extract_strided_slice %25 {offsets = [0, 8], sizes = [8, 8], strides = [1, 1]} : vector<8x32xbf16> to vector<8x8xbf16>
    %46 = vector.extract_strided_slice %26 {offsets = [0, 8], sizes = [8, 8], strides = [1, 1]} : vector<8x32xbf16> to vector<8x8xbf16>
    %cst_33 = arith.constant dense<0.000000e+00> : vector<8x8xf32>
    %47 = tpu.matmul %45, %46, %cst_33 {dimension_numbers = #tpu.dot_dimension_numbers<[1], [1], [0], [0], [0, 0, 1, 0], [], []>} : vector<8x8xbf16>, vector<8x8xbf16>, vector<8x8xf32> -> vector<8x8xf32>
    %48 = arith.addf %47, %22 : vector<8x8xf32>
    %cst_34 = arith.constant dense<0xFF800000> : vector<8xf32>
    %49 = vector.multi_reduction <maximumf>, %48, %cst_34 [1] : vector<8x8xf32> to vector<8xf32>
    %50 = vector.shape_cast %49 : vector<8xf32> to vector<8x1xf32>
    %51 = vector.broadcast %50 : vector<8x1xf32> to vector<8x8xf32>
    %52 = arith.subf %48, %51 : vector<8x8xf32>
    %53 = math.exp %52 : vector<8x8xf32>
    %cst_35 = arith.constant dense<0.000000e+00> : vector<8xf32>
    %54 = vector.multi_reduction <add>, %53, %cst_35 [1] : vector<8x8xf32> to vector<8xf32>
    %55 = vector.shape_cast %54 : vector<8xf32> to vector<8x1xf32>
    %56 = arith.truncf %53 : vector<8x8xf32> to vector<8x8xbf16>
    %57 = vector.extract_strided_slice %27 {offsets = [0, 8], sizes = [8, 8], strides = [1, 1]} : vector<8x32xbf16> to vector<8x8xbf16>
    %cst_36 = arith.constant dense<0.000000e+00> : vector<8x8xf32>
    %58 = tpu.matmul %56, %57, %cst_36 {dimension_numbers = #tpu.dot_dimension_numbers<[1], [0], [0], [1], [0, 0, 1, 1], [], []>} : vector<8x8xbf16>, vector<8x8xbf16>, vector<8x8xf32> -> vector<8x8xf32>
    %59 = tpu.reciprocal %55 {approx = true} : vector<8x1xf32> -> vector<8x1xf32>
    %60 = vector.broadcast %59 : vector<8x1xf32> to vector<8x8xf32>
    %61 = arith.mulf %58, %60 : vector<8x8xf32>
    %62 = vector.extract_strided_slice %25 {offsets = [0, 16], sizes = [8, 8], strides = [1, 1]} : vector<8x32xbf16> to vector<8x8xbf16>
    %63 = vector.extract_strided_slice %26 {offsets = [0, 16], sizes = [8, 8], strides = [1, 1]} : vector<8x32xbf16> to vector<8x8xbf16>
    %cst_37 = arith.constant dense<0.000000e+00> : vector<8x8xf32>
    %64 = tpu.matmul %62, %63, %cst_37 {dimension_numbers = #tpu.dot_dimension_numbers<[1], [1], [0], [0], [0, 0, 1, 0], [], []>} : vector<8x8xbf16>, vector<8x8xbf16>, vector<8x8xf32> -> vector<8x8xf32>
    %65 = arith.addf %64, %22 : vector<8x8xf32>
    %cst_38 = arith.constant dense<0xFF800000> : vector<8xf32>
    %66 = vector.multi_reduction <maximumf>, %65, %cst_38 [1] : vector<8x8xf32> to vector<8xf32>
    %67 = vector.shape_cast %66 : vector<8xf32> to vector<8x1xf32>
    %68 = vector.broadcast %67 : vector<8x1xf32> to vector<8x8xf32>
    %69 = arith.subf %65, %68 : vector<8x8xf32>
    %70 = math.exp %69 : vector<8x8xf32>
    %cst_39 = arith.constant dense<0.000000e+00> : vector<8xf32>
    %71 = vector.multi_reduction <add>, %70, %cst_39 [1] : vector<8x8xf32> to vector<8xf32>
    %72 = vector.shape_cast %71 : vector<8xf32> to vector<8x1xf32>
    %73 = arith.truncf %70 : vector<8x8xf32> to vector<8x8xbf16>
    %74 = vector.extract_strided_slice %27 {offsets = [0, 16], sizes = [8, 8], strides = [1, 1]} : vector<8x32xbf16> to vector<8x8xbf16>
    %cst_40 = arith.constant dense<0.000000e+00> : vector<8x8xf32>
    %75 = tpu.matmul %73, %74, %cst_40 {dimension_numbers = #tpu.dot_dimension_numbers<[1], [0], [0], [1], [0, 0, 1, 1], [], []>} : vector<8x8xbf16>, vector<8x8xbf16>, vector<8x8xf32> -> vector<8x8xf32>
    %76 = tpu.reciprocal %72 {approx = true} : vector<8x1xf32> -> vector<8x1xf32>
    %77 = vector.broadcast %76 : vector<8x1xf32> to vector<8x8xf32>
    %78 = arith.mulf %75, %77 : vector<8x8xf32>
    %79 = vector.extract_strided_slice %25 {offsets = [0, 24], sizes = [8, 8], strides = [1, 1]} : vector<8x32xbf16> to vector<8x8xbf16>
    %80 = vector.extract_strided_slice %26 {offsets = [0, 24], sizes = [8, 8], strides = [1, 1]} : vector<8x32xbf16> to vector<8x8xbf16>
    %cst_41 = arith.constant dense<0.000000e+00> : vector<8x8xf32>
    %81 = tpu.matmul %79, %80, %cst_41 {dimension_numbers = #tpu.dot_dimension_numbers<[1], [1], [0], [0], [0, 0, 1, 0], [], []>} : vector<8x8xbf16>, vector<8x8xbf16>, vector<8x8xf32> -> vector<8x8xf32>
    %82 = arith.addf %81, %22 : vector<8x8xf32>
    %cst_42 = arith.constant dense<0xFF800000> : vector<8xf32>
    %83 = vector.multi_reduction <maximumf>, %82, %cst_42 [1] : vector<8x8xf32> to vector<8xf32>
    %84 = vector.shape_cast %83 : vector<8xf32> to vector<8x1xf32>
    %85 = vector.broadcast %84 : vector<8x1xf32> to vector<8x8xf32>
    %86 = arith.subf %82, %85 : vector<8x8xf32>
    %87 = math.exp %86 : vector<8x8xf32>
    %cst_43 = arith.constant dense<0.000000e+00> : vector<8xf32>
    %88 = vector.multi_reduction <add>, %87, %cst_43 [1] : vector<8x8xf32> to vector<8xf32>
    %89 = vector.shape_cast %88 : vector<8xf32> to vector<8x1xf32>
    %90 = arith.truncf %87 : vector<8x8xf32> to vector<8x8xbf16>
    %91 = vector.extract_strided_slice %27 {offsets = [0, 24], sizes = [8, 8], strides = [1, 1]} : vector<8x32xbf16> to vector<8x8xbf16>
    %cst_44 = arith.constant dense<0.000000e+00> : vector<8x8xf32>
    %92 = tpu.matmul %90, %91, %cst_44 {dimension_numbers = #tpu.dot_dimension_numbers<[1], [0], [0], [1], [0, 0, 1, 1], [], []>} : vector<8x8xbf16>, vector<8x8xbf16>, vector<8x8xf32> -> vector<8x8xf32>
    %93 = tpu.reciprocal %89 {approx = true} : vector<8x1xf32> -> vector<8x1xf32>
    %94 = vector.broadcast %93 : vector<8x1xf32> to vector<8x8xf32>
    %95 = arith.mulf %92, %94 : vector<8x8xf32>
    %96 = tpu.concatenate %44, %61, %78, %95 in 1 : vector<8x8xf32>, vector<8x8xf32>, vector<8x8xf32>, vector<8x8xf32> -> vector<8x32xf32>
    %97 = arith.truncf %96 : vector<8x32xf32> to vector<8x32xbf16>
    %cst_45 = arith.constant dense<0.000000e+00> : vector<8x32xf32>
    %98 = tpu.matmul %97, %2, %cst_45 {dimension_numbers = #tpu.dot_dimension_numbers<[1], [0], [0], [1], [0, 0, 1, 1], [], []>} : vector<8x32xbf16>, vector<32x32xbf16>, vector<8x32xf32> -> vector<8x32xf32>
    %99 = vector.broadcast %3 : vector<1x32xf32> to vector<8x32xf32>
    %100 = arith.addf %98, %99 : vector<8x32xf32>
    %101 = arith.addf %100, %11 : vector<8x32xf32>
    %cst_46 = arith.constant dense<0.000000e+00> : vector<8xf32>
    %102 = vector.multi_reduction <add>, %101, %cst_46 [1] : vector<8x32xf32> to vector<8xf32>
    %103 = vector.shape_cast %102 : vector<8xf32> to vector<8x1xf32>
    %cst_47 = arith.constant 3.200000e+01 : f32
    %104 = vector.broadcast %cst_47 : f32 to vector<8x1xf32>
    %105 = arith.divf %103, %104 : vector<8x1xf32>
    %106 = vector.broadcast %105 : vector<8x1xf32> to vector<8x32xf32>
    %107 = arith.subf %101, %106 : vector<8x32xf32>
    %108 = arith.mulf %107, %107 : vector<8x32xf32>
    %cst_48 = arith.constant dense<0.000000e+00> : vector<8xf32>
    %109 = vector.multi_reduction <add>, %108, %cst_48 [1] : vector<8x32xf32> to vector<8xf32>
    %110 = vector.shape_cast %109 : vector<8xf32> to vector<8x1xf32>
    %cst_49 = arith.constant 3.200000e+01 : f32
    %111 = vector.broadcast %cst_49 : f32 to vector<8x1xf32>
    %112 = arith.divf %110, %111 : vector<8x1xf32>
    %113 = vector.broadcast %105 : vector<8x1xf32> to vector<8x32xf32>
    %114 = arith.subf %101, %113 : vector<8x32xf32>
    %cst_50 = arith.constant 9.99999996E-13 : f32
    %115 = vector.broadcast %cst_50 : f32 to vector<8x1xf32>
    %116 = arith.addf %112, %115 : vector<8x1xf32>
    %117 = math.rsqrt %116 : vector<8x1xf32>
    %118 = vector.broadcast %117 : vector<8x1xf32> to vector<8x32xf32>
    %119 = arith.mulf %114, %118 : vector<8x32xf32>
    %120 = vector.broadcast %4 : vector<1x32xf32> to vector<8x32xf32>
    %121 = arith.mulf %119, %120 : vector<8x32xf32>
    %122 = vector.broadcast %5 : vector<1x32xf32> to vector<8x32xf32>
    %123 = arith.addf %121, %122 : vector<8x32xf32>
    %124 = arith.truncf %123 : vector<8x32xf32> to vector<8x32xbf16>
    %125 = vector.extract_strided_slice %0 {offsets = [0, 0], sizes = [32, 32], strides = [1, 1]} : vector<32x96xbf16> to vector<32x32xbf16>
    %cst_51 = arith.constant dense<0.000000e+00> : vector<8x32xf32>
    %126 = tpu.matmul %124, %125, %cst_51 {dimension_numbers = #tpu.dot_dimension_numbers<[1], [0], [0], [1], [0, 0, 1, 1], [], []>} : vector<8x32xbf16>, vector<32x32xbf16>, vector<8x32xf32> -> vector<8x32xf32>
    %127 = vector.extract_strided_slice %1 {offsets = [0, 0], sizes = [1, 32], strides = [1, 1]} : vector<1x96xf32> to vector<1x32xf32>
    %128 = vector.broadcast %127 : vector<1x32xf32> to vector<8x32xf32>
    %129 = arith.addf %126, %128 : vector<8x32xf32>
    %130 = arith.truncf %13 : vector<8x32xf32> to vector<8x32xbf16>
    %131 = vector.extract_strided_slice %0 {offsets = [0, 32], sizes = [32, 64], strides = [1, 1]} : vector<32x96xbf16> to vector<32x64xbf16>
    %cst_52 = arith.constant dense<0.000000e+00> : vector<8x64xf32>
    %132 = tpu.matmul %130, %131, %cst_52 {dimension_numbers = #tpu.dot_dimension_numbers<[1], [0], [0], [1], [0, 0, 1, 1], [], []>} : vector<8x32xbf16>, vector<32x64xbf16>, vector<8x64xf32> -> vector<8x64xf32>
    %133 = vector.extract_strided_slice %1 {offsets = [0, 32], sizes = [1, 64], strides = [1, 1]} : vector<1x96xf32> to vector<1x64xf32>
    %134 = vector.broadcast %133 : vector<1x64xf32> to vector<8x64xf32>
    %135 = arith.addf %132, %134 : vector<8x64xf32>
    %136 = vector.extract_strided_slice %135 {offsets = [0, 0], sizes = [8, 32], strides = [1, 1]} : vector<8x64xf32> to vector<8x32xf32>
    %137 = vector.extract_strided_slice %135 {offsets = [0, 32], sizes = [8, 32], strides = [1, 1]} : vector<8x64xf32> to vector<8x32xf32>
    %c0_53 = arith.constant 0 : index
    %c0_54 = arith.constant 0 : index
    %c0_55 = arith.constant 0 : index
    %138 = vector.load %arg4[%c0_53, %c0_54, %c0_55] : memref<1x8x8xf32, #tpu.memory_space<vmem>>, vector<1x8x8xf32>
    %139 = vector.shape_cast %138 : vector<1x8x8xf32> to vector<8x8xf32>
    %cst_56 = arith.constant 0.353553385 : f32
    %140 = vector.broadcast %cst_56 : f32 to vector<8x32xf32>
    %141 = arith.mulf %129, %140 : vector<8x32xf32>
    %142 = arith.truncf %141 : vector<8x32xf32> to vector<8x32xbf16>
    %143 = arith.truncf %136 : vector<8x32xf32> to vector<8x32xbf16>
    %144 = arith.truncf %137 : vector<8x32xf32> to vector<8x32xbf16>
    %145 = vector.extract_strided_slice %142 {offsets = [0, 0], sizes = [8, 8], strides = [1, 1]} : vector<8x32xbf16> to vector<8x8xbf16>
    %146 = vector.extract_strided_slice %143 {offsets = [0, 0], sizes = [8, 8], strides = [1, 1]} : vector<8x32xbf16> to vector<8x8xbf16>
    %cst_57 = arith.constant dense<0.000000e+00> : vector<8x8xf32>
    %147 = tpu.matmul %145, %146, %cst_57 {dimension_numbers = #tpu.dot_dimension_numbers<[1], [1], [0], [0], [0, 0, 1, 0], [], []>} : vector<8x8xbf16>, vector<8x8xbf16>, vector<8x8xf32> -> vector<8x8xf32>
    %148 = arith.addf %147, %139 : vector<8x8xf32>
    %cst_58 = arith.constant dense<0xFF800000> : vector<8xf32>
    %149 = vector.multi_reduction <maximumf>, %148, %cst_58 [1] : vector<8x8xf32> to vector<8xf32>
    %150 = vector.shape_cast %149 : vector<8xf32> to vector<8x1xf32>
    %151 = vector.broadcast %150 : vector<8x1xf32> to vector<8x8xf32>
    %152 = arith.subf %148, %151 : vector<8x8xf32>
    %153 = math.exp %152 : vector<8x8xf32>
    %cst_59 = arith.constant dense<0.000000e+00> : vector<8xf32>
    %154 = vector.multi_reduction <add>, %153, %cst_59 [1] : vector<8x8xf32> to vector<8xf32>
    %155 = vector.shape_cast %154 : vector<8xf32> to vector<8x1xf32>
    %156 = arith.truncf %153 : vector<8x8xf32> to vector<8x8xbf16>
    %157 = vector.extract_strided_slice %144 {offsets = [0, 0], sizes = [8, 8], strides = [1, 1]} : vector<8x32xbf16> to vector<8x8xbf16>
    %cst_60 = arith.constant dense<0.000000e+00> : vector<8x8xf32>
    %158 = tpu.matmul %156, %157, %cst_60 {dimension_numbers = #tpu.dot_dimension_numbers<[1], [0], [0], [1], [0, 0, 1, 1], [], []>} : vector<8x8xbf16>, vector<8x8xbf16>, vector<8x8xf32> -> vector<8x8xf32>
    %159 = tpu.reciprocal %155 {approx = true} : vector<8x1xf32> -> vector<8x1xf32>
    %160 = vector.broadcast %159 : vector<8x1xf32> to vector<8x8xf32>
    %161 = arith.mulf %158, %160 : vector<8x8xf32>
    %162 = vector.extract_strided_slice %142 {offsets = [0, 8], sizes = [8, 8], strides = [1, 1]} : vector<8x32xbf16> to vector<8x8xbf16>
    %163 = vector.extract_strided_slice %143 {offsets = [0, 8], sizes = [8, 8], strides = [1, 1]} : vector<8x32xbf16> to vector<8x8xbf16>
    %cst_61 = arith.constant dense<0.000000e+00> : vector<8x8xf32>
    %164 = tpu.matmul %162, %163, %cst_61 {dimension_numbers = #tpu.dot_dimension_numbers<[1], [1], [0], [0], [0, 0, 1, 0], [], []>} : vector<8x8xbf16>, vector<8x8xbf16>, vector<8x8xf32> -> vector<8x8xf32>
    %165 = arith.addf %164, %139 : vector<8x8xf32>
    %cst_62 = arith.constant dense<0xFF800000> : vector<8xf32>
    %166 = vector.multi_reduction <maximumf>, %165, %cst_62 [1] : vector<8x8xf32> to vector<8xf32>
    %167 = vector.shape_cast %166 : vector<8xf32> to vector<8x1xf32>
    %168 = vector.broadcast %167 : vector<8x1xf32> to vector<8x8xf32>
    %169 = arith.subf %165, %168 : vector<8x8xf32>
    %170 = math.exp %169 : vector<8x8xf32>
    %cst_63 = arith.constant dense<0.000000e+00> : vector<8xf32>
    %171 = vector.multi_reduction <add>, %170, %cst_63 [1] : vector<8x8xf32> to vector<8xf32>
    %172 = vector.shape_cast %171 : vector<8xf32> to vector<8x1xf32>
    %173 = arith.truncf %170 : vector<8x8xf32> to vector<8x8xbf16>
    %174 = vector.extract_strided_slice %144 {offsets = [0, 8], sizes = [8, 8], strides = [1, 1]} : vector<8x32xbf16> to vector<8x8xbf16>
    %cst_64 = arith.constant dense<0.000000e+00> : vector<8x8xf32>
    %175 = tpu.matmul %173, %174, %cst_64 {dimension_numbers = #tpu.dot_dimension_numbers<[1], [0], [0], [1], [0, 0, 1, 1], [], []>} : vector<8x8xbf16>, vector<8x8xbf16>, vector<8x8xf32> -> vector<8x8xf32>
    %176 = tpu.reciprocal %172 {approx = true} : vector<8x1xf32> -> vector<8x1xf32>
    %177 = vector.broadcast %176 : vector<8x1xf32> to vector<8x8xf32>
    %178 = arith.mulf %175, %177 : vector<8x8xf32>
    %179 = vector.extract_strided_slice %142 {offsets = [0, 16], sizes = [8, 8], strides = [1, 1]} : vector<8x32xbf16> to vector<8x8xbf16>
    %180 = vector.extract_strided_slice %143 {offsets = [0, 16], sizes = [8, 8], strides = [1, 1]} : vector<8x32xbf16> to vector<8x8xbf16>
    %cst_65 = arith.constant dense<0.000000e+00> : vector<8x8xf32>
    %181 = tpu.matmul %179, %180, %cst_65 {dimension_numbers = #tpu.dot_dimension_numbers<[1], [1], [0], [0], [0, 0, 1, 0], [], []>} : vector<8x8xbf16>, vector<8x8xbf16>, vector<8x8xf32> -> vector<8x8xf32>
    %182 = arith.addf %181, %139 : vector<8x8xf32>
    %cst_66 = arith.constant dense<0xFF800000> : vector<8xf32>
    %183 = vector.multi_reduction <maximumf>, %182, %cst_66 [1] : vector<8x8xf32> to vector<8xf32>
    %184 = vector.shape_cast %183 : vector<8xf32> to vector<8x1xf32>
    %185 = vector.broadcast %184 : vector<8x1xf32> to vector<8x8xf32>
    %186 = arith.subf %182, %185 : vector<8x8xf32>
    %187 = math.exp %186 : vector<8x8xf32>
    %cst_67 = arith.constant dense<0.000000e+00> : vector<8xf32>
    %188 = vector.multi_reduction <add>, %187, %cst_67 [1] : vector<8x8xf32> to vector<8xf32>
    %189 = vector.shape_cast %188 : vector<8xf32> to vector<8x1xf32>
    %190 = arith.truncf %187 : vector<8x8xf32> to vector<8x8xbf16>
    %191 = vector.extract_strided_slice %144 {offsets = [0, 16], sizes = [8, 8], strides = [1, 1]} : vector<8x32xbf16> to vector<8x8xbf16>
    %cst_68 = arith.constant dense<0.000000e+00> : vector<8x8xf32>
    %192 = tpu.matmul %190, %191, %cst_68 {dimension_numbers = #tpu.dot_dimension_numbers<[1], [0], [0], [1], [0, 0, 1, 1], [], []>} : vector<8x8xbf16>, vector<8x8xbf16>, vector<8x8xf32> -> vector<8x8xf32>
    %193 = tpu.reciprocal %189 {approx = true} : vector<8x1xf32> -> vector<8x1xf32>
    %194 = vector.broadcast %193 : vector<8x1xf32> to vector<8x8xf32>
    %195 = arith.mulf %192, %194 : vector<8x8xf32>
    %196 = vector.extract_strided_slice %142 {offsets = [0, 24], sizes = [8, 8], strides = [1, 1]} : vector<8x32xbf16> to vector<8x8xbf16>
    %197 = vector.extract_strided_slice %143 {offsets = [0, 24], sizes = [8, 8], strides = [1, 1]} : vector<8x32xbf16> to vector<8x8xbf16>
    %cst_69 = arith.constant dense<0.000000e+00> : vector<8x8xf32>
    %198 = tpu.matmul %196, %197, %cst_69 {dimension_numbers = #tpu.dot_dimension_numbers<[1], [1], [0], [0], [0, 0, 1, 0], [], []>} : vector<8x8xbf16>, vector<8x8xbf16>, vector<8x8xf32> -> vector<8x8xf32>
    %199 = arith.addf %198, %139 : vector<8x8xf32>
    %cst_70 = arith.constant dense<0xFF800000> : vector<8xf32>
    %200 = vector.multi_reduction <maximumf>, %199, %cst_70 [1] : vector<8x8xf32> to vector<8xf32>
    %201 = vector.shape_cast %200 : vector<8xf32> to vector<8x1xf32>
    %202 = vector.broadcast %201 : vector<8x1xf32> to vector<8x8xf32>
    %203 = arith.subf %199, %202 : vector<8x8xf32>
    %204 = math.exp %203 : vector<8x8xf32>
    %cst_71 = arith.constant dense<0.000000e+00> : vector<8xf32>
    %205 = vector.multi_reduction <add>, %204, %cst_71 [1] : vector<8x8xf32> to vector<8xf32>
    %206 = vector.shape_cast %205 : vector<8xf32> to vector<8x1xf32>
    %207 = arith.truncf %204 : vector<8x8xf32> to vector<8x8xbf16>
    %208 = vector.extract_strided_slice %144 {offsets = [0, 24], sizes = [8, 8], strides = [1, 1]} : vector<8x32xbf16> to vector<8x8xbf16>
    %cst_72 = arith.constant dense<0.000000e+00> : vector<8x8xf32>
    %209 = tpu.matmul %207, %208, %cst_72 {dimension_numbers = #tpu.dot_dimension_numbers<[1], [0], [0], [1], [0, 0, 1, 1], [], []>} : vector<8x8xbf16>, vector<8x8xbf16>, vector<8x8xf32> -> vector<8x8xf32>
    %210 = tpu.reciprocal %206 {approx = true} : vector<8x1xf32> -> vector<8x1xf32>
    %211 = vector.broadcast %210 : vector<8x1xf32> to vector<8x8xf32>
    %212 = arith.mulf %209, %211 : vector<8x8xf32>
    %213 = tpu.concatenate %161, %178, %195, %212 in 1 : vector<8x8xf32>, vector<8x8xf32>, vector<8x8xf32>, vector<8x8xf32> -> vector<8x32xf32>
    %214 = arith.truncf %213 : vector<8x32xf32> to vector<8x32xbf16>
    %cst_73 = arith.constant dense<0.000000e+00> : vector<8x32xf32>
    %215 = tpu.matmul %214, %2, %cst_73 {dimension_numbers = #tpu.dot_dimension_numbers<[1], [0], [0], [1], [0, 0, 1, 1], [], []>} : vector<8x32xbf16>, vector<32x32xbf16>, vector<8x32xf32> -> vector<8x32xf32>
    %216 = vector.broadcast %3 : vector<1x32xf32> to vector<8x32xf32>
    %217 = arith.addf %215, %216 : vector<8x32xf32>
    %218 = arith.addf %217, %123 : vector<8x32xf32>
    %cst_74 = arith.constant dense<0.000000e+00> : vector<8xf32>
    %219 = vector.multi_reduction <add>, %218, %cst_74 [1] : vector<8x32xf32> to vector<8xf32>
    %220 = vector.shape_cast %219 : vector<8xf32> to vector<8x1xf32>
    %cst_75 = arith.constant 3.200000e+01 : f32
    %221 = vector.broadcast %cst_75 : f32 to vector<8x1xf32>
    %222 = arith.divf %220, %221 : vector<8x1xf32>
    %223 = vector.broadcast %222 : vector<8x1xf32> to vector<8x32xf32>
    %224 = arith.subf %218, %223 : vector<8x32xf32>
    %225 = arith.mulf %224, %224 : vector<8x32xf32>
    %cst_76 = arith.constant dense<0.000000e+00> : vector<8xf32>
    %226 = vector.multi_reduction <add>, %225, %cst_76 [1] : vector<8x32xf32> to vector<8xf32>
    %227 = vector.shape_cast %226 : vector<8xf32> to vector<8x1xf32>
    %cst_77 = arith.constant 3.200000e+01 : f32
    %228 = vector.broadcast %cst_77 : f32 to vector<8x1xf32>
    %229 = arith.divf %227, %228 : vector<8x1xf32>
    %230 = vector.broadcast %222 : vector<8x1xf32> to vector<8x32xf32>
    %231 = arith.subf %218, %230 : vector<8x32xf32>
    %cst_78 = arith.constant 9.99999996E-13 : f32
    %232 = vector.broadcast %cst_78 : f32 to vector<8x1xf32>
    %233 = arith.addf %229, %232 : vector<8x1xf32>
    %234 = math.rsqrt %233 : vector<8x1xf32>
    %235 = vector.broadcast %234 : vector<8x1xf32> to vector<8x32xf32>
    %236 = arith.mulf %231, %235 : vector<8x32xf32>
    %237 = vector.broadcast %4 : vector<1x32xf32> to vector<8x32xf32>
    %238 = arith.mulf %236, %237 : vector<8x32xf32>
    %239 = vector.broadcast %5 : vector<1x32xf32> to vector<8x32xf32>
    %240 = arith.addf %238, %239 : vector<8x32xf32>
    %241 = arith.truncf %240 : vector<8x32xf32> to vector<8x32xbf16>
    %cst_79 = arith.constant dense<0.000000e+00> : vector<8x64xf32>
    %242 = tpu.matmul %241, %6, %cst_79 {dimension_numbers = #tpu.dot_dimension_numbers<[1], [0], [0], [1], [0, 0, 1, 1], [], []>} : vector<8x32xbf16>, vector<32x64xbf16>, vector<8x64xf32> -> vector<8x64xf32>
    %243 = vector.broadcast %7 : vector<1x64xf32> to vector<8x64xf32>
    %244 = arith.addf %242, %243 : vector<8x64xf32>
    %cst_80 = arith.constant 0.000000e+00 : f32
    %245 = vector.broadcast %cst_80 : f32 to vector<8x64xf32>
    %246 = arith.maximumf %244, %245 : vector<8x64xf32>
    %247 = arith.truncf %246 : vector<8x64xf32> to vector<8x64xbf16>
    %cst_81 = arith.constant dense<0.000000e+00> : vector<8x32xf32>
    %248 = tpu.matmul %247, %8, %cst_81 {dimension_numbers = #tpu.dot_dimension_numbers<[1], [0], [0], [1], [0, 0, 1, 1], [], []>} : vector<8x64xbf16>, vector<64x32xbf16>, vector<8x32xf32> -> vector<8x32xf32>
    %249 = vector.broadcast %9 : vector<1x32xf32> to vector<8x32xf32>
    %250 = arith.addf %248, %249 : vector<8x32xf32>
    %251 = arith.addf %250, %240 : vector<8x32xf32>
    %cst_82 = arith.constant dense<0.000000e+00> : vector<8xf32>
    %252 = vector.multi_reduction <add>, %251, %cst_82 [1] : vector<8x32xf32> to vector<8xf32>
    %253 = vector.shape_cast %252 : vector<8xf32> to vector<8x1xf32>
    %cst_83 = arith.constant 3.200000e+01 : f32
    %254 = vector.broadcast %cst_83 : f32 to vector<8x1xf32>
    %255 = arith.divf %253, %254 : vector<8x1xf32>
    %256 = vector.broadcast %255 : vector<8x1xf32> to vector<8x32xf32>
    %257 = arith.subf %251, %256 : vector<8x32xf32>
    %258 = arith.mulf %257, %257 : vector<8x32xf32>
    %cst_84 = arith.constant dense<0.000000e+00> : vector<8xf32>
    %259 = vector.multi_reduction <add>, %258, %cst_84 [1] : vector<8x32xf32> to vector<8xf32>
    %260 = vector.shape_cast %259 : vector<8xf32> to vector<8x1xf32>
    %cst_85 = arith.constant 3.200000e+01 : f32
    %261 = vector.broadcast %cst_85 : f32 to vector<8x1xf32>
    %262 = arith.divf %260, %261 : vector<8x1xf32>
    %263 = vector.broadcast %255 : vector<8x1xf32> to vector<8x32xf32>
    %264 = arith.subf %251, %263 : vector<8x32xf32>
    %cst_86 = arith.constant 9.99999996E-13 : f32
    %265 = vector.broadcast %cst_86 : f32 to vector<8x1xf32>
    %266 = arith.addf %262, %265 : vector<8x1xf32>
    %267 = math.rsqrt %266 : vector<8x1xf32>
    %268 = vector.broadcast %267 : vector<8x1xf32> to vector<8x32xf32>
    %269 = arith.mulf %264, %268 : vector<8x32xf32>
    %270 = vector.broadcast %4 : vector<1x32xf32> to vector<8x32xf32>
    %271 = arith.mulf %269, %270 : vector<8x32xf32>
    %272 = vector.broadcast %5 : vector<1x32xf32> to vector<8x32xf32>
    %273 = arith.addf %271, %272 : vector<8x32xf32>
    %c0_87 = arith.constant 0 : index
    %c0_88 = arith.constant 0 : index
    %c0_89 = arith.constant 0 : index
    %274 = vector.load %arg15[%c0_87, %c0_88, %c0_89] : memref<1x8x32xf32, #tpu.memory_space<vmem>>, vector<1x8x32xf32>
    %275 = vector.shape_cast %274 : vector<1x8x32xf32> to vector<8x32xf32>
    %276 = vector.shape_cast %273 : vector<8x32xf32> to vector<1x8x32xf32>
    tpu.vector_store %arg15[%c0_87, %c0_88, %c0_89], %276 {strides = array<i32>} : memref<1x8x32xf32, #tpu.memory_space<vmem>>, vector<1x8x32xf32>,
    return
  }
  func.func @transform_0(%arg0: i32) -> (i32, i32, i32) {
    %c0_i32 = arith.constant 0 : i32
    %c0_i32_0 = arith.constant 0 : i32
    %c0_i32_1 = arith.constant 0 : i32
    return %arg0, %c0_i32, %c0_i32_0 : i32, i32, i32
  }
  func.func @transform_1(%arg0: i32) -> (i32, i32, i32) {
    %c0_i32 = arith.constant 0 : i32
    %c0_i32_0 = arith.constant 0 : i32
    %c0_i32_1 = arith.constant 0 : i32
    return %arg0, %c0_i32, %c0_i32_0 : i32, i32, i32
  }
  func.func @transform_2(%arg0: i32) -> (i32, i32, i32) {
    %c0_i32 = arith.constant 0 : i32
    %c0_i32_0 = arith.constant 0 : i32
    %c0_i32_1 = arith.constant 0 : i32
    return %arg0, %c0_i32, %c0_i32_0 : i32, i32, i32
  }
  func.func @transform_3(%arg0: i32) -> (i32, i32, i32) {
    %c0_i32 = arith.constant 0 : i32
    %c0_i32_0 = arith.constant 0 : i32
    %c0_i32_1 = arith.constant 0 : i32
    return %arg0, %c0_i32, %c0_i32_0 : i32, i32, i32
  }
  func.func @transform_4(%arg0: i32) -> (i32, i32) {
    %c0_i32 = arith.constant 0 : i32
    %c0_i32_0 = arith.constant 0 : i32
    %c0_i32_1 = arith.constant 0 : i32
    return %c0_i32, %c0_i32_0 : i32, i32
  }
  func.func @transform_5(%arg0: i32) -> (i32, i32) {
    %c0_i32 = arith.constant 0 : i32
    %c0_i32_0 = arith.constant 0 : i32
    %c0_i32_1 = arith.constant 0 : i32
    return %c0_i32, %c0_i32_0 : i32, i32
  }
  func.func @transform_6(%arg0: i32) -> (i32, i32) {
    %c0_i32 = arith.constant 0 : i32
    %c0_i32_0 = arith.constant 0 : i32
    %c0_i32_1 = arith.constant 0 : i32
    return %c0_i32, %c0_i32_0 : i32, i32
  }
  func.func @transform_7(%arg0: i32) -> (i32, i32) {
    %c0_i32 = arith.constant 0 : i32
    %c0_i32_0 = arith.constant 0 : i32
    %c0_i32_1 = arith.constant 0 : i32
    return %c0_i32, %c0_i32_0 : i32, i32
  }
  func.func @transform_8(%arg0: i32) -> (i32, i32) {
    %c0_i32 = arith.constant 0 : i32
    %c0_i32_0 = arith.constant 0 : i32
    %c0_i32_1 = arith.constant 0 : i32
    return %c0_i32, %c0_i32_0 : i32, i32
  }
  func.func @transform_9(%arg0: i32) -> (i32, i32) {
    %c0_i32 = arith.constant 0 : i32
    %c0_i32_0 = arith.constant 0 : i32
    %c0_i32_1 = arith.constant 0 : i32
    return %c0_i32, %c0_i32_0 : i32, i32
  }
  func.func @transform_10(%arg0: i32) -> (i32, i32) {
    %c0_i32 = arith.constant 0 : i32
    %c0_i32_0 = arith.constant 0 : i32
    %c0_i32_1 = arith.constant 0 : i32
    return %c0_i32, %c0_i32_0 : i32, i32
  }
  func.func @transform_11(%arg0: i32) -> (i32, i32) {
    %c0_i32 = arith.constant 0 : i32
    %c0_i32_0 = arith.constant 0 : i32
    %c0_i32_1 = arith.constant 0 : i32
    return %c0_i32, %c0_i32_0 : i32, i32
  }
  func.func @transform_12(%arg0: i32) -> (i32, i32) {
    %c0_i32 = arith.constant 0 : i32
    %c0_i32_0 = arith.constant 0 : i32
    %c0_i32_1 = arith.constant 0 : i32
    return %c0_i32, %c0_i32_0 : i32, i32
  }
  func.func @transform_13(%arg0: i32) -> (i32, i32) {
    %c0_i32 = arith.constant 0 : i32
    %c0_i32_0 = arith.constant 0 : i32
    %c0_i32_1 = arith.constant 0 : i32
    return %c0_i32, %c0_i32_0 : i32, i32
  }
  func.func @transform_14(%arg0: i32) -> (i32, i32, i32) {
    %c0_i32 = arith.constant 0 : i32
    %c0_i32_0 = arith.constant 0 : i32
    %c0_i32_1 = arith.constant 0 : i32
    return %arg0, %c0_i32, %c0_i32_0 : i32, i32, i32
  }
}

</mosaic_0001>

<bundles_post_ra>
// kernel: decoder_forward.3
= control target key start
LH: loop header
LB: loop body
LE: loop exit
PB: predicated region body
PF: predicated region fallthrough
CT: control target
= control target key end

     0   :  { %s2097_s0 = inlined_call_operand.vmem [shape: f32[2,8,32], index: 0, kind: input, shape index: {}]   ;;  %s2098_s1 = inlined_call_operand.vmem [shape: f32[2,8,32], index: 1, kind: input, shape index: {}]   ;;  %s2099_s2 = inlined_call_operand.vmem [shape: f32[2,8,8], index: 2, kind: input, shape index: {}]   ;;  %s2100_s3 = inlined_call_operand.vmem [shape: f32[2,8,8], index: 3, kind: input, shape index: {}]   ;;  %s2101_s4 = inlined_call_operand.vmem [shape: bf16[32,96], index: 4, kind: input, shape index: {}]   ;;  %s2102_s5 = inlined_call_operand.vmem [shape: f32[1,96], index: 5, kind: input, shape index: {}]   ;;  %s2103_s6 = inlined_call_operand.vmem [shape: bf16[32,32], index: 6, kind: input, shape index: {}]   ;;  %s2104_s7 = inlined_call_operand.vmem [shape: f32[1,32], index: 7, kind: input, shape index: {}]   ;;  %s2105_s8 = inlined_call_operand.vmem [shape: f32[1,32], index: 8, kind: input, shape index: {}]   ;;  %s2106_s9 = inlined_call_operand.vmem [shape: f32[1,32], index: 9, kind: input, shape index: {}]   ;;  %s2107_s10 = inlined_call_operand.vmem [shape: bf16[32,64], index: 10, kind: input, shape index: {}]   ;;  %s2108_s11 = inlined_call_operand.vmem [shape: f32[1,64], index: 11, kind: input, shape index: {}]   ;;  %s2109_s12 = inlined_call_operand.vmem [shape: bf16[64,32], index: 12, kind: input, shape index: {}]   ;;  %s2110_s13 = inlined_call_operand.vmem [shape: f32[1,32], index: 13, kind: input, shape index: {}]   ;;  %s2111_s14 = inlined_call_operand.hbm [shape: f32[2,8,32], index: 14, kind: output, shape index: {}]  }
   0x1   :  { %2125 = sst [smem:[#allocation6_spill]] %s2097_s0 }
   0x2   :  { %2126 = sst [smem:[#allocation7_spill]] %s2098_s1 }
   0x3   :  { %2127 = sst [smem:[#allocation8_spill]] %s2099_s2 }
   0x4   :  { %19 = vsyncpa [#allocation3], 0 }
   0x5   :  { %21 = vsyncpa [#allocation3 + $0x1], 0  ;;  %s1782_s29 = smov 0   ;;  %s1784_s30 = smov 0  }
   0x6   :  { %s1786_s15 = smov 0   ;;  %s1788_s16 = smov 0  }
   0x7 LB: > { %s1803_s17 = sadd.s32 4294967295, %s1690_s16   ;;  %s1442_s18 = sadd.s32 4294967294, %s1690_s16   ;;  %s1690_s16 = sphi %s1788_s16, %s2148_s16   ;;  %s1686_s15 = sphi %s1786_s15, %s2147_s15   ;;  %s1682_s30 = sphi %s1784_s30, %s2146_s30   ;;  %s1678_s29 = sphi %s1782_s29, %s2145_s29  }
   0x8   : > { %s1807_s19 = sadd.s32 1, %s1690_s16   ;;  %s348_s20 = sadd.s32 1, %s1686_s15 }
   0x9   : > { %s345_s21 = ssub.s32 %s1690_s16, %s1807_s19  ;;  %p358_p0 = scmp.ne.s32.totalorder %s1686_s15, %s1682_s30 }
   0xa   : > { %p346_p1 = scmp.eq.s32.totalorder %s345_s21, 0  ;;  %p359_p2 = scmp.eq.s32.totalorder %s1803_s17, 1 }
   0xb   : > { %p364_p3 = scmp.ne.s32.totalorder %s1682_s30, %s1678_s29  ;;  %p365_p4 = scmp.eq.s32.totalorder %s1442_s18, 1 }
   0xc   : > { %s1818_s22 = scalar_select %p346_p1, %s1686_s15, %s348_s20  }
   0xd   : > { %p1820_p5 = por %p359_p2, %p358_p0  ;;  %p1824_p6 = por %p365_p4, %p364_p3 }
   0xe   : > { %2128 = sst [smem:[#allocation5_spill]] %s1818_s22  ;;  %p1445_p7 = scmp.ge.s32.totalorder %s1690_s16, 1 }
   0xf   : > { %p441_p8 = scmp.lt.s32.totalorder %s1690_s16, 3 }
  0x11   : > { %p442_p9 = pnand %p1445_p7, %p441_p8 }
  0x12   : > { %p498_p10 = scmp.lt.s32.totalorder (!%p442_p9), %s1803_s17, 1  ;;  %s2131_s0 = sld [smem:[#allocation6_spill]] (!%p442_p9) }
  0x13   : > { %445 = sbr.rel (%p442_p9) target bundleno = 2954 (0xb8a), region = 76  ;;  %s2112_s22 = smov (!%p442_p9), 96  }
  0x14   : > { %s2114_s28 = smov (!%p442_p9), 104   ;;  %s2118_s21 = smov (!%p442_p9), 88  }
  0x15   : > { %s2117_s26 = smov (!%p442_p9), 72   ;;  %s2119_s27 = smov (!%p442_p9), 112  }
  0x16   : > { %s2132_s2 = sld [smem:[#allocation8_spill]] (!%p442_p9) }
  0x17   : > { %s2134_s1 = sld [smem:[#allocation7_spill]] (!%p442_p9) }
  0x18   : > { %v1833_v0 = vld [vmem:[%s2101_s4 + $0x8] sm:$0xff]  ;;  %v1840_v1 = vld [vmem:[%s2101_s4] sm:$0xff]  ;;  %s499_s18 = scalar_select %p498_p10, %s1803_s17, 1  ;;  %vm559_vm0 = vcmask 261120   ;;  %vm585_vm1 = vcmask 64512   ;;  %vm620_vm2 = vcmask 1043456  }
  0x19   : > { %569 = vmatpush.bf16.msra.mxu0 %v1833_v0  ;;  %v1858_v4 = vld [vmem:[%s2102_s5] ss:$0 sm:$0xff]  ;;  %vm823_vm3 = vcmask 130048   ;;  %vm825_vm4 = vcmask 195584   ;;  %vm1288_vm12 = vcmask 523264  }
  0x1a   : > { %s1843_s20 = sshll.u32 %s499_s18, 3  ;;  %s2124_s18 = smov 120  }
  0x1b   : > { %s501_s25 = scalar_lea.vmem %s2131_s0, %s1843_s20 }
  0x1c   : > { %v1850_v2 = vld [vmem:[%s501_s25] sm:$0xff]  ;;  %s2116_s25 = smov 80  }
  0x1d   : > { %570 = vmatpush.bf16.msra.mxu0 %v1840_v1  ;;  %v543_v3 = vpack.c.bf16 %v1850_v2, %v1850_v2 }
  0x20   : > { %1459 = vmatmul.msk.bf16.vlgmr.msra.gmra.mxu0 %vm559_vm0, %v543_v3 }
  0x9d   : > { %v572_v5 = vpop.f32.mrf.mxu0 }
  0x9e   : > { %v573_v6 = vadd.f32 %v1858_v4, %v572_v5 }
  0xa0   : > { %v577_v7 = vmul.f32 0.35355338, %v573_v6  ;;  %v579_v8 = vpack.c.bf16 %v573_v6, %v573_v6 }
  0xa2   : > { %v578_v9 = vpack.c.bf16 %v577_v7, %v577_v7  ;;  %v581_v10 = vunpack.c.l.b16 %v579_v8 }
  0xa4   : > { %v1861_v11 = vpack.c.b16 %v581_v10, %v581_v10  ;;  %v640_v12 = vunpack.c.l.b16 %v578_v9 }
  0xa5   : > { %v574_v13 = vpop.f32.mrf.mxu0 }
  0xa6   : > { %583 = vrot.lane.b32.xlu0 %v1861_v11, %s2112_s22  ;;  %v641_v14 = vpack.c.b16 %v640_v12, %v640_v12  ;;  %s1699_s22 = smov 64  }
  0xa8   : > { %754 = vrot.lane.b32.xlu2 %v641_v14, %s2114_s28  ;;  %642 = vrot.lane.b32.xlu1 %v641_v14, %s2124_s18  ;;  %s1700_s28 = smov 56  }
  0xae   : > { %644 = vrot.lane.b32.xlu0 %v1861_v11, %s2118_s21  ;;  %s505_s21 = scalar_lea.vmem %s2134_s1, %s1843_s20 }
  0xb0   : > { %700 = vrot.lane.b32.xlu2 %v1861_v11, %s2116_s25  ;;  %756 = vrot.lane.b32.xlu1 %v1861_v11, %s2117_s26  ;;  %s509_s25 = scalar_lea.vmem %s2132_s2, %s1843_s20  ;;  %s2123_s26 = smov 24  }
  0xb1   : > { %v576_v30 = vld [vmem:[%s509_s25] sm:$0xff]  ;;  %s1701_s25 = smov 48  }
  0xb6   : > { %698 = vrot.lane.b32.xlu0 %v641_v14, %s2119_s27  ;;  %s2135_s27 = smov 112  }
  0xb8   : > { %615 = vrot.lane.b32.xlu2 %v1861_v11, %s1699_s22  ;;  %s1702_s22 = smov 40  }
  0xc0   : > { %675 = vrot.lane.b32.xlu2 %v1861_v11, %s1700_s28  ;;  %s2133_s28 = smov 96  }
 0x102   : > { %v755_v15 = vpop.permute.xlu2 %754 }
 0x10a   : > { %v701_v16 = vpop.permute.xlu2 %700 }
 0x10b   : > { %v706_v17 = vsel %vm585_vm1, %v701_v16, 0 }
 0x10c   : > { %715 = vmatpush.bf16.xpose.msrb.mxu0 %v706_v17 }
 0x112   : > { %v616_v18 = vpop.permute.xlu2 %615 }
 0x113   : > { %v622_v19 = vsel %vm620_vm2, %v616_v18, 0 }
 0x114   : > { %631 = vmatpush.bf16.msra.mxu2 %v622_v19 }
 0x118   : > { %v584_v20 = vpop.permute.xlu0 %583 }
 0x119   : > { %v590_v21 = vsel %vm585_vm1, %v584_v20, 0 }
 0x11a   : > { %599 = vmatpush.bf16.xpose.msra.mxu1 %v590_v21  ;;  %v676_v22 = vpop.permute.xlu2 %675  ;;  %v643_v23 = vpop.permute.xlu1 %642 }
 0x11b   : > { %v681_v24 = vsel %vm620_vm2, %v676_v22, 0 }
 0x11c   : > { %690 = vmatpush.bf16.msrb.mxu2 %v681_v24 }
 0x120   : > { %v645_v25 = vpop.permute.xlu0 %644 }
 0x121   : > { %1460 = vmatmul.msk.bf16.vlgmr.msra.gmra.mxu1 %vm585_vm1, %v578_v9  ;;  %v650_v26 = vsel %vm585_vm1, %v645_v25, 0 }
 0x122   : > { %659 = vmatpush.bf16.xpose.msra.mxu3 %v650_v26  ;;  %v757_v27 = vpop.permute.xlu1 %756 }
 0x123   : > { %v762_v28 = vsel %vm585_vm1, %v757_v27, 0 }
 0x128   : > { %v699_v29 = vpop.permute.xlu0 %698 }
 0x129   : > { %1462 = vmatmul.msk.bf16.vlgmr.msra.gmra.mxu3 %vm585_vm1, %v643_v23  ;;  %1464 = vmatmul.msk.bf16.vlgmr.msrb.gmra.mxu0 %vm585_vm1, %v699_v29 }
 0x12a   : > { %771 = vmatpush.bf16.xpose.msrb.mxu3 %v762_v28 }
 0x139   : > { %1466 = vmatmul.msk.bf16.vlgmr.msrb.gmra.mxu3 %vm585_vm1, %v755_v15 }
 0x19e   : > { %v601_v31 = vpop.f32.mrf.mxu1 }
 0x19f   : > { %v602_v32 = vadd.f32 %v601_v31, %v576_v30  ;;  %v1924_v31 = vld [vmem:[%s2103_s6] sm:$0xff] }
 0x1a1   : > { %v605_v33 = vsel %vm585_vm1, %v602_v32, -inf }
 0x1a2   : > { %606 = vmax.xlane.f32.xlu1 %v605_v33 }
 0x1a6   : > { %v603_v34 = vpop.f32.mrf.mxu1  ;;  %v717_v35 = vpop.f32.mrf.mxu0 }
 0x1a7   : > { %v718_v36 = vadd.f32 %v717_v35, %v576_v30 }
 0x1a9   : > { %v721_v37 = vsel %vm585_vm1, %v718_v36, -inf }
 0x1aa   : > { %722 = vmax.xlane.f32.xlu1 %v721_v37 }
 0x1ac   : > { %v661_v38 = vpop.f32.mrf.mxu3 }
 0x1ad   : > { %v662_v39 = vadd.f32 %v661_v38, %v576_v30 }
 0x1ae   : > { %v719_v40 = vpop.f32.mrf.mxu0 }
 0x1af   : > { %v665_v41 = vsel %vm585_vm1, %v662_v39, -inf }
 0x1b0   : > { %666 = vmax.xlane.f32.xlu0 %v665_v41 }
 0x1b4   : > { %v663_v42 = vpop.f32.mrf.mxu3 }
 0x1b5   : > { %v1934_v42 = vld [vmem:[%s2104_s7] ss:$0 sm:$0xff] }
 0x1bc   : > { %v773_v43 = vpop.f32.mrf.mxu3 }
 0x1bd   : > { %v774_v44 = vadd.f32 %v773_v43, %v576_v30  ;;  %v1918_v30 = vld [vmem:[%s2103_s6 + $0x8] sm:$0xff] }
 0x1be   : > { %852 = vmatpush.bf16.msra.mxu0 %v1918_v30 }
 0x1bf   : > { %v777_v45 = vsel %vm585_vm1, %v774_v44, -inf }
 0x1c0   : > { %778 = vmax.xlane.f32.xlu2 %v777_v45 }
 0x1c2   : > { %853 = vmatpush.bf16.msra.mxu0 %v1924_v31 }
 0x1c3   : > { %731 = vrot.lane.b32.xlu1 %v1861_v11, %s1701_s25  ;;  %s2121_s25 = smov 8  }
 0x1c4   : > { %787 = vrot.lane.b32.xlu0 %v1861_v11, %s1702_s22  ;;  %v775_v46 = vpop.f32.mrf.mxu3  ;;  %s2122_s22 = smov 16  }
 0x215   : > { %v607_v47 = vpop.xlane.xlu1 %606 }
 0x216   : > { %v608_v48 = vsub.f32 %v602_v32, %v607_v47 }
 0x218   : > { %v609_v49 = vmul.f32 1.442695, %v608_v48  ;;  %v1706_v48 = vmov 32.0  }
 0x21a   : > { %1588 = vpow2.f32 %v609_v49 }
 0x21d   : > { %v723_v52 = vpop.xlane.xlu1 %722 }
 0x21e   : > { %v724_v55 = vsub.f32 %v718_v36, %v723_v52 }
 0x220   : > { %v1589_v50 = vpop.eup %1588  ;;  %v725_v57 = vmul.f32 1.442695, %v724_v55 }
 0x221   : > { %v614_v51 = vpack.c.bf16 %v1589_v50, %v1589_v50  ;;  %v611_v13 = vsel %vm585_vm1, %v1589_v50, 0.0 }
 0x223   : > { %v667_v53 = vpop.xlane.xlu0 %666  ;;  %1461 = vmatmul.msk.bf16.vlgmr.msra.gmra.mxu2 %vm585_vm1, %v614_v51  ;;  %v542_v51 = vld [vmem:[%s505_s21] sm:$0xff]  ;;  %s2141_s21 = smov 8  }
 0x224   : > { %v668_v54 = vsub.f32 %v662_v39, %v667_v53 }
 0x226   : > { %v669_v56 = vmul.f32 1.442695, %v668_v54 }
 0x228   : > { %1590 = vpow2.f32 %v669_v56 }
 0x229   : > { %1592 = vpow2.f32 %v725_v57 }
 0x22e   : > { %v1591_v58 = vpop.eup %1590 }
 0x22f   : > { %v671_v59 = vsel %vm585_vm1, %v1591_v58, 0.0  ;;  %v674_v60 = vpack.c.bf16 %v1591_v58, %v1591_v58  ;;  %v1593_v62 = vpop.eup %1592 }
 0x230   : > { %672 = vadd.xlane.f32.xlu2 %v671_v59  ;;  %v727_v9 = vsel %vm585_vm1, %v1593_v62, 0.0  ;;  %v730_v10 = vpack.c.bf16 %v1593_v62, %v1593_v62 }
 0x233   : > { %v779_v61 = vpop.xlane.xlu2 %778  ;;  %1463 = vmatmul.msk.bf16.vlgmr.msrb.gmra.mxu2 %vm585_vm1, %v674_v60 }
 0x234   : > { %v780_v63 = vsub.f32 %v774_v44, %v779_v61 }
 0x235   : > { %v732_v3 = vpop.permute.xlu1 %731 }
 0x236   : > { %v781_v5 = vmul.f32 1.442695, %v780_v63  ;;  %v788_v6 = vpop.permute.xlu0 %787  ;;  %v737_v7 = vsel %vm620_vm2, %v732_v3, 0 }
 0x237   : > { %v793_v8 = vsel %vm620_vm2, %v788_v6, 0  ;;  %746 = vmatpush.bf16.msrb.mxu1 %v737_v7 }
 0x238   : > { %1594 = vpow2.f32 %v781_v5  ;;  %802 = vmatpush.bf16.msra.mxu2 %v793_v8  ;;  %728 = vadd.xlane.f32.xlu2 %v727_v9 }
 0x23a   : > { %1465 = vmatmul.msk.bf16.vlgmr.msrb.gmra.mxu1 %vm585_vm1, %v730_v10 }
 0x23b   : > { %907 = vmatpush.bf16.msra.mxu1 %v1833_v0 }
 0x23e   : > { %v1595_v11 = vpop.eup %1594 }
 0x23f   : > { %908 = vmatpush.bf16.msra.mxu1 %v1840_v1  ;;  %v783_v12 = vsel %vm585_vm1, %v1595_v11, 0.0  ;;  %v786_v14 = vpack.c.bf16 %v1595_v11, %v1595_v11 }
 0x240   : > { %784 = vadd.xlane.f32.xlu0 %v783_v12  ;;  %612 = vadd.xlane.f32.xlu2 %v611_v13 }
 0x243   : > { %1467 = vmatmul.msk.bf16.vlgmr.msra.gmra.mxu2 %vm585_vm1, %v786_v14 }
 0x254   : > { %917 = vrot.lane.b32.xlu0 %v1833_v0, %s2133_s28 }
 0x25c   : > { %915 = vrot.lane.b32.xlu0 %v1840_v1, %s2133_s28 }
 0x2a3   : > { %v673_v15 = vpop.xlane.xlu2 %672 }
 0x2a4   : > { %1596 = vrcp.f32 %v673_v15 }
 0x2a6   : > { %v633_v16 = vpop.f32.mrf.mxu2 }
 0x2aa   : > { %v1597_v19 = vpop.eup %1596 }
 0x2ab   : > { %v729_v17 = vpop.xlane.xlu2 %728 }
 0x2ac   : > { %1598 = vrcp.f32 %v729_v17 }
 0x2ae   : > { %v635_v18 = vpop.f32.mrf.mxu2 }
 0x2b2   : > { %v1599_v21 = vpop.eup %1598 }
 0x2b3   : > { %v785_v0 = vpop.xlane.xlu0 %784  ;;  %v613_v32 = vpop.xlane.xlu2 %612 }
 0x2b4   : > { %1600 = vrcp.f32 %v785_v0 }
 0x2b5   : > { %1602 = vrcp.f32 %v613_v32 }
 0x2b6   : > { %v692_v20 = vpop.f32.mrf.mxu2  ;;  %1604 = vrcp.f32 %v1706_v48 }
 0x2b7   : > { %v697_v22 = vmul.f32 %v1597_v19, %v692_v20  ;;  %v748_v23 = vpop.f32.mrf.mxu1  ;;  %v1961_v20 = vld [vmem:[%s2105_s8] ss:$0 sm:$0xff] }
 0x2b8   : > { %v753_v24 = vmul.f32 %v1599_v21, %v748_v23 }
 0x2b9   : > { %811 = vrot.lane.b32.xlu1 %v697_v22, %s2121_s25  ;;  %v1966_v22 = vld [vmem:[%s2106_s9] ss:$0 sm:$0xff]  ;;  %s2138_s25 = smov 88  }
 0x2ba   : > { %815 = vrot.lane.b32.xlu2 %v753_v24, %s2122_s22  ;;  %v1601_v26 = vpop.eup %1600  ;;  %s2139_s22 = smov 72  }
 0x2bb   : > { %v1603_v33 = vpop.eup %1602 }
 0x2bc   : > { %v638_v35 = vmul.f32 %v1603_v33, %v633_v16  ;;  %v1605_v50 = vpop.eup %1604 }
 0x2bd   : > { %v864_v52 = vmul.f32 32.0, %v1605_v50  ;;  %vm868_vm5 = vweird.f32 %v1605_v50 }
 0x2be   : > { %v694_v1 = vpop.f32.mrf.mxu2 }
 0x2bf   : > { %v750_v25 = vpop.f32.mrf.mxu1  ;;  %v865_v54 = vsub.f32 1.0, %v864_v52 }
 0x2c1   : > { %v866_v55 = vmul.f32 %v1605_v50, %v865_v54 }
 0x2c3   : > { %v867_v56 = vadd.f32 %v1605_v50, %v866_v55 }
 0x2c5   : > { %v1946_v57 = vsel %vm868_vm5, %v1605_v50, %v867_v56 }
 0x2c6   : > { %v804_v27 = vpop.f32.mrf.mxu2  ;;  %v918_v49 = vpop.permute.xlu0 %917 }
 0x2c7   : > { %v809_v28 = vmul.f32 %v1601_v26, %v804_v27  ;;  %933 = vmatpush.bf16.msra.mxu3 %v918_v49 }
 0x2c9   : > { %819 = vrot.lane.b32.xlu1 %v809_v28, %s2123_s26  ;;  %s2137_s26 = smov 120  }
 0x2ce   : > { %v806_v29 = vpop.f32.mrf.mxu2  ;;  %v916_v53 = vpop.permute.xlu0 %915 }
 0x2cf   : > { %934 = vmatpush.bf16.msra.mxu3 %v916_v53 }
 0x314   : > { %v816_v37 = vpop.permute.xlu2 %815 }
 0x32b   : > { %v812_v34 = vpop.permute.xlu1 %811 }
 0x32c   : > { %v822_v36 = vsel %vm585_vm1, %v638_v35, %v812_v34 }
 0x32d   : > { %v824_v38 = vsel %vm823_vm3, %v822_v36, %v816_v37 }
 0x33b   : > { %v820_v39 = vpop.permute.xlu1 %819 }
 0x33c   : > { %v826_v40 = vsel %vm825_vm4, %v824_v38, %v820_v39 }
 0x33d   : > { %v827_v41 = vpack.c.bf16 %v826_v40, %v826_v40 }
 0x33f   : > { %1476 = vmatmul.msk.bf16.vlgmr.msra.gmra.mxu0 %vm559_vm0, %v827_v41 }
 0x3bc   : > { %v855_v43 = vpop.f32.mrf.mxu0 }
 0x3bd   : > { %v856_v44 = vadd.f32 %v1934_v42, %v855_v43 }
 0x3bf   : > { %v859_v45 = vadd.f32 %v856_v44, %v1850_v2  ;;  %v914_v2 = vpack.c.bf16 %v542_v51, %v542_v51 }
 0x3c1   : > { %v860_v46 = vsel %vm559_vm0, %v859_v45, 0.0  ;;  %1478 = vmatmul.msk.bf16.vlgmr.msra.gmra.mxu3 %vm559_vm0, %v914_v2 }
 0x3c2   : > { %861 = vadd.xlane.f32.xlu1 %v860_v46 }
 0x3c4   : > { %v857_v47 = vpop.f32.mrf.mxu0 }
 0x3db   : > { %921 = vrot.lane.b32.xlu1 %v1858_v4, %s2133_s28 }
 0x435   : > { %v862_v58 = vpop.xlane.xlu1 %861 }
 0x436   : > { %v870_v59 = vmul.f32 %v1946_v57, %v862_v58 }
 0x438   : > { %v871_v60 = vsub.f32 %v859_v45, %v870_v59 }
 0x43a   : > { %v872_v61 = vmul.f32 %v871_v60, %v871_v60 }
 0x43c   : > { %v873_v62 = vsel %vm559_vm0, %v872_v61, 0.0 }
 0x43d   : > { %874 = vadd.xlane.f32.xlu2 %v873_v62 }
 0x444   : > { %v936_v63 = vpop.f32.mrf.mxu3 }
 0x44c   : > { %v938_v13 = vpop.f32.mrf.mxu3 }
 0x44d   : > { %v922_v3 = vpop.permute.xlu1 %921 }
 0x44e   : > { %v937_v6 = vadd.f32 %v936_v63, %v922_v3 }
 0x450   : > { %v943_v8 = vpack.c.bf16 %v937_v6, %v937_v6 }
 0x452   : > { %v948_v10 = vsel %vm585_vm1, %v943_v8, 0  ;;  %v974_v11 = vunpack.c.l.b16 %v943_v8 }
 0x453   : > { %957 = vmatpush.bf16.xpose.msrb.mxu2 %v948_v10 }
 0x454   : > { %v1952_v12 = vpack.c.b16 %v974_v11, %v974_v11 }
 0x456   : > { %1004 = vrot.lane.b32.xlu0 %v1952_v12, %s2124_s18  ;;  %s2136_s18 = smov 104  }
 0x45e   : > { %1060 = vrot.lane.b32.xlu0 %v1952_v12, %s2135_s27 }
 0x466   : > { %1116 = vrot.lane.b32.xlu0 %v1952_v12, %s2136_s18 }
 0x4b0   : > { %v875_v5 = vpop.xlane.xlu2 %874 }
 0x4b1   : > { %v876_v7 = vmul.f32 %v875_v5, %v1946_v57 }
 0x4b3   : > { %v877_v9 = vadd.f32 1e-12, %v876_v7 }
 0x4b5   : > { %1606 = vrsqrt.f32 %v877_v9  ;;  %vm884_vm7 = vweird.f32 %v877_v9 }
 0x4bb   : > { %v1607_v14 = vpop.eup %1606 }
 0x4bc   : > { %v879_v15 = vmul.f32 %v1607_v14, %v877_v9  ;;  %vm885_vm6 = vweird.f32 %v1607_v14 }
 0x4bd   : > { %vm886_vm8 = vmor %vm884_vm7, %vm885_vm6 }
 0x4be   : > { %v880_v16 = vmul.f32 %v1607_v14, %v879_v15 }
 0x4c0   : > { %v881_v17 = vmul.f32 0.5, %v880_v16 }
 0x4c2   : > { %v882_v18 = vsub.f32 1.5, %v881_v17 }
 0x4c4   : > { %v883_v19 = vmul.f32 %v1607_v14, %v882_v18 }
 0x4c6   : > { %v887_v21 = vsel %vm886_vm8, %v1607_v14, %v883_v19 }
 0x4c7   : > { %v888_v23 = vmul.f32 %v887_v21, %v871_v60 }
 0x4c8   : > { %v1005_v25 = vpop.permute.xlu0 %1004 }
 0x4c9   : > { %v892_v24 = vmul.f32 %v1961_v20, %v888_v23  ;;  %v1010_v26 = vsel %vm585_vm1, %v1005_v25, 0 }
 0x4ca   : > { %1019 = vmatpush.bf16.xpose.msrb.mxu1 %v1010_v26 }
 0x4cb   : > { %v1972_v0 = vadd.f32 %v1966_v22, %v892_v24 }
 0x4cd   : > { %v897_v1 = vpack.c.bf16 %v1972_v0, %v1972_v0 }
 0x4cf   : > { %1477 = vmatmul.msk.bf16.vlgmr.msra.gmra.mxu1 %vm559_vm0, %v897_v1 }
 0x54c   : > { %v910_v27 = vpop.f32.mrf.mxu1 }
 0x54d   : > { %v911_v28 = vadd.f32 %v1858_v4, %v910_v27  ;;  %v1061_v4 = vpop.permute.xlu0 %1060 }
 0x54e   : > { %v1066_v36 = vsel %vm585_vm1, %v1061_v4, 0 }
 0x54f   : > { %v941_v29 = vmul.f32 0.35355338, %v911_v28  ;;  %1075 = vmatpush.bf16.xpose.msra.mxu2 %v1066_v36 }
 0x551   : > { %v942_v32 = vpack.c.bf16 %v941_v29, %v941_v29 }
 0x553   : > { %v1000_v33 = vunpack.c.l.b16 %v942_v32  ;;  %1479 = vmatmul.msk.bf16.vlgmr.msrb.gmra.mxu2 %vm585_vm1, %v942_v32 }
 0x554   : > { %v912_v34 = vpop.f32.mrf.mxu1 }
 0x555   : > { %v1001_v35 = vpack.c.b16 %v1000_v33, %v1000_v33  ;;  %v1117_v37 = vpop.permute.xlu0 %1116 }
 0x556   : > { %v1122_v38 = vsel %vm585_vm1, %v1117_v37, 0 }
 0x557   : > { %1058 = vrot.lane.b32.xlu1 %v1001_v35, %s2135_s27  ;;  %1002 = vrot.lane.b32.xlu2 %v1001_v35, %s2137_s26  ;;  %s513_s27 = scalar_lea.vmem %s2100_s3, %s1843_s20  ;;  %s2140_s20 = smov 80  }
 0x558   : > { %1114 = vrot.lane.b32.xlu0 %v1001_v35, %s2136_s18  ;;  %1195 = vmatpush.bf16.msrb.mxu2 %v1918_v30  ;;  %v940_v43 = vld [vmem:[%s513_s27] sm:$0xff]  ;;  %s2142_s26 = smov 16   ;;  %s495_s18 = sand.u32 1, %s1682_s30  }
 0x559   : > { %1131 = vmatpush.bf16.xpose.msra.mxu1 %v1122_v38  ;;  %s1515_s27 = sshll.u32 %s1803_s17, 3  ;;  %s1332_s17 = scalar_lea.sflag [#allocation3], %s495_s18 }
 0x55c   : > { %1196 = vmatpush.bf16.msrb.mxu2 %v1924_v31 }
 0x560   : > { %1035 = vrot.lane.b32.xlu0 %v1952_v12, %s2138_s25  ;;  %s2143_s25 = smov 24  }
 0x568   : > { %976 = vrot.lane.b32.xlu0 %v1952_v12, %s2133_s28  ;;  %s1446_s28 = sshll.u32 %s495_s18, 3 }
 0x5b1   : > { %v1003_v39 = vpop.permute.xlu2 %1002 }
 0x5b2   : > { %1481 = vmatmul.msk.bf16.vlgmr.msrb.gmra.mxu1 %vm585_vm1, %v1003_v39 }
 0x5c9   : > { %v1059_v40 = vpop.permute.xlu1 %1058 }
 0x5ca   : > { %v1115_v41 = vpop.permute.xlu0 %1114  ;;  %1483 = vmatmul.msk.bf16.vlgmr.msra.gmra.mxu2 %vm585_vm1, %v1059_v40 }
 0x5cb   : > { %1485 = vmatmul.msk.bf16.vlgmr.msra.gmra.mxu1 %vm585_vm1, %v1115_v41 }
 0x5d2   : > { %v1036_v30 = vpop.permute.xlu0 %1035 }
 0x5d3   : > { %v1041_v31 = vsel %vm620_vm2, %v1036_v30, 0 }
 0x5d4   : > { %1050 = vmatpush.bf16.msrb.mxu3 %v1041_v31 }
 0x5d6   : > { %v959_v44 = vpop.f32.mrf.mxu2 }
 0x5d7   : > { %v960_v45 = vadd.f32 %v959_v44, %v940_v43 }
 0x5d9   : > { %v963_v46 = vsel %vm585_vm1, %v960_v45, -inf }
 0x5da   : > { %v977_v47 = vpop.permute.xlu0 %976  ;;  %964 = vmax.xlane.f32.xlu2 %v963_v46 }
 0x5db   : > { %v982_v48 = vsel %vm620_vm2, %v977_v47, 0 }
 0x5dc   : > { %991 = vmatpush.bf16.msrb.mxu0 %v982_v48 }
 0x5de   : > { %v961_v49 = vpop.f32.mrf.mxu2 }
 0x5f2   : > { %1147 = vrot.lane.b32.xlu2 %v1952_v12, %s2139_s22  ;;  %s1648_s22 = scalar_lea.hbm %s2111_s14, 16 }
 0x62f   : > { %v1021_v50 = vpop.f32.mrf.mxu1 }
 0x630   : > { %v1022_v51 = vadd.f32 %v1021_v50, %v940_v43 }
 0x632   : > { %v1025_v52 = vsel %vm585_vm1, %v1022_v51, -inf }
 0x633   : > { %1026 = vmax.xlane.f32.xlu1 %v1025_v52 }
 0x637   : > { %v1023_v53 = vpop.f32.mrf.mxu1 }
 0x648   : > { %v1133_v2 = vpop.f32.mrf.mxu1 }
 0x649   : > { %v1134_v54 = vadd.f32 %v1133_v2, %v940_v43 }
 0x64b   : > { %v1137_v55 = vsel %vm585_vm1, %v1134_v54, -inf }
 0x64c   : > { %1138 = vmax.xlane.f32.xlu0 %v1137_v55 }
 0x64d   : > { %v965_v56 = vpop.xlane.xlu2 %964  ;;  %v1077_v58 = vpop.f32.mrf.mxu2 }
 0x64e   : > { %v966_v59 = vsub.f32 %v960_v45, %v965_v56  ;;  %v1078_v60 = vadd.f32 %v1077_v58, %v940_v43 }
 0x650   : > { %v967_v61 = vmul.f32 1.442695, %v966_v59  ;;  %v1135_v62 = vpop.f32.mrf.mxu1  ;;  %v1081_v63 = vsel %vm585_vm1, %v1078_v60, -inf }
 0x651   : > { %1082 = vmax.xlane.f32.xlu1 %v1081_v63 }
 0x652   : > { %1608 = vpow2.f32 %v967_v61 }
 0x655   : > { %v1148_v3 = vpop.permute.xlu2 %1147  ;;  %v1079_v5 = vpop.f32.mrf.mxu2 }
 0x656   : > { %v1153_v6 = vsel %vm620_vm2, %v1148_v3, 0 }
 0x657   : > { %1162 = vmatpush.bf16.msra.mxu3 %v1153_v6 }
 0x658   : > { %v1609_v7 = vpop.eup %1608 }
 0x659   : > { %v972_v8 = vpack.c.bf16 %v1609_v7, %v1609_v7  ;;  %v969_v9 = vsel %vm585_vm1, %v1609_v7, 0.0 }
 0x65b   : > { %1480 = vmatmul.msk.bf16.vlgmr.msrb.gmra.mxu0 %vm585_vm1, %v972_v8  ;;  %v1523_v8 = vld [vmem:[%s2107_s10 + $0x8] sm:$0xff] }
 0x66a   : > { %1091 = vrot.lane.b32.xlu1 %v1952_v12, %s2140_s20 }
 0x694   : > { %970 = vadd.xlane.f32.xlu1 %v969_v9 }
 0x6a6   : > { %v1027_v10 = vpop.xlane.xlu1 %1026 }
 0x6a7   : > { %v1028_v11 = vsub.f32 %v1022_v51, %v1027_v10 }
 0x6a9   : > { %v1029_v13 = vmul.f32 1.442695, %v1028_v11  ;;  %v1526_v11 = vld [vmem:[%s2109_s12 + $0x10] sm:$0xff] }
 0x6ab   : > { %1610 = vpow2.f32 %v1029_v13 }
 0x6b1   : > { %v1611_v14 = vpop.eup %1610 }
 0x6b2   : > { %v1034_v15 = vpack.c.bf16 %v1611_v14, %v1611_v14  ;;  %v1031_v16 = vsel %vm585_vm1, %v1611_v14, 0.0 }
 0x6b3   : > { %1032 = vadd.xlane.f32.xlu0 %v1031_v16 }
 0x6b4   : > { %1482 = vmatmul.msk.bf16.vlgmr.msrb.gmra.mxu3 %vm585_vm1, %v1034_v15 }
 0x6bf   : > { %v1139_v17 = vpop.xlane.xlu0 %1138 }
 0x6c0   : > { %v1140_v18 = vsub.f32 %v1134_v54, %v1139_v17 }
 0x6c2   : > { %v1141_v19 = vmul.f32 1.442695, %v1140_v18 }
 0x6c4   : > { %1612 = vpow2.f32 %v1141_v19  ;;  %v1083_v21 = vpop.xlane.xlu1 %1082 }
 0x6c5   : > { %v1084_v12 = vsub.f32 %v1078_v60, %v1083_v21 }
 0x6c7   : > { %v1085_v23 = vmul.f32 1.442695, %v1084_v12 }
 0x6c9   : > { %1614 = vpow2.f32 %v1085_v23 }
 0x6ca   : > { %v1613_v24 = vpop.eup %1612 }
 0x6cb   : > { %v1146_v1 = vpack.c.bf16 %v1613_v24, %v1613_v24  ;;  %v1143_v25 = vsel %vm585_vm1, %v1613_v24, 0.0 }
 0x6cc   : > { %1144 = vadd.xlane.f32.xlu0 %v1143_v25  ;;  %v1525_v25 = vld [vmem:[%s2109_s12 + $0x8] sm:$0xff] }
 0x6cd   : > { %1486 = vmatmul.msk.bf16.vlgmr.msra.gmra.mxu3 %vm585_vm1, %v1146_v1 }
 0x6cf   : > { %v1615_v26 = vpop.eup %1614 }
 0x6d0   : > { %v1087_v27 = vsel %vm585_vm1, %v1615_v26, 0.0  ;;  %v1090_v33 = vpack.c.bf16 %v1615_v26, %v1615_v26  ;;  %v1524_v26 = vld [vmem:[%s2109_s12] sm:$0xff] }
 0x6d1   : > { %1088 = vadd.xlane.f32.xlu2 %v1087_v27  ;;  %v1586_v27 = vld [vmem:[%s2108_s11] ss:$0 sm:$0xff] }
 0x6d8   : > { %v993_v28 = vpop.f32.mrf.mxu0 }
 0x6dc   : > { %v1092_v29 = vpop.permute.xlu1 %1091 }
 0x6dd   : > { %v1097_v32 = vsel %vm620_vm2, %v1092_v29, 0 }
 0x6de   : > { %1106 = vmatpush.bf16.msra.mxu0 %v1097_v32 }
 0x6e0   : > { %v995_v34 = vpop.f32.mrf.mxu0 }
 0x6e1   : > { %1484 = vmatmul.msk.bf16.vlgmr.msra.gmra.mxu0 %vm585_vm1, %v1090_v33 }
 0x6e2   : > { %1252 = vmatpush.bf16.msrb.mxu0 %v1523_v8 }
 0x707   : > { %v971_v49 = vpop.xlane.xlu1 %970 }
 0x726   : > { %v1033_v35 = vpop.xlane.xlu0 %1032 }
 0x727   : > { %1616 = vrcp.f32 %v1033_v35  ;;  %v1587_v35 = vld [vmem:[%s2110_s13] ss:$0 sm:$0xff] }
 0x72d   : > { %v1617_v4 = vpop.eup %1616 }
 0x737   : > { %v1052_v36 = vpop.f32.mrf.mxu3 }
 0x738   : > { %v1057_v37 = vmul.f32 %v1617_v4, %v1052_v36 }
 0x73a   : > { %1171 = vrot.lane.b32.xlu0 %v1057_v37, %s2141_s21  ;;  %s1342_s21 = scalar_lea.hbm %s2111_s14, %s1515_s27 }
 0x73b   : > { %s1346_s0 = sshll.u32 %s1342_s21, 4  ;;  %s1347_s0 = int_to_ptr.hbm [resolvable:$true] %s1346_s0 }
 0x73c   : > { %s1642_s1 = sshra.s32 %s1347_s0, 4  ;;  %s1643_s1 = int_to_ptr.hbm [resolvable:$true] %s1642_s1 }
 0x73d   : > { %s1644_s2 = scalar_lea.hbm %s1643_s1, 8  ;;  %p1649_p0 = scmp.lt.s32.totalorder %s1643_s1, %s2111_s14 }
 0x73e   : > { %p1645_p11 = scmp.ne.s32.totalorder %s1643_s1, %s1644_s2  ;;  %p1650_p1 = scmp.lt.s32.totalorder %s1648_s22, %s1644_s2 }
 0x73f   : > { %v1054_v38 = vpop.f32.mrf.mxu3  ;;  %v1145_v30 = vpop.xlane.xlu0 %1144 }
 0x740   : > { %p1646_p12 = pnand %p1645_p11, %p1820_p5  ;;  %p1651_p2 = por %p1650_p1, %p1649_p0 }
 0x742   : > { %p1647_p13 = pneg %p1646_p12 }
 0x744   : > { %v1089_v40 = vpop.xlane.xlu2 %1088  ;;  %p1652_p3 = pnand %p1651_p2, %p1647_p13 }
 0x745   : > { %1618 = vrcp.f32 %v1089_v40 }
 0x746   : > { %1620 = vrcp.f32 %v1145_v30 }
 0x747   : > { %1622 = vrcp.f32 %v971_v49 }
 0x74b   : > { %v1619_v31 = vpop.eup %1618 }
 0x74c   : > { %v1621_v45 = vpop.eup %1620 }
 0x74d   : > { %v1623_v51 = vpop.eup %1622 }
 0x74e   : > { %v998_v52 = vmul.f32 %v1623_v51, %v993_v28 }
 0x750   : > { %v1164_v39 = vpop.f32.mrf.mxu3 }
 0x751   : > { %v1169_v47 = vmul.f32 %v1621_v45, %v1164_v39 }
 0x758   : > { %v1166_v41 = vpop.f32.mrf.mxu3 }
 0x75e   : > { %v1108_v43 = vpop.f32.mrf.mxu0 }
 0x75f   : > { %v1113_v44 = vmul.f32 %v1619_v31, %v1108_v43 }
 0x761   : > { %1175 = vrot.lane.b32.xlu0 %v1113_v44, %s2142_s26  ;;  %s497_s26 = scalar_lea.vmem [#allocation2], %s1446_s28 }
 0x766   : > { %v1110_v46 = vpop.f32.mrf.mxu0 }
 0x769   : > { %1179 = vrot.lane.b32.xlu0 %v1169_v47, %s2143_s25  ;;  %s1344_s25 = sshll.u32 %s497_s26, 4  ;;  %s1345_s25 = int_to_ptr.vmem [resolvable:$true] %s1344_s25 }
 0x7ac   : > { %v1172_v48 = vpop.permute.xlu0 %1171 }
 0x7ad   : > { %v1182_v53 = vsel %vm585_vm1, %v998_v52, %v1172_v48 }
 0x7d3   : > { %v1176_v50 = vpop.permute.xlu0 %1175 }
 0x7d4   : > { %v1183_v2 = vsel %vm823_vm3, %v1182_v53, %v1176_v50 }
 0x7db   : > { %v1180_v54 = vpop.permute.xlu0 %1179 }
 0x7dc   : > { %v1184_v55 = vsel %vm825_vm4, %v1183_v2, %v1180_v54 }
 0x7dd   : > { %v1185_v56 = vpack.c.bf16 %v1184_v55, %v1184_v55 }
 0x7df   : > { %1487 = vmatmul.msk.bf16.vlgmr.msrb.gmra.mxu2 %vm559_vm0, %v1185_v56 }
 0x862   : > { %v1198_v58 = vpop.f32.mrf.mxu2 }
 0x863   : > { %v1199_v59 = vadd.f32 %v1934_v42, %v1198_v58  ;;  %v1522_v42 = vld [vmem:[%s2107_s10] sm:$0xff] }
 0x864   : > { %1253 = vmatpush.bf16.msrb.mxu0 %v1522_v42 }
 0x865   : > { %v1202_v60 = vadd.f32 %v1199_v59, %v1972_v0  ;;  %v1527_v0 = vld [vmem:[%s2109_s12 + $0x18] sm:$0xff] }
 0x866   : > { %1296 = vmatpush.bf16.msrb.mxu1 %v1527_v0 }
 0x867   : > { %v1203_v61 = vsel %vm559_vm0, %v1202_v60, 0.0 }
 0x868   : > { %1204 = vadd.xlane.f32.xlu2 %v1203_v61 }
 0x86a   : > { %v1200_v62 = vpop.f32.mrf.mxu2  ;;  %1297 = vmatpush.bf16.msrb.mxu1 %v1526_v11 }
 0x86e   : > { %1298 = vmatpush.bf16.msrb.mxu1 %v1525_v25 }
 0x872   : > { %1299 = vmatpush.bf16.msrb.mxu1 %v1524_v26 }
 0x8db   : > { %v1205_v63 = vpop.xlane.xlu2 %1204 }
 0x8dc   : > { %v1206_v3 = vmul.f32 %v1205_v63, %v1946_v57 }
 0x8de   : > { %v1207_v5 = vsub.f32 %v1202_v60, %v1206_v3 }
 0x8e0   : > { %v1208_v6 = vmul.f32 %v1207_v5, %v1207_v5 }
 0x8e2   : > { %v1209_v7 = vsel %vm559_vm0, %v1208_v6, 0.0 }
 0x8e3   : > { %1210 = vadd.xlane.f32.xlu0 %v1209_v7 }
 0x956   : > { %v1211_v9 = vpop.xlane.xlu0 %1210 }
 0x957   : > { %v1212_v10 = vmul.f32 %v1211_v9, %v1946_v57 }
 0x959   : > { %v1213_v13 = vadd.f32 1e-12, %v1212_v10 }
 0x95b   : > { %1624 = vrsqrt.f32 %v1213_v13  ;;  %vm1220_vm10 = vweird.f32 %v1213_v13 }
 0x961   : > { %v1625_v14 = vpop.eup %1624 }
 0x962   : > { %v1215_v15 = vmul.f32 %v1625_v14, %v1213_v13  ;;  %vm1221_vm9 = vweird.f32 %v1625_v14 }
 0x963   : > { %vm1222_vm11 = vmor %vm1220_vm10, %vm1221_vm9 }
 0x964   : > { %v1216_v16 = vmul.f32 %v1625_v14, %v1215_v15 }
 0x966   : > { %v1217_v17 = vmul.f32 0.5, %v1216_v16 }
 0x968   : > { %v1218_v18 = vsub.f32 1.5, %v1217_v17 }
 0x96a   : > { %v1219_v19 = vmul.f32 %v1625_v14, %v1218_v18 }
 0x96c   : > { %v1223_v21 = vsel %vm1222_vm11, %v1625_v14, %v1219_v19 }
 0x96d   : > { %v1224_v12 = vmul.f32 %v1223_v21, %v1207_v5 }
 0x96f   : > { %v1225_v23 = vmul.f32 %v1961_v20, %v1224_v12 }
 0x971   : > { %v1226_v24 = vadd.f32 %v1966_v22, %v1225_v23 }
 0x973   : > { %v1227_v1 = vpack.c.bf16 %v1226_v24, %v1226_v24 }
 0x975   : > { %1496 = vmatmul.msk.bf16.vlgmr.msrb.gmra.mxu0 %vm559_vm0, %v1227_v1 }
 0x9f2   : > { %v1255_v28 = vpop.f32.mrf.mxu0 }
 0x9f3   : > { %v1256_v29 = vadd.f32 %v1586_v27, %v1255_v28 }
 0x9f5   : > { %v1259_v32 = vmax.f32 %v1256_v29, 0.0 }
 0x9f7   : > { %v1260_v33 = vpack.c.bf16 %v1259_v32, %v1259_v32 }
 0x9f9   : > { %1513 = vmatmul.msk.bf16.vlgmr.msrb.gmra.mxu1 %vm1288_vm12, %v1260_v33 }
 0x9fa   : > { %v1257_v34 = vpop.f32.mrf.mxu0 }
 0xa76   : > { %v1301_v4 = vpop.f32.mrf.mxu1 }
 0xa77   : > { %v1302_v36 = vadd.f32 %v1587_v35, %v1301_v4 }
 0xa79   : > { %v1305_v37 = vadd.f32 %v1302_v36, %v1226_v24 }
 0xa7b   : > { %v1306_v38 = vsel %vm559_vm0, %v1305_v37, 0.0 }
 0xa7c   : > { %1307 = vadd.xlane.f32.xlu1 %v1306_v38 }
 0xa7e   : > { %v1303_v39 = vpop.f32.mrf.mxu1 }
 0xaef   : > { %v1308_v40 = vpop.xlane.xlu1 %1307 }
 0xaf0   : > { %v1309_v41 = vmul.f32 %v1308_v40, %v1946_v57 }
 0xaf2   : > { %v1310_v30 = vsub.f32 %v1305_v37, %v1309_v41 }
 0xaf4   : > { %v1311_v31 = vmul.f32 %v1310_v30, %v1310_v30 }
 0xaf6   : > { %v1312_v43 = vsel %vm559_vm0, %v1311_v31, 0.0 }
 0xaf7   : > { %1313 = vadd.xlane.f32.xlu2 %v1312_v43 }
 0xb6a   : > { %v1314_v44 = vpop.xlane.xlu2 %1313 }
 0xb6b   : > { %v1315_v45 = vmul.f32 %v1314_v44, %v1946_v57 }
 0xb6d   : > { %v1316_v46 = vadd.f32 1e-12, %v1315_v45 }
 0xb6f   : > { %1626 = vrsqrt.f32 %v1316_v46  ;;  %vm1323_vm14 = vweird.f32 %v1316_v46 }
 0xb75   : > { %v1627_v47 = vpop.eup %1626 }
 0xb76   : > { %v1318_v48 = vmul.f32 %v1627_v47, %v1316_v46  ;;  %vm1324_vm13 = vweird.f32 %v1627_v47 }
 0xb77   : > { %vm1325_vm15 = vmor %vm1323_vm14, %vm1324_vm13 }
 0xb78   : > { %v1319_v49 = vmul.f32 %v1627_v47, %v1318_v48 }
 0xb7a   : > { %v1320_v50 = vmul.f32 0.5, %v1319_v49 }
 0xb7c   : > { %v1321_v51 = vsub.f32 1.5, %v1320_v50 }
 0xb7e   : > { %v1322_v52 = vmul.f32 %v1627_v47, %v1321_v51 }
 0xb80   : > { %v1326_v57 = vsel %vm1325_vm15, %v1627_v47, %v1322_v52 }
 0xb81   : > { %v1327_v53 = vmul.f32 %v1326_v57, %v1310_v30 }
 0xb83   : > { %v1328_v2 = vmul.f32 %v1961_v20, %v1327_v53 }
 0xb85   : > { %v1329_v54 = vadd.f32 %v1966_v22, %v1328_v2 }
 0xb87   : > { %1330 = vst.msk [vmem:[%s497_s26] sm:$0xff] %vm559_vm0, %v1329_v54 }
 0xb88   : > { %1655 = shalt.err (!%p1652_p3)
}
 0xb89   : > { %1528 = dma.vmem_to_hbm [thread:$0]  (%p1820_p5), %s1345_s25, 128, %s1347_s0, %s1332_s17  }
 0xb8a PF: > { %p1534_p4 = scmp.ge.s32.totalorder %s1690_s16, 2  ;;  %s1358_s18 = sand.u32 1, %s1678_s29  }
 0xb8b   : > { %s1359_s26 = scalar_lea.sflag [#allocation3], %s1358_s18 }
 0xb8c   : > { %p1531_p7 = pnand %p1534_p4, %p1824_p6 }
 0xb8e   : > { %p1532_p8 = pneg %p1531_p7 }
 0xb90   : > { %1673 = dma.done.wait (%p1532_p8), %s1359_s26, 128  }
 0xb91   : > { %1675 = vsyncadd (%p1532_p8), %s1359_s26, 4294967168  ;;  %s2144_s1 = sld [smem:[#allocation5_spill]]  ;;  %p24_p9 = scmp.ge.s32.totalorder %s1807_s19, 4  }
 0xb92   : > { %s2145_s29 = smov %s1682_s30  ;;  %s2146_s30 = smov %s1686_s15 }
 0xb93   : > { %s2148_s16 = smov %s1807_s19  ;;  %26 = sbr.rel (!%p24_p9) target bundleno = 7 (0x7), region = 120 }
 0xb97   : > { %s2147_s15 = smov %s2144_s1 }
 0xb98   :  { %1365 = vsyncpa [#allocation3], 1 }
 0xb99   :  { %1367 = vsyncpa [#allocation3 + $0x1], 1 }

// kernel: decoder_forward.2
= control target key start
LH: loop header
LB: loop body
LE: loop exit
PB: predicated region body
PF: predicated region fallthrough
CT: control target
= control target key end

     0   :  { %s1672_s29 = smov 0   ;;  %s1920_s0 = inlined_call_operand.vmem [shape: f32[2,8,32], index: 0, kind: input, shape index: {}]   ;;  %s1921_s1 = inlined_call_operand.vmem [shape: f32[2,8,32], index: 1, kind: input, shape index: {}]   ;;  %s1922_s2 = inlined_call_operand.vmem [shape: f32[2,8,8], index: 2, kind: input, shape index: {}]   ;;  %s1923_s3 = inlined_call_operand.vmem [shape: f32[2,8,8], index: 3, kind: input, shape index: {}]   ;;  %s1924_s4 = inlined_call_operand.vmem [shape: bf16[32,96], index: 4, kind: input, shape index: {}]   ;;  %s1925_s5 = inlined_call_operand.vmem [shape: f32[1,96], index: 5, kind: input, shape index: {}]   ;;  %s1926_s6 = inlined_call_operand.vmem [shape: bf16[32,32], index: 6, kind: input, shape index: {}]   ;;  %s1927_s7 = inlined_call_operand.vmem [shape: f32[1,32], index: 7, kind: input, shape index: {}]   ;;  %s1928_s8 = inlined_call_operand.vmem [shape: f32[1,32], index: 8, kind: input, shape index: {}]   ;;  %s1929_s9 = inlined_call_operand.vmem [shape: f32[1,32], index: 9, kind: input, shape index: {}]   ;;  %s1930_s10 = inlined_call_operand.vmem [shape: bf16[32,64], index: 10, kind: input, shape index: {}]   ;;  %s1931_s11 = inlined_call_operand.vmem [shape: f32[1,64], index: 11, kind: input, shape index: {}]   ;;  %s1932_s12 = inlined_call_operand.vmem [shape: bf16[64,32], index: 12, kind: input, shape index: {}]   ;;  %s1933_s13 = inlined_call_operand.vmem [shape: f32[1,32], index: 13, kind: input, shape index: {}]   ;;  %s1934_s14 = inlined_call_operand.vmem [shape: f32[2,8,32], index: 14, kind: output, shape index: {}]  }
   0x1 LB: > { %s1420_s30 = sadd.s32 4294967295, %s1580_s29   ;;  %p1424_p0 = scmp.ge.s32.totalorder %s1580_s29, 1  ;;  %s1580_s29 = sphi %s1672_s29, %s24_s29  }
   0x2   : > { %p438_p1 = scmp.lt.s32.totalorder %s1580_s29, 3 }
   0x4   : > { %p439_p2 = pnand %p1424_p0, %p438_p1 }
   0x5   : > { %p494_p3 = scmp.lt.s32.totalorder (!%p439_p2), %s1420_s30, 1  ;;  %s1582_s25 = smov (!%p439_p2), 96  }
   0x6   : > { %442 = sbr.rel (%p439_p2) target bundleno = 2939 (0xb7b), region = 76  ;;  %s1583_s26 = smov (!%p439_p2), 104  }
   0x7   : > { %s1584_s27 = smov (!%p439_p2), 120   ;;  %s1585_s28 = smov (!%p439_p2), 88  }
   0x8   : > { %s1587_s15 = smov (!%p439_p2), 72   ;;  %s1588_s16 = smov (!%p439_p2), 112  }
   0x9   : > { %s1589_s17 = smov (!%p439_p2), 64   ;;  %s1590_s18 = smov (!%p439_p2), 56  }
   0xa   : > { %s1591_s23 = smov (!%p439_p2), 48   ;;  %s1592_s24 = smov (!%p439_p2), 40  }
   0xb   : > { %v1683_v0 = vld [vmem:[%s1924_s4 + $0x8] sm:$0xff]  ;;  %v1689_v1 = vld [vmem:[%s1924_s4] sm:$0xff]  ;;  %s1936_s30 = smov (!%p494_p3, %s1420_s30), 1  ;;  %vm559_vm0 = vcmask 261120   ;;  %vm585_vm1 = vcmask 64512   ;;  %vm620_vm2 = vcmask 1043456  }
   0xc   : > { %569 = vmatpush.bf16.msra.mxu0 %v1683_v0  ;;  %s1691_s19 = sshll.u32 %s1936_s30, 3  ;;  %v1706_v4 = vld [vmem:[%s1925_s5] ss:$0 sm:$0xff]  ;;  %s1586_s30 = smov 80   ;;  %vm823_vm3 = vcmask 130048   ;;  %vm825_vm4 = vcmask 195584  }
   0xd   : > { %s497_s22 = scalar_lea.vmem %s1920_s0, %s1691_s19  ;;  %s1595_s20 = smov 24   ;;  %vm1288_vm12 = vcmask 523264  }
   0xe   : > { %v1698_v2 = vld [vmem:[%s497_s22] sm:$0xff]  ;;  %s505_s22 = scalar_lea.vmem %s1922_s2, %s1691_s19  ;;  %s501_s21 = scalar_lea.vmem %s1921_s1, %s1691_s19 }
   0xf   : > { %v543_v3 = vpack.c.bf16 %v1698_v2, %v1698_v2  ;;  %v576_v30 = vld [vmem:[%s505_s22] sm:$0xff] }
  0x10   : > { %570 = vmatpush.bf16.msra.mxu0 %v1689_v1 }
  0x13   : > { %1438 = vmatmul.msk.bf16.vlgmr.msra.gmra.mxu0 %vm559_vm0, %v543_v3 }
  0x90   : > { %v572_v5 = vpop.f32.mrf.mxu0 }
  0x91   : > { %v573_v6 = vadd.f32 %v1706_v4, %v572_v5 }
  0x93   : > { %v577_v7 = vmul.f32 0.35355338, %v573_v6  ;;  %v579_v8 = vpack.c.bf16 %v573_v6, %v573_v6 }
  0x95   : > { %v578_v9 = vpack.c.bf16 %v577_v7, %v577_v7  ;;  %v581_v10 = vunpack.c.l.b16 %v579_v8 }
  0x97   : > { %v1709_v11 = vpack.c.b16 %v581_v10, %v581_v10  ;;  %v640_v12 = vunpack.c.l.b16 %v578_v9 }
  0x98   : > { %v574_v13 = vpop.f32.mrf.mxu0 }
  0x99   : > { %583 = vrot.lane.b32.xlu0 %v1709_v11, %s1582_s25  ;;  %v641_v14 = vpack.c.b16 %v640_v12, %v640_v12 }
  0x9b   : > { %754 = vrot.lane.b32.xlu2 %v641_v14, %s1583_s26  ;;  %642 = vrot.lane.b32.xlu1 %v641_v14, %s1584_s27 }
  0xa1   : > { %644 = vrot.lane.b32.xlu0 %v1709_v11, %s1585_s28 }
  0xa3   : > { %700 = vrot.lane.b32.xlu2 %v1709_v11, %s1586_s30  ;;  %756 = vrot.lane.b32.xlu1 %v1709_v11, %s1587_s15 }
  0xa9   : > { %698 = vrot.lane.b32.xlu0 %v641_v14, %s1588_s16 }
  0xab   : > { %615 = vrot.lane.b32.xlu2 %v1709_v11, %s1589_s17  ;;  %s1593_s17 = smov 8  }
  0xb3   : > { %675 = vrot.lane.b32.xlu2 %v1709_v11, %s1590_s18  ;;  %s1594_s18 = smov 16  }
  0xf5   : > { %v755_v15 = vpop.permute.xlu2 %754 }
  0xfd   : > { %v701_v16 = vpop.permute.xlu2 %700 }
  0xfe   : > { %v706_v17 = vsel %vm585_vm1, %v701_v16, 0 }
  0xff   : > { %715 = vmatpush.bf16.xpose.msrb.mxu0 %v706_v17 }
 0x105   : > { %v616_v18 = vpop.permute.xlu2 %615 }
 0x106   : > { %v622_v19 = vsel %vm620_vm2, %v616_v18, 0 }
 0x107   : > { %631 = vmatpush.bf16.msra.mxu2 %v622_v19 }
 0x10b   : > { %v584_v20 = vpop.permute.xlu0 %583 }
 0x10c   : > { %v590_v21 = vsel %vm585_vm1, %v584_v20, 0 }
 0x10d   : > { %599 = vmatpush.bf16.xpose.msra.mxu1 %v590_v21  ;;  %v676_v22 = vpop.permute.xlu2 %675  ;;  %v643_v23 = vpop.permute.xlu1 %642 }
 0x10e   : > { %v681_v24 = vsel %vm620_vm2, %v676_v22, 0 }
 0x10f   : > { %690 = vmatpush.bf16.msrb.mxu2 %v681_v24 }
 0x113   : > { %v645_v25 = vpop.permute.xlu0 %644 }
 0x114   : > { %1439 = vmatmul.msk.bf16.vlgmr.msra.gmra.mxu1 %vm585_vm1, %v578_v9  ;;  %v650_v26 = vsel %vm585_vm1, %v645_v25, 0 }
 0x115   : > { %659 = vmatpush.bf16.xpose.msra.mxu3 %v650_v26  ;;  %v757_v27 = vpop.permute.xlu1 %756 }
 0x116   : > { %v762_v28 = vsel %vm585_vm1, %v757_v27, 0 }
 0x11b   : > { %v699_v29 = vpop.permute.xlu0 %698 }
 0x11c   : > { %1441 = vmatmul.msk.bf16.vlgmr.msra.gmra.mxu3 %vm585_vm1, %v643_v23  ;;  %1443 = vmatmul.msk.bf16.vlgmr.msrb.gmra.mxu0 %vm585_vm1, %v699_v29 }
 0x11d   : > { %771 = vmatpush.bf16.xpose.msrb.mxu3 %v762_v28 }
 0x12c   : > { %1445 = vmatmul.msk.bf16.vlgmr.msrb.gmra.mxu3 %vm585_vm1, %v755_v15 }
 0x191   : > { %v601_v31 = vpop.f32.mrf.mxu1 }
 0x192   : > { %v602_v32 = vadd.f32 %v601_v31, %v576_v30  ;;  %v1772_v31 = vld [vmem:[%s1926_s6] sm:$0xff] }
 0x194   : > { %v605_v33 = vsel %vm585_vm1, %v602_v32, -inf }
 0x195   : > { %606 = vmax.xlane.f32.xlu1 %v605_v33 }
 0x199   : > { %v603_v34 = vpop.f32.mrf.mxu1  ;;  %v717_v35 = vpop.f32.mrf.mxu0 }
 0x19a   : > { %v718_v36 = vadd.f32 %v717_v35, %v576_v30 }
 0x19c   : > { %v721_v37 = vsel %vm585_vm1, %v718_v36, -inf }
 0x19d   : > { %722 = vmax.xlane.f32.xlu1 %v721_v37 }
 0x19f   : > { %v661_v38 = vpop.f32.mrf.mxu3 }
 0x1a0   : > { %v662_v39 = vadd.f32 %v661_v38, %v576_v30 }
 0x1a1   : > { %v719_v40 = vpop.f32.mrf.mxu0 }
 0x1a2   : > { %v665_v41 = vsel %vm585_vm1, %v662_v39, -inf }
 0x1a3   : > { %666 = vmax.xlane.f32.xlu0 %v665_v41 }
 0x1a7   : > { %v663_v42 = vpop.f32.mrf.mxu3 }
 0x1a8   : > { %v1782_v42 = vld [vmem:[%s1927_s7] ss:$0 sm:$0xff] }
 0x1af   : > { %v773_v43 = vpop.f32.mrf.mxu3 }
 0x1b0   : > { %v774_v44 = vadd.f32 %v773_v43, %v576_v30  ;;  %v1766_v30 = vld [vmem:[%s1926_s6 + $0x8] sm:$0xff] }
 0x1b1   : > { %852 = vmatpush.bf16.msra.mxu0 %v1766_v30 }
 0x1b2   : > { %v777_v45 = vsel %vm585_vm1, %v774_v44, -inf }
 0x1b3   : > { %778 = vmax.xlane.f32.xlu2 %v777_v45 }
 0x1b5   : > { %853 = vmatpush.bf16.msra.mxu0 %v1772_v31 }
 0x1b6   : > { %731 = vrot.lane.b32.xlu1 %v1709_v11, %s1591_s23 }
 0x1b7   : > { %787 = vrot.lane.b32.xlu0 %v1709_v11, %s1592_s24  ;;  %v775_v46 = vpop.f32.mrf.mxu3 }
 0x208   : > { %v607_v47 = vpop.xlane.xlu1 %606 }
 0x209   : > { %v608_v48 = vsub.f32 %v602_v32, %v607_v47 }
 0x20b   : > { %v609_v49 = vmul.f32 1.442695, %v608_v48  ;;  %v1596_v48 = vmov 32.0  }
 0x20d   : > { %1534 = vpow2.f32 %v609_v49 }
 0x210   : > { %v723_v52 = vpop.xlane.xlu1 %722 }
 0x211   : > { %v724_v55 = vsub.f32 %v718_v36, %v723_v52 }
 0x213   : > { %v1535_v50 = vpop.eup %1534  ;;  %v725_v57 = vmul.f32 1.442695, %v724_v55 }
 0x214   : > { %v614_v51 = vpack.c.bf16 %v1535_v50, %v1535_v50  ;;  %v611_v13 = vsel %vm585_vm1, %v1535_v50, 0.0 }
 0x216   : > { %v667_v53 = vpop.xlane.xlu0 %666  ;;  %1440 = vmatmul.msk.bf16.vlgmr.msra.gmra.mxu2 %vm585_vm1, %v614_v51  ;;  %v542_v51 = vld [vmem:[%s501_s21] sm:$0xff] }
 0x217   : > { %v668_v54 = vsub.f32 %v662_v39, %v667_v53 }
 0x219   : > { %v669_v56 = vmul.f32 1.442695, %v668_v54 }
 0x21b   : > { %1536 = vpow2.f32 %v669_v56 }
 0x21c   : > { %1538 = vpow2.f32 %v725_v57 }
 0x221   : > { %v1537_v58 = vpop.eup %1536 }
 0x222   : > { %v671_v59 = vsel %vm585_vm1, %v1537_v58, 0.0  ;;  %v674_v60 = vpack.c.bf16 %v1537_v58, %v1537_v58  ;;  %v1539_v62 = vpop.eup %1538 }
 0x223   : > { %672 = vadd.xlane.f32.xlu2 %v671_v59  ;;  %v727_v9 = vsel %vm585_vm1, %v1539_v62, 0.0  ;;  %v730_v10 = vpack.c.bf16 %v1539_v62, %v1539_v62 }
 0x226   : > { %v779_v61 = vpop.xlane.xlu2 %778  ;;  %1442 = vmatmul.msk.bf16.vlgmr.msrb.gmra.mxu2 %vm585_vm1, %v674_v60 }
 0x227   : > { %v780_v63 = vsub.f32 %v774_v44, %v779_v61 }
 0x228   : > { %v732_v3 = vpop.permute.xlu1 %731 }
 0x229   : > { %v781_v5 = vmul.f32 1.442695, %v780_v63  ;;  %v788_v6 = vpop.permute.xlu0 %787  ;;  %v737_v7 = vsel %vm620_vm2, %v732_v3, 0 }
 0x22a   : > { %v793_v8 = vsel %vm620_vm2, %v788_v6, 0  ;;  %746 = vmatpush.bf16.msrb.mxu1 %v737_v7 }
 0x22b   : > { %1540 = vpow2.f32 %v781_v5  ;;  %802 = vmatpush.bf16.msra.mxu2 %v793_v8  ;;  %728 = vadd.xlane.f32.xlu2 %v727_v9 }
 0x22d   : > { %1444 = vmatmul.msk.bf16.vlgmr.msrb.gmra.mxu1 %vm585_vm1, %v730_v10 }
 0x22e   : > { %907 = vmatpush.bf16.msra.mxu1 %v1683_v0 }
 0x231   : > { %v1541_v11 = vpop.eup %1540 }
 0x232   : > { %908 = vmatpush.bf16.msra.mxu1 %v1689_v1  ;;  %v783_v12 = vsel %vm585_vm1, %v1541_v11, 0.0  ;;  %v786_v14 = vpack.c.bf16 %v1541_v11, %v1541_v11 }
 0x233   : > { %784 = vadd.xlane.f32.xlu0 %v783_v12  ;;  %612 = vadd.xlane.f32.xlu2 %v611_v13 }
 0x236   : > { %1446 = vmatmul.msk.bf16.vlgmr.msra.gmra.mxu2 %vm585_vm1, %v786_v14 }
 0x247   : > { %917 = vrot.lane.b32.xlu0 %v1683_v0, %s1582_s25 }
 0x24f   : > { %915 = vrot.lane.b32.xlu0 %v1689_v1, %s1582_s25 }
 0x296   : > { %v673_v15 = vpop.xlane.xlu2 %672 }
 0x297   : > { %1542 = vrcp.f32 %v673_v15 }
 0x299   : > { %v633_v16 = vpop.f32.mrf.mxu2 }
 0x29d   : > { %v1543_v19 = vpop.eup %1542 }
 0x29e   : > { %v729_v17 = vpop.xlane.xlu2 %728 }
 0x29f   : > { %1544 = vrcp.f32 %v729_v17 }
 0x2a1   : > { %v635_v18 = vpop.f32.mrf.mxu2 }
 0x2a5   : > { %v1545_v21 = vpop.eup %1544 }
 0x2a6   : > { %v785_v0 = vpop.xlane.xlu0 %784  ;;  %v613_v32 = vpop.xlane.xlu2 %612 }
 0x2a7   : > { %1546 = vrcp.f32 %v785_v0 }
 0x2a8   : > { %1548 = vrcp.f32 %v613_v32 }
 0x2a9   : > { %v692_v20 = vpop.f32.mrf.mxu2  ;;  %1550 = vrcp.f32 %v1596_v48 }
 0x2aa   : > { %v697_v22 = vmul.f32 %v1543_v19, %v692_v20  ;;  %v748_v23 = vpop.f32.mrf.mxu1  ;;  %v1809_v20 = vld [vmem:[%s1928_s8] ss:$0 sm:$0xff] }
 0x2ab   : > { %v753_v24 = vmul.f32 %v1545_v21, %v748_v23 }
 0x2ac   : > { %811 = vrot.lane.b32.xlu1 %v697_v22, %s1593_s17  ;;  %v1814_v22 = vld [vmem:[%s1929_s9] ss:$0 sm:$0xff] }
 0x2ad   : > { %815 = vrot.lane.b32.xlu2 %v753_v24, %s1594_s18  ;;  %v1547_v26 = vpop.eup %1546 }
 0x2ae   : > { %v1549_v33 = vpop.eup %1548 }
 0x2af   : > { %v638_v35 = vmul.f32 %v1549_v33, %v633_v16  ;;  %v1551_v50 = vpop.eup %1550 }
 0x2b0   : > { %v864_v52 = vmul.f32 32.0, %v1551_v50  ;;  %vm868_vm5 = vweird.f32 %v1551_v50 }
 0x2b1   : > { %v694_v1 = vpop.f32.mrf.mxu2 }
 0x2b2   : > { %v750_v25 = vpop.f32.mrf.mxu1  ;;  %v865_v54 = vsub.f32 1.0, %v864_v52 }
 0x2b4   : > { %v866_v55 = vmul.f32 %v1551_v50, %v865_v54 }
 0x2b6   : > { %v867_v56 = vadd.f32 %v1551_v50, %v866_v55 }
 0x2b8   : > { %v1794_v57 = vsel %vm868_vm5, %v1551_v50, %v867_v56 }
 0x2b9   : > { %v804_v27 = vpop.f32.mrf.mxu2  ;;  %v918_v49 = vpop.permute.xlu0 %917 }
 0x2ba   : > { %v809_v28 = vmul.f32 %v1547_v26, %v804_v27  ;;  %933 = vmatpush.bf16.msra.mxu3 %v918_v49 }
 0x2bc   : > { %819 = vrot.lane.b32.xlu1 %v809_v28, %s1595_s20 }
 0x2c1   : > { %v806_v29 = vpop.f32.mrf.mxu2  ;;  %v916_v53 = vpop.permute.xlu0 %915 }
 0x2c2   : > { %934 = vmatpush.bf16.msra.mxu3 %v916_v53 }
 0x307   : > { %v816_v37 = vpop.permute.xlu2 %815 }
 0x31e   : > { %v812_v34 = vpop.permute.xlu1 %811 }
 0x31f   : > { %v822_v36 = vsel %vm585_vm1, %v638_v35, %v812_v34 }
 0x320   : > { %v824_v38 = vsel %vm823_vm3, %v822_v36, %v816_v37 }
 0x32e   : > { %v820_v39 = vpop.permute.xlu1 %819 }
 0x32f   : > { %v826_v40 = vsel %vm825_vm4, %v824_v38, %v820_v39 }
 0x330   : > { %v827_v41 = vpack.c.bf16 %v826_v40, %v826_v40 }
 0x332   : > { %1455 = vmatmul.msk.bf16.vlgmr.msra.gmra.mxu0 %vm559_vm0, %v827_v41 }
 0x3af   : > { %v855_v43 = vpop.f32.mrf.mxu0 }
 0x3b0   : > { %v856_v44 = vadd.f32 %v1782_v42, %v855_v43 }
 0x3b2   : > { %v859_v45 = vadd.f32 %v856_v44, %v1698_v2  ;;  %v914_v2 = vpack.c.bf16 %v542_v51, %v542_v51 }
 0x3b4   : > { %v860_v46 = vsel %vm559_vm0, %v859_v45, 0.0  ;;  %1457 = vmatmul.msk.bf16.vlgmr.msra.gmra.mxu3 %vm559_vm0, %v914_v2 }
 0x3b5   : > { %861 = vadd.xlane.f32.xlu1 %v860_v46 }
 0x3b7   : > { %v857_v47 = vpop.f32.mrf.mxu0 }
 0x3ce   : > { %921 = vrot.lane.b32.xlu1 %v1706_v4, %s1582_s25 }
 0x428   : > { %v862_v58 = vpop.xlane.xlu1 %861 }
 0x429   : > { %v870_v59 = vmul.f32 %v1794_v57, %v862_v58 }
 0x42b   : > { %v871_v60 = vsub.f32 %v859_v45, %v870_v59 }
 0x42d   : > { %v872_v61 = vmul.f32 %v871_v60, %v871_v60 }
 0x42f   : > { %v873_v62 = vsel %vm559_vm0, %v872_v61, 0.0 }
 0x430   : > { %874 = vadd.xlane.f32.xlu2 %v873_v62 }
 0x437   : > { %v936_v63 = vpop.f32.mrf.mxu3 }
 0x43f   : > { %v938_v13 = vpop.f32.mrf.mxu3 }
 0x440   : > { %v922_v3 = vpop.permute.xlu1 %921 }
 0x441   : > { %v937_v6 = vadd.f32 %v936_v63, %v922_v3 }
 0x443   : > { %v943_v8 = vpack.c.bf16 %v937_v6, %v937_v6 }
 0x445   : > { %v948_v10 = vsel %vm585_vm1, %v943_v8, 0  ;;  %v974_v11 = vunpack.c.l.b16 %v943_v8 }
 0x446   : > { %957 = vmatpush.bf16.xpose.msrb.mxu2 %v948_v10 }
 0x447   : > { %v1800_v12 = vpack.c.b16 %v974_v11, %v974_v11 }
 0x449   : > { %1004 = vrot.lane.b32.xlu0 %v1800_v12, %s1584_s27 }
 0x451   : > { %1060 = vrot.lane.b32.xlu0 %v1800_v12, %s1588_s16 }
 0x459   : > { %1116 = vrot.lane.b32.xlu0 %v1800_v12, %s1583_s26 }
 0x4a3   : > { %v875_v5 = vpop.xlane.xlu2 %874 }
 0x4a4   : > { %v876_v7 = vmul.f32 %v875_v5, %v1794_v57 }
 0x4a6   : > { %v877_v9 = vadd.f32 1e-12, %v876_v7 }
 0x4a8   : > { %1552 = vrsqrt.f32 %v877_v9  ;;  %vm884_vm7 = vweird.f32 %v877_v9 }
 0x4ae   : > { %v1553_v14 = vpop.eup %1552 }
 0x4af   : > { %v879_v15 = vmul.f32 %v1553_v14, %v877_v9  ;;  %vm885_vm6 = vweird.f32 %v1553_v14 }
 0x4b0   : > { %vm886_vm8 = vmor %vm884_vm7, %vm885_vm6 }
 0x4b1   : > { %v880_v16 = vmul.f32 %v1553_v14, %v879_v15 }
 0x4b3   : > { %v881_v17 = vmul.f32 0.5, %v880_v16 }
 0x4b5   : > { %v882_v18 = vsub.f32 1.5, %v881_v17 }
 0x4b7   : > { %v883_v19 = vmul.f32 %v1553_v14, %v882_v18 }
 0x4b9   : > { %v887_v21 = vsel %vm886_vm8, %v1553_v14, %v883_v19 }
 0x4ba   : > { %v888_v23 = vmul.f32 %v887_v21, %v871_v60 }
 0x4bb   : > { %v1005_v25 = vpop.permute.xlu0 %1004 }
 0x4bc   : > { %v892_v24 = vmul.f32 %v1809_v20, %v888_v23  ;;  %v1010_v26 = vsel %vm585_vm1, %v1005_v25, 0 }
 0x4bd   : > { %1019 = vmatpush.bf16.xpose.msrb.mxu1 %v1010_v26 }
 0x4be   : > { %v1820_v0 = vadd.f32 %v1814_v22, %v892_v24 }
 0x4c0   : > { %v897_v1 = vpack.c.bf16 %v1820_v0, %v1820_v0 }
 0x4c2   : > { %1456 = vmatmul.msk.bf16.vlgmr.msra.gmra.mxu1 %vm559_vm0, %v897_v1 }
 0x53f   : > { %v910_v27 = vpop.f32.mrf.mxu1 }
 0x540   : > { %v911_v28 = vadd.f32 %v1706_v4, %v910_v27  ;;  %v1061_v4 = vpop.permute.xlu0 %1060 }
 0x541   : > { %v1066_v36 = vsel %vm585_vm1, %v1061_v4, 0 }
 0x542   : > { %v941_v29 = vmul.f32 0.35355338, %v911_v28  ;;  %1075 = vmatpush.bf16.xpose.msra.mxu2 %v1066_v36 }
 0x544   : > { %v942_v32 = vpack.c.bf16 %v941_v29, %v941_v29 }
 0x546   : > { %v1000_v33 = vunpack.c.l.b16 %v942_v32  ;;  %1458 = vmatmul.msk.bf16.vlgmr.msrb.gmra.mxu2 %vm585_vm1, %v942_v32 }
 0x547   : > { %v912_v34 = vpop.f32.mrf.mxu1 }
 0x548   : > { %v1001_v35 = vpack.c.b16 %v1000_v33, %v1000_v33  ;;  %v1117_v37 = vpop.permute.xlu0 %1116 }
 0x549   : > { %v1122_v38 = vsel %vm585_vm1, %v1117_v37, 0 }
 0x54a   : > { %1058 = vrot.lane.b32.xlu1 %v1001_v35, %s1588_s16  ;;  %1002 = vrot.lane.b32.xlu2 %v1001_v35, %s1584_s27  ;;  %s509_s27 = scalar_lea.vmem %s1923_s3, %s1691_s19 }
 0x54b   : > { %1114 = vrot.lane.b32.xlu0 %v1001_v35, %s1583_s26  ;;  %1195 = vmatpush.bf16.msrb.mxu2 %v1766_v30  ;;  %v940_v43 = vld [vmem:[%s509_s27] sm:$0xff] }
 0x54c   : > { %1131 = vmatpush.bf16.xpose.msra.mxu1 %v1122_v38 }
 0x54f   : > { %1196 = vmatpush.bf16.msrb.mxu2 %v1772_v31 }
 0x553   : > { %1035 = vrot.lane.b32.xlu0 %v1800_v12, %s1585_s28 }
 0x55b   : > { %976 = vrot.lane.b32.xlu0 %v1800_v12, %s1582_s25 }
 0x5a4   : > { %v1003_v39 = vpop.permute.xlu2 %1002 }
 0x5a5   : > { %1460 = vmatmul.msk.bf16.vlgmr.msrb.gmra.mxu1 %vm585_vm1, %v1003_v39 }
 0x5bc   : > { %v1059_v40 = vpop.permute.xlu1 %1058 }
 0x5bd   : > { %v1115_v41 = vpop.permute.xlu0 %1114  ;;  %1462 = vmatmul.msk.bf16.vlgmr.msra.gmra.mxu2 %vm585_vm1, %v1059_v40 }
 0x5be   : > { %1464 = vmatmul.msk.bf16.vlgmr.msra.gmra.mxu1 %vm585_vm1, %v1115_v41 }
 0x5c5   : > { %v1036_v30 = vpop.permute.xlu0 %1035 }
 0x5c6   : > { %v1041_v31 = vsel %vm620_vm2, %v1036_v30, 0 }
 0x5c7   : > { %1050 = vmatpush.bf16.msrb.mxu3 %v1041_v31 }
 0x5c9   : > { %v959_v44 = vpop.f32.mrf.mxu2 }
 0x5ca   : > { %v960_v45 = vadd.f32 %v959_v44, %v940_v43 }
 0x5cc   : > { %v963_v46 = vsel %vm585_vm1, %v960_v45, -inf }
 0x5cd   : > { %v977_v47 = vpop.permute.xlu0 %976  ;;  %964 = vmax.xlane.f32.xlu2 %v963_v46 }
 0x5ce   : > { %v982_v48 = vsel %vm620_vm2, %v977_v47, 0 }
 0x5cf   : > { %991 = vmatpush.bf16.msrb.mxu0 %v982_v48 }
 0x5d1   : > { %v961_v49 = vpop.f32.mrf.mxu2 }
 0x5e5   : > { %1147 = vrot.lane.b32.xlu2 %v1800_v12, %s1587_s15 }
 0x622   : > { %v1021_v50 = vpop.f32.mrf.mxu1 }
 0x623   : > { %v1022_v51 = vadd.f32 %v1021_v50, %v940_v43 }
 0x625   : > { %v1025_v52 = vsel %vm585_vm1, %v1022_v51, -inf }
 0x626   : > { %1026 = vmax.xlane.f32.xlu1 %v1025_v52 }
 0x62a   : > { %v1023_v53 = vpop.f32.mrf.mxu1 }
 0x63b   : > { %v1133_v2 = vpop.f32.mrf.mxu1 }
 0x63c   : > { %v1134_v54 = vadd.f32 %v1133_v2, %v940_v43 }
 0x63e   : > { %v1137_v55 = vsel %vm585_vm1, %v1134_v54, -inf }
 0x63f   : > { %1138 = vmax.xlane.f32.xlu0 %v1137_v55 }
 0x640   : > { %v965_v56 = vpop.xlane.xlu2 %964  ;;  %v1077_v58 = vpop.f32.mrf.mxu2 }
 0x641   : > { %v966_v59 = vsub.f32 %v960_v45, %v965_v56  ;;  %v1078_v60 = vadd.f32 %v1077_v58, %v940_v43 }
 0x643   : > { %v967_v61 = vmul.f32 1.442695, %v966_v59  ;;  %v1135_v62 = vpop.f32.mrf.mxu1  ;;  %v1081_v63 = vsel %vm585_vm1, %v1078_v60, -inf }
 0x644   : > { %1082 = vmax.xlane.f32.xlu1 %v1081_v63 }
 0x645   : > { %1554 = vpow2.f32 %v967_v61 }
 0x648   : > { %v1148_v3 = vpop.permute.xlu2 %1147  ;;  %v1079_v5 = vpop.f32.mrf.mxu2 }
 0x649   : > { %v1153_v6 = vsel %vm620_vm2, %v1148_v3, 0 }
 0x64a   : > { %1162 = vmatpush.bf16.msra.mxu3 %v1153_v6 }
 0x64b   : > { %v1555_v7 = vpop.eup %1554 }
 0x64c   : > { %v972_v8 = vpack.c.bf16 %v1555_v7, %v1555_v7  ;;  %v969_v9 = vsel %vm585_vm1, %v1555_v7, 0.0 }
 0x64e   : > { %1459 = vmatmul.msk.bf16.vlgmr.msrb.gmra.mxu0 %vm585_vm1, %v972_v8  ;;  %v1500_v8 = vld [vmem:[%s1930_s10 + $0x8] sm:$0xff] }
 0x65d   : > { %1091 = vrot.lane.b32.xlu1 %v1800_v12, %s1586_s30 }
 0x687   : > { %970 = vadd.xlane.f32.xlu1 %v969_v9 }
 0x699   : > { %v1027_v10 = vpop.xlane.xlu1 %1026 }
 0x69a   : > { %v1028_v11 = vsub.f32 %v1022_v51, %v1027_v10 }
 0x69c   : > { %v1029_v13 = vmul.f32 1.442695, %v1028_v11  ;;  %v1503_v11 = vld [vmem:[%s1932_s12 + $0x10] sm:$0xff] }
 0x69e   : > { %1556 = vpow2.f32 %v1029_v13 }
 0x6a4   : > { %v1557_v14 = vpop.eup %1556 }
 0x6a5   : > { %v1034_v15 = vpack.c.bf16 %v1557_v14, %v1557_v14  ;;  %v1031_v16 = vsel %vm585_vm1, %v1557_v14, 0.0 }
 0x6a6   : > { %1032 = vadd.xlane.f32.xlu0 %v1031_v16 }
 0x6a7   : > { %1461 = vmatmul.msk.bf16.vlgmr.msrb.gmra.mxu3 %vm585_vm1, %v1034_v15 }
 0x6b2   : > { %v1139_v17 = vpop.xlane.xlu0 %1138 }
 0x6b3   : > { %v1140_v18 = vsub.f32 %v1134_v54, %v1139_v17 }
 0x6b5   : > { %v1141_v19 = vmul.f32 1.442695, %v1140_v18 }
 0x6b7   : > { %1558 = vpow2.f32 %v1141_v19  ;;  %v1083_v21 = vpop.xlane.xlu1 %1082 }
 0x6b8   : > { %v1084_v12 = vsub.f32 %v1078_v60, %v1083_v21 }
 0x6ba   : > { %v1085_v23 = vmul.f32 1.442695, %v1084_v12 }
 0x6bc   : > { %1560 = vpow2.f32 %v1085_v23 }
 0x6bd   : > { %v1559_v24 = vpop.eup %1558 }
 0x6be   : > { %v1146_v1 = vpack.c.bf16 %v1559_v24, %v1559_v24  ;;  %v1143_v25 = vsel %vm585_vm1, %v1559_v24, 0.0 }
 0x6bf   : > { %1144 = vadd.xlane.f32.xlu0 %v1143_v25  ;;  %v1502_v25 = vld [vmem:[%s1932_s12 + $0x8] sm:$0xff] }
 0x6c0   : > { %1465 = vmatmul.msk.bf16.vlgmr.msra.gmra.mxu3 %vm585_vm1, %v1146_v1 }
 0x6c2   : > { %v1561_v26 = vpop.eup %1560 }
 0x6c3   : > { %v1087_v27 = vsel %vm585_vm1, %v1561_v26, 0.0  ;;  %v1090_v33 = vpack.c.bf16 %v1561_v26, %v1561_v26  ;;  %v1501_v26 = vld [vmem:[%s1932_s12] sm:$0xff] }
 0x6c4   : > { %1088 = vadd.xlane.f32.xlu2 %v1087_v27  ;;  %v1532_v27 = vld [vmem:[%s1931_s11] ss:$0 sm:$0xff] }
 0x6cb   : > { %v993_v28 = vpop.f32.mrf.mxu0 }
 0x6cf   : > { %v1092_v29 = vpop.permute.xlu1 %1091 }
 0x6d0   : > { %v1097_v32 = vsel %vm620_vm2, %v1092_v29, 0 }
 0x6d1   : > { %1106 = vmatpush.bf16.msra.mxu0 %v1097_v32 }
 0x6d3   : > { %v995_v34 = vpop.f32.mrf.mxu0 }
 0x6d4   : > { %1463 = vmatmul.msk.bf16.vlgmr.msra.gmra.mxu0 %vm585_vm1, %v1090_v33 }
 0x6d5   : > { %1252 = vmatpush.bf16.msrb.mxu0 %v1500_v8 }
 0x6fa   : > { %v971_v49 = vpop.xlane.xlu1 %970 }
 0x719   : > { %v1033_v35 = vpop.xlane.xlu0 %1032 }
 0x71a   : > { %1562 = vrcp.f32 %v1033_v35  ;;  %v1533_v35 = vld [vmem:[%s1933_s13] ss:$0 sm:$0xff] }
 0x720   : > { %v1563_v4 = vpop.eup %1562 }
 0x72a   : > { %v1052_v36 = vpop.f32.mrf.mxu3 }
 0x72b   : > { %v1057_v37 = vmul.f32 %v1563_v4, %v1052_v36 }
 0x72d   : > { %1171 = vrot.lane.b32.xlu0 %v1057_v37, %s1593_s17  ;;  %s513_s17 = scalar_lea.vmem %s1934_s14, %s1691_s19 }
 0x732   : > { %v1054_v38 = vpop.f32.mrf.mxu3  ;;  %v1145_v30 = vpop.xlane.xlu0 %1144 }
 0x737   : > { %v1089_v40 = vpop.xlane.xlu2 %1088 }
 0x738   : > { %1564 = vrcp.f32 %v1089_v40 }
 0x739   : > { %1566 = vrcp.f32 %v1145_v30 }
 0x73a   : > { %1568 = vrcp.f32 %v971_v49 }
 0x73e   : > { %v1565_v31 = vpop.eup %1564 }
 0x73f   : > { %v1567_v45 = vpop.eup %1566 }
 0x740   : > { %v1569_v51 = vpop.eup %1568 }
 0x741   : > { %v998_v52 = vmul.f32 %v1569_v51, %v993_v28 }
 0x743   : > { %v1164_v39 = vpop.f32.mrf.mxu3 }
 0x744   : > { %v1169_v47 = vmul.f32 %v1567_v45, %v1164_v39 }
 0x74b   : > { %v1166_v41 = vpop.f32.mrf.mxu3 }
 0x751   : > { %v1108_v43 = vpop.f32.mrf.mxu0 }
 0x752   : > { %v1113_v44 = vmul.f32 %v1565_v31, %v1108_v43 }
 0x754   : > { %1175 = vrot.lane.b32.xlu0 %v1113_v44, %s1594_s18 }
 0x759   : > { %v1110_v46 = vpop.f32.mrf.mxu0 }
 0x75c   : > { %1179 = vrot.lane.b32.xlu0 %v1169_v47, %s1595_s20 }
 0x79f   : > { %v1172_v48 = vpop.permute.xlu0 %1171 }
 0x7a0   : > { %v1182_v53 = vsel %vm585_vm1, %v998_v52, %v1172_v48 }
 0x7c6   : > { %v1176_v50 = vpop.permute.xlu0 %1175 }
 0x7c7   : > { %v1183_v2 = vsel %vm823_vm3, %v1182_v53, %v1176_v50 }
 0x7ce   : > { %v1180_v54 = vpop.permute.xlu0 %1179 }
 0x7cf   : > { %v1184_v55 = vsel %vm825_vm4, %v1183_v2, %v1180_v54 }
 0x7d0   : > { %v1185_v56 = vpack.c.bf16 %v1184_v55, %v1184_v55 }
 0x7d2   : > { %1466 = vmatmul.msk.bf16.vlgmr.msrb.gmra.mxu2 %vm559_vm0, %v1185_v56 }
 0x855   : > { %v1198_v58 = vpop.f32.mrf.mxu2 }
 0x856   : > { %v1199_v59 = vadd.f32 %v1782_v42, %v1198_v58  ;;  %v1499_v42 = vld [vmem:[%s1930_s10] sm:$0xff] }
 0x857   : > { %1253 = vmatpush.bf16.msrb.mxu0 %v1499_v42 }
 0x858   : > { %v1202_v60 = vadd.f32 %v1199_v59, %v1820_v0  ;;  %v1504_v0 = vld [vmem:[%s1932_s12 + $0x18] sm:$0xff] }
 0x859   : > { %1296 = vmatpush.bf16.msrb.mxu1 %v1504_v0 }
 0x85a   : > { %v1203_v61 = vsel %vm559_vm0, %v1202_v60, 0.0 }
 0x85b   : > { %1204 = vadd.xlane.f32.xlu2 %v1203_v61 }
 0x85d   : > { %v1200_v62 = vpop.f32.mrf.mxu2  ;;  %1297 = vmatpush.bf16.msrb.mxu1 %v1503_v11 }
 0x861   : > { %1298 = vmatpush.bf16.msrb.mxu1 %v1502_v25 }
 0x865   : > { %1299 = vmatpush.bf16.msrb.mxu1 %v1501_v26 }
 0x8ce   : > { %v1205_v63 = vpop.xlane.xlu2 %1204 }
 0x8cf   : > { %v1206_v3 = vmul.f32 %v1205_v63, %v1794_v57 }
 0x8d1   : > { %v1207_v5 = vsub.f32 %v1202_v60, %v1206_v3 }
 0x8d3   : > { %v1208_v6 = vmul.f32 %v1207_v5, %v1207_v5 }
 0x8d5   : > { %v1209_v7 = vsel %vm559_vm0, %v1208_v6, 0.0 }
 0x8d6   : > { %1210 = vadd.xlane.f32.xlu0 %v1209_v7 }
 0x949   : > { %v1211_v9 = vpop.xlane.xlu0 %1210 }
 0x94a   : > { %v1212_v10 = vmul.f32 %v1211_v9, %v1794_v57 }
 0x94c   : > { %v1213_v13 = vadd.f32 1e-12, %v1212_v10 }
 0x94e   : > { %1570 = vrsqrt.f32 %v1213_v13  ;;  %vm1220_vm10 = vweird.f32 %v1213_v13 }
 0x954   : > { %v1571_v14 = vpop.eup %1570 }
 0x955   : > { %v1215_v15 = vmul.f32 %v1571_v14, %v1213_v13  ;;  %vm1221_vm9 = vweird.f32 %v1571_v14 }
 0x956   : > { %vm1222_vm11 = vmor %vm1220_vm10, %vm1221_vm9 }
 0x957   : > { %v1216_v16 = vmul.f32 %v1571_v14, %v1215_v15 }
 0x959   : > { %v1217_v17 = vmul.f32 0.5, %v1216_v16 }
 0x95b   : > { %v1218_v18 = vsub.f32 1.5, %v1217_v17 }
 0x95d   : > { %v1219_v19 = vmul.f32 %v1571_v14, %v1218_v18 }
 0x95f   : > { %v1223_v21 = vsel %vm1222_vm11, %v1571_v14, %v1219_v19 }
 0x960   : > { %v1224_v12 = vmul.f32 %v1223_v21, %v1207_v5 }
 0x962   : > { %v1225_v23 = vmul.f32 %v1809_v20, %v1224_v12 }
 0x964   : > { %v1226_v24 = vadd.f32 %v1814_v22, %v1225_v23 }
 0x966   : > { %v1227_v1 = vpack.c.bf16 %v1226_v24, %v1226_v24 }
 0x968   : > { %1475 = vmatmul.msk.bf16.vlgmr.msrb.gmra.mxu0 %vm559_vm0, %v1227_v1 }
 0x9e5   : > { %v1255_v28 = vpop.f32.mrf.mxu0 }
 0x9e6   : > { %v1256_v29 = vadd.f32 %v1532_v27, %v1255_v28 }
 0x9e8   : > { %v1259_v32 = vmax.f32 %v1256_v29, 0.0 }
 0x9ea   : > { %v1260_v33 = vpack.c.bf16 %v1259_v32, %v1259_v32 }
 0x9ec   : > { %1492 = vmatmul.msk.bf16.vlgmr.msrb.gmra.mxu1 %vm1288_vm12, %v1260_v33 }
 0x9ed   : > { %v1257_v34 = vpop.f32.mrf.mxu0 }
 0xa69   : > { %v1301_v4 = vpop.f32.mrf.mxu1 }
 0xa6a   : > { %v1302_v36 = vadd.f32 %v1533_v35, %v1301_v4 }
 0xa6c   : > { %v1305_v37 = vadd.f32 %v1302_v36, %v1226_v24 }
 0xa6e   : > { %v1306_v38 = vsel %vm559_vm0, %v1305_v37, 0.0 }
 0xa6f   : > { %1307 = vadd.xlane.f32.xlu1 %v1306_v38 }
 0xa71   : > { %v1303_v39 = vpop.f32.mrf.mxu1 }
 0xae2   : > { %v1308_v40 = vpop.xlane.xlu1 %1307 }
 0xae3   : > { %v1309_v41 = vmul.f32 %v1308_v40, %v1794_v57 }
 0xae5   : > { %v1310_v30 = vsub.f32 %v1305_v37, %v1309_v41 }
 0xae7   : > { %v1311_v31 = vmul.f32 %v1310_v30, %v1310_v30 }
 0xae9   : > { %v1312_v43 = vsel %vm559_vm0, %v1311_v31, 0.0 }
 0xaea   : > { %1313 = vadd.xlane.f32.xlu2 %v1312_v43 }
 0xb5d   : > { %v1314_v44 = vpop.xlane.xlu2 %1313 }
 0xb5e   : > { %v1315_v45 = vmul.f32 %v1314_v44, %v1794_v57 }
 0xb60   : > { %v1316_v46 = vadd.f32 1e-12, %v1315_v45 }
 0xb62   : > { %1572 = vrsqrt.f32 %v1316_v46  ;;  %vm1323_vm14 = vweird.f32 %v1316_v46 }
 0xb68   : > { %v1573_v47 = vpop.eup %1572 }
 0xb69   : > { %v1318_v48 = vmul.f32 %v1573_v47, %v1316_v46  ;;  %vm1324_vm13 = vweird.f32 %v1573_v47 }
 0xb6a   : > { %vm1325_vm15 = vmor %vm1323_vm14, %vm1324_vm13 }
 0xb6b   : > { %v1319_v49 = vmul.f32 %v1573_v47, %v1318_v48 }
 0xb6d   : > { %v1320_v50 = vmul.f32 0.5, %v1319_v49 }
 0xb6f   : > { %v1321_v51 = vsub.f32 1.5, %v1320_v50 }
 0xb71   : > { %v1322_v52 = vmul.f32 %v1573_v47, %v1321_v51 }
 0xb73   : > { %v1326_v53 = vsel %vm1325_vm15, %v1573_v47, %v1322_v52 }
 0xb74   : > { %v1327_v2 = vmul.f32 %v1326_v53, %v1310_v30 }
 0xb76   : > { %v1328_v54 = vmul.f32 %v1809_v20, %v1327_v2 }
 0xb78   : > { %v1329_v57 = vadd.f32 %v1814_v22, %v1328_v54 }
 0xb7a   : > { %1330 = vst.msk [vmem:[%s513_s17] sm:$0xff] %vm559_vm0, %v1329_v57 }
 0xb7b PF: > { %s24_s29 = sadd.s32 1, %s1580_s29  }
 0xb7c   : > { %p21_p4 = scmp.ge.s32.totalorder %s24_s29, 4  }
 0xb7e   :  { %23 = sbr.rel (!%p21_p4) target bundleno = 1 (0x1), region = 115 }

</bundles_post_ra>
